<compile_context>
chip_gen: v7x
topology: tpu7x:2x2x1
jax: 0.10.0
libtpu: 0.0.40
codegen_flags: <defaults>
</compile_context>

<pallas_src>
import math

import jax
import jax.numpy as jnp
from jax import lax
from jax.experimental import pallas as pl
from jax.experimental.pallas import tpu as pltpu


C_IN = 64                       # module input channels
C1_PAD = 128                    # conv2a Cout (96) padded to a full 128-lane vreg
C_OUT = 208                     # per-branch output channels
FUSED1_N = C1_PAD + C_OUT       # 336: block-diag conv2a | conv2c output width
FUSED3_N = 2 * C1_PAD + C_OUT   # 464: conv2b at [0:208], conv2d block at [256:464]
K3 = 9 * C1_PAD                 # 1152: im2col depth for the fused 3x3 matmul


# ------------------------------- Pallas kernel ------------------------------ #

def _block2_fused_kernel(x_ref, w1_ref, b1_ref, wf_ref, bf_ref, out_ref, x1s_ref):
    """One batch tile of Block2 (NHWC).

    x_ref  : (B, H, W, 64)       f32  raw input tile
    w1_ref : (128, 336)          bf16 block-diagonal fused conv2a|conv2c weights
    b1_ref : (1, 336)            f32
    wf_ref : (1152, 464)         bf16 fused conv2b|conv2d im2col weights
    bf_ref : (1, 464)            f32
    out_ref: (3, B, H, W, 208)   f32  [0]=relu(conv2b), [1]=x2 branch, [2]=x3 branch
    x1s_ref: (B, H+2, W+2, 128)  bf16 zero-spatial-padded relu(conv2a) scratch
    """
    B, H, W, Cin = x_ref.shape
    C1 = x1s_ref.shape[-1]
    Cout = out_ref.shape[-1]
    M = B * H * W

    xb = x_ref[...].astype(jnp.bfloat16)                     # (B, H, W, 64)

    # Separable 3x3 max-pool (stride 1, SAME).  Edge replication is equivalent
    # to -inf padding for max.  H-shifts first (major axis, no relayout), then
    # only 2 sublane (W) shifts on the already-reduced tensor.
    xu = jnp.concatenate([xb[:, :1], xb[:, :H - 1]], axis=1)
    xd = jnp.concatenate([xb[:, 1:], xb[:, H - 1:]], axis=1)
    m1 = jnp.maximum(jnp.maximum(xb, xu), xd)
    ml = jnp.concatenate([m1[:, :, :1], m1[:, :, :W - 1]], axis=2)
    mr = jnp.concatenate([m1[:, :, 1:], m1[:, :, W - 1:]], axis=2)
    mp = jnp.maximum(jnp.maximum(m1, ml), mr)                # (B, H, W, 64)

    # Block-diagonal fused 1x1 convs: [x | maxpool(x)] @ [[w2a, 0], [0, w2c]].
    # K = 128, N = 336; conv2c already embedded at cols [200:264] (F.pad 72/72).
    lhs = jnp.concatenate([xb, mp], axis=-1).reshape(M, 2 * Cin)
    y12 = jnp.dot(lhs, w1_ref[...], preferred_element_type=jnp.float32)
    y12 = jnp.maximum(y12 + b1_ref[...], 0.0)                # (M, 336)

    # Branch 2 output: lane-aligned split at column 128.
    out_ref[1] = y12[:, C1:].reshape(B, H, W, Cout).astype(out_ref.dtype)

    # x1 = relu(conv2a(x)) (Cout zero-padded to 128) -> zero-spatial-padded bf16
    # scratch, written in ONE dense store (border re-zeroed every step so the
    # batch grid axis can safely stay "parallel" under megacore sharding).
    y1b = y12[:, :C1].reshape(B, H, W, C1).astype(x1s_ref.dtype)
    z_w = jnp.zeros((B, H, 1, C1), x1s_ref.dtype)
    z_h = jnp.zeros((B, 1, W + 2, C1), x1s_ref.dtype)
    x1s_ref[...] = jnp.concatenate(
        [z_h, jnp.concatenate([z_w, y1b, z_w], axis=2), z_h], axis=1)

    # Fused conv2b | conv2d: a single im2col matmul, K = 9*128 = 1152, N = 464.
    # conv2d's block starts at lane 256 so both result splits are lane-aligned.
    patch = jnp.concatenate(
        [x1s_ref[:, dy:dy + H, dx:dx + W, :]
         for dy in range(3) for dx in range(3)],
        axis=-1).reshape(M, 9 * C1)
    acc = jnp.dot(patch, wf_ref[...], preferred_element_type=jnp.float32)
    acc = jnp.maximum(acc + bf_ref[...], 0.0)                # (M, 464)
    out_ref[0] = acc[:, :Cout].reshape(B, H, W, Cout).astype(out_ref.dtype)
    out_ref[2] = acc[:, 2 * C1:2 * C1 + Cout].reshape(
        B, H, W, Cout).astype(out_ref.dtype)


# ------------------------------ parameter prep ------------------------------ #

def _prepare_params(params):
    """Pad / fuse the HWIO params into lane-aligned bf16 MXU operands."""
    f32, bf16 = jnp.float32, jnp.bfloat16

    # Block-diagonal fused 1x1: rows [0:64] = conv2a (Cout 96 -> 128, zero cols),
    # rows [64:128] = conv2c embedded at cols [200:264] (folds F.pad 72/72).
    w1 = jnp.zeros((2 * C_IN, FUSED1_N), f32)
    w1 = w1.at[:C_IN, :96].set(params["conv2a_w"].reshape(C_IN, 96))
    w1 = w1.at[C_IN:, C1_PAD + 72:C1_PAD + 136].set(
        params["conv2c_w"].reshape(C_IN, 64))
    b1 = jnp.zeros((FUSED1_N,), f32)
    b1 = b1.at[:96].set(params["conv2a_b"])
    b1 = b1.at[C1_PAD + 72:C1_PAD + 136].set(params["conv2c_b"])

    # Fused 3x3: Cin 96 -> 128 (zero rows); conv2b at cols [0:208]; conv2d at
    # cols [296:424] (block base 256 keeps both result splits lane-aligned and
    # folds F.pad 40/40).  Taps flattened (dy, dx, cin) -> K = 1152 matches the
    # kernel's patch concatenation order.
    wf = jnp.zeros((3, 3, C1_PAD, FUSED3_N), f32)
    wf = wf.at[:, :, :96, 0:C_OUT].set(params["conv2b_w"])
    wf = wf.at[:, :, :96, 2 * C1_PAD + 40:2 * C1_PAD + 168].set(
        params["conv2d_w"])
    wf = wf.reshape(K3, FUSED3_N)
    bfv = jnp.zeros((FUSED3_N,), f32)
    bfv = bfv.at[0:C_OUT].set(params["conv2b_b"])
    bfv = bfv.at[2 * C1_PAD + 40:2 * C1_PAD + 168].set(params["conv2d_b"])

    return (w1.astype(bf16), b1.reshape(1, -1),
            wf.astype(bf16), bfv.reshape(1, -1))


def _pick_batch_tile(n, hw):
    """Smallest divisor of n with M = b*H*W >= 256 (MXU row fill); else n."""
    for b in range(1, n + 1):
        if n % b == 0 and b * hw >= 256:
            return b
    return n


# ------------------------------ Block2 forward ------------------------------ #

def init_block2_params(key, dtype=jnp.float32):
    """Init matching PyTorch Conv2d default (uniform +-1/sqrt(fan_in)); HWIO."""
    shapes = {
        "conv2a": (1, 1, 64, 96),
        "conv2b": (3, 3, 96, 208),
        "conv2c": (1, 1, 64, 64),
        "conv2d": (3, 3, 96, 128),
    }
    params = {}
    keys = jax.random.split(key, 2 * len(shapes))
    for i, (name, shp) in enumerate(sorted(shapes.items())):
        kh, kw, cin, cout = shp
        bound = 1.0 / math.sqrt(kh * kw * cin)
        params[name + "_w"] = jax.random.uniform(
            keys[2 * i], shp, dtype, minval=-bound, maxval=bound)
        params[name + "_b"] = jax.random.uniform(
            keys[2 * i + 1], (cout,), dtype, minval=-bound, maxval=bound)
    return params


def block2_forward(params, x1_nchw):
    """Block2.forward semantics: (N, 64, H, W) -> (3N, 208, H, W)."""
    x = jnp.transpose(x1_nchw, (0, 2, 3, 1)).astype(jnp.float32)    # NHWC
    N, H, W, Cin = x.shape
    assert Cin == C_IN
    w1, b1, wf, bfv = _prepare_params(params)

    bt = _pick_batch_tile(N, H * W)

    out5 = pl.pallas_call(
        _block2_fused_kernel,
        out_shape=jax.ShapeDtypeStruct((3, N, H, W, C_OUT), jnp.float32),
        grid=(N // bt,),
        in_specs=[
            pl.BlockSpec((bt, H, W, C_IN), lambda n: (n, 0, 0, 0)),
            pl.BlockSpec((2 * C_IN, FUSED1_N), lambda n: (0, 0)),
            pl.BlockSpec((1, FUSED1_N), lambda n: (0, 0)),
            pl.BlockSpec((K3, FUSED3_N), lambda n: (0, 0)),
            pl.BlockSpec((1, FUSED3_N), lambda n: (0, 0)),
        ],
        out_specs=pl.BlockSpec((3, bt, H, W, C_OUT),
                               lambda n: (0, n, 0, 0, 0)),
        scratch_shapes=[pltpu.VMEM((bt, H + 2, W + 2, C1_PAD), jnp.bfloat16)],
        compiler_params=pltpu.CompilerParams(
            dimension_semantics=("parallel",),
            vmem_limit_bytes=32 * 1024 * 1024),
    )(x, w1, b1, wf, bfv)

    # The concatenated result comes straight out of the kernel; this reshape is
    # free.  NOTE: self.padding (nn.ZeroPad2d) is never used in the original
    # forward, so it is intentionally not implemented.
    out = out5.reshape(3 * N, H, W, C_OUT)
    return jnp.transpose(out, (0, 3, 1, 2))                         # NCHW


# ------------------------------ pure-JAX reference -------------------------- #

def _ref_conv_relu(x, w, b):
    y = lax.conv_general_dilated(x, w, (1, 1), "SAME",
                                 dimension_numbers=("NHWC", "HWIO", "NHWC"))
    return jnp.maximum(y + b[None, None, None, :], 0.0)


def _ref_forward(params, x1_nchw):
    x = jnp.transpose(x1_nchw, (0, 2, 3, 1))
    x1 = _ref_conv_relu(x, params["conv2a_w"], params["conv2a_b"])
    x3 = _ref_conv_relu(x1, params["conv2d_w"], params["conv2d_b"])
    x1 = _ref_conv_relu(x1, params["conv2b_w"], params["conv2b_b"])
    x2 = lax.reduce_window(x, -jnp.inf, lax.max, (1, 3, 3, 1), (1, 1, 1, 1), "SAME")
    x2 = _ref_conv_relu(x2, params["conv2c_w"], params["conv2c_b"])
    x2 = jnp.pad(x2, ((0, 0), (0, 0), (0, 0), (72, 72)))
    x3 = jnp.pad(x3, ((0, 0), (0, 0), (0, 0), (40, 40)))
    x4 = jnp.concatenate([x1, x2, x3], axis=0)
    return jnp.transpose(x4, (0, 3, 1, 2))


# ---------------------------------- main ------------------------------------ #

if __name__ == "__main__":
    key = jax.random.PRNGKey(0)
    k_params, k_x = jax.random.split(key)

    # Small shapes consistent with the module: in_channels must be 64.
    N, C, H, W = 2, 64, 8, 8
    x1 = jax.random.normal(k_x, (N, C, H, W), jnp.float32)
    params = init_block2_params(k_params)

    out = jax.block_until_ready(jax.jit(block2_forward)(params, x1))
    assert out.shape == (3 * N, 208, H, W), out.shape

    ref = jax.block_until_ready(jax.jit(_ref_forward)(params, x1))
    max_err = float(jnp.max(jnp.abs(out - ref)))
    scale = float(jnp.max(jnp.abs(ref)))
    # bf16 matmul operands (f32 accumulation) => looser tolerance than pure f32.
    assert max_err <= 0.03 * scale + 0.02, f"mismatch: max_err={max_err}, scale={scale}"

    print("KERNEL_OK")
</pallas_src>

<mosaic_0001>
module attributes {stable_mosaic.version = 11 : i64} {
  func.func @_block2_fused_kernel(%arg0: i32, %arg1: memref<2x8x8x64xf32, #tpu.memory_space<vmem>>, %arg2: memref<128x336xbf16, #tpu.memory_space<vmem>>, %arg3: memref<1x336xf32, #tpu.memory_space<vmem>>, %arg4: memref<1152x464xbf16, #tpu.memory_space<vmem>>, %arg5: memref<1x464xf32, #tpu.memory_space<vmem>>, %arg6: memref<3x2x8x8x208xf32, #tpu.memory_space<vmem>>, %arg7: memref<2x10x10x128xbf16, #tpu.memory_space<vmem>>) attributes {dimension_semantics = [#tpu.dimension_semantics<parallel>], iteration_bounds = array<i64: 1>, scalar_prefetch = 0 : i64, scratch_operands = 1 : i64, tpu.core_type = #tpu.core_type<tc>, window_params = [{transform_indices = @transform_0, window_bounds = array<i64: 2, 8, 8, 64>}, {pipeline_mode = #tpu.pipeline_mode<synchronous>, transform_indices = @transform_1, window_bounds = array<i64: 128, 336>}, {pipeline_mode = #tpu.pipeline_mode<synchronous>, transform_indices = @transform_2, window_bounds = array<i64: 1, 336>}, {pipeline_mode = #tpu.pipeline_mode<synchronous>, transform_indices = @transform_3, window_bounds = array<i64: 1152, 464>}, {pipeline_mode = #tpu.pipeline_mode<synchronous>, transform_indices = @transform_4, window_bounds = array<i64: 1, 464>}, {transform_indices = @transform_5, window_bounds = array<i64: 3, 2, 8, 8, 208>}]} {
    %c0 = arith.constant 0 : index
    %c0_0 = arith.constant 0 : index
    %c0_1 = arith.constant 0 : index
    %c0_2 = arith.constant 0 : index
    %0 = vector.load %arg1[%c0, %c0_0, %c0_1, %c0_2] : memref<2x8x8x64xf32, #tpu.memory_space<vmem>>, vector<2x8x8x64xf32>
    %1 = arith.truncf %0 : vector<2x8x8x64xf32> to vector<2x8x8x64xbf16>
    %2 = vector.extract_strided_slice %1 {offsets = [0, 0, 0, 0], sizes = [2, 1, 8, 64], strides = [1, 1, 1, 1]} : vector<2x8x8x64xbf16> to vector<2x1x8x64xbf16>
    %3 = vector.extract_strided_slice %1 {offsets = [0, 0, 0, 0], sizes = [2, 7, 8, 64], strides = [1, 1, 1, 1]} : vector<2x8x8x64xbf16> to vector<2x7x8x64xbf16>
    %4 = tpu.concatenate %2, %3 in 1 : vector<2x1x8x64xbf16>, vector<2x7x8x64xbf16> -> vector<2x8x8x64xbf16>
    %5 = vector.extract_strided_slice %1 {offsets = [0, 1, 0, 0], sizes = [2, 7, 8, 64], strides = [1, 1, 1, 1]} : vector<2x8x8x64xbf16> to vector<2x7x8x64xbf16>
    %6 = vector.extract_strided_slice %1 {offsets = [0, 7, 0, 0], sizes = [2, 1, 8, 64], strides = [1, 1, 1, 1]} : vector<2x8x8x64xbf16> to vector<2x1x8x64xbf16>
    %7 = tpu.concatenate %5, %6 in 1 : vector<2x7x8x64xbf16>, vector<2x1x8x64xbf16> -> vector<2x8x8x64xbf16>
    %8 = arith.maximumf %1, %4 : vector<2x8x8x64xbf16>
    %9 = arith.maximumf %8, %7 : vector<2x8x8x64xbf16>
    %10 = vector.extract_strided_slice %9 {offsets = [0, 0, 0, 0], sizes = [2, 8, 1, 64], strides = [1, 1, 1, 1]} : vector<2x8x8x64xbf16> to vector<2x8x1x64xbf16>
    %11 = vector.extract_strided_slice %9 {offsets = [0, 0, 0, 0], sizes = [2, 8, 7, 64], strides = [1, 1, 1, 1]} : vector<2x8x8x64xbf16> to vector<2x8x7x64xbf16>
    %12 = tpu.concatenate %10, %11 in 2 : vector<2x8x1x64xbf16>, vector<2x8x7x64xbf16> -> vector<2x8x8x64xbf16>
    %13 = vector.extract_strided_slice %9 {offsets = [0, 0, 1, 0], sizes = [2, 8, 7, 64], strides = [1, 1, 1, 1]} : vector<2x8x8x64xbf16> to vector<2x8x7x64xbf16>
    %14 = vector.extract_strided_slice %9 {offsets = [0, 0, 7, 0], sizes = [2, 8, 1, 64], strides = [1, 1, 1, 1]} : vector<2x8x8x64xbf16> to vector<2x8x1x64xbf16>
    %15 = tpu.concatenate %13, %14 in 2 : vector<2x8x7x64xbf16>, vector<2x8x1x64xbf16> -> vector<2x8x8x64xbf16>
    %16 = arith.maximumf %9, %12 : vector<2x8x8x64xbf16>
    %17 = arith.maximumf %16, %15 : vector<2x8x8x64xbf16>
    %18 = tpu.concatenate %1, %17 in 3 : vector<2x8x8x64xbf16>, vector<2x8x8x64xbf16> -> vector<2x8x8x128xbf16>
    %19 = vector.shape_cast %18 : vector<2x8x8x128xbf16> to vector<128x128xbf16>
    %c0_3 = arith.constant 0 : index
    %c0_4 = arith.constant 0 : index
    %20 = vector.load %arg2[%c0_3, %c0_4] : memref<128x336xbf16, #tpu.memory_space<vmem>>, vector<128x336xbf16>
    %cst = arith.constant dense<0.000000e+00> : vector<128x336xf32>
    %21 = tpu.matmul %19, %20, %cst {dimension_numbers = #tpu.dot_dimension_numbers<[1], [0], [0], [1], [0, 0, 1, 1], [], []>} : vector<128x128xbf16>, vector<128x336xbf16>, vector<128x336xf32> -> vector<128x336xf32>
    %c0_5 = arith.constant 0 : index
    %c0_6 = arith.constant 0 : index
    %22 = vector.load %arg3[%c0_5, %c0_6] : memref<1x336xf32, #tpu.memory_space<vmem>>, vector<1x336xf32>
    %23 = vector.broadcast %22 : vector<1x336xf32> to vector<128x336xf32>
    %24 = arith.addf %21, %23 : vector<128x336xf32>
    %cst_7 = arith.constant 0.000000e+00 : f32
    %25 = vector.broadcast %cst_7 : f32 to vector<128x336xf32>
    %26 = arith.maximumf %24, %25 : vector<128x336xf32>
    %27 = vector.extract_strided_slice %26 {offsets = [0, 128], sizes = [128, 208], strides = [1, 1]} : vector<128x336xf32> to vector<128x208xf32>
    %28 = vector.shape_cast %27 : vector<128x208xf32> to vector<2x8x8x208xf32>
    %c1 = arith.constant 1 : index
    %c0_8 = arith.constant 0 : index
    %c0_9 = arith.constant 0 : index
    %c0_10 = arith.constant 0 : index
    %c0_11 = arith.constant 0 : index
    %29 = vector.load %arg6[%c1, %c0_8, %c0_9, %c0_10, %c0_11] : memref<3x2x8x8x208xf32, #tpu.memory_space<vmem>>, vector<1x2x8x8x208xf32>
    %30 = vector.shape_cast %29 : vector<1x2x8x8x208xf32> to vector<2x8x8x208xf32>
    %31 = vector.shape_cast %28 : vector<2x8x8x208xf32> to vector<1x2x8x8x208xf32>
    tpu.vector_store %arg6[%c1, %c0_8, %c0_9, %c0_10, %c0_11], %31 {strides = array<i32>} : memref<3x2x8x8x208xf32, #tpu.memory_space<vmem>>, vector<1x2x8x8x208xf32>,
    %32 = vector.extract_strided_slice %26 {offsets = [0, 0], sizes = [128, 128], strides = [1, 1]} : vector<128x336xf32> to vector<128x128xf32>
    %33 = vector.shape_cast %32 : vector<128x128xf32> to vector<2x8x8x128xf32>
    %34 = arith.truncf %33 : vector<2x8x8x128xf32> to vector<2x8x8x128xbf16>
    %cst_12 = arith.constant 0.000000e+00 : bf16
    %35 = vector.broadcast %cst_12 : bf16 to vector<2x8x1x128xbf16>
    %cst_13 = arith.constant 0.000000e+00 : bf16
    %36 = vector.broadcast %cst_13 : bf16 to vector<2x1x10x128xbf16>
    %37 = tpu.concatenate %35, %34, %35 in 2 : vector<2x8x1x128xbf16>, vector<2x8x8x128xbf16>, vector<2x8x1x128xbf16> -> vector<2x8x10x128xbf16>
    %38 = tpu.concatenate %36, %37, %36 in 1 : vector<2x1x10x128xbf16>, vector<2x8x10x128xbf16>, vector<2x1x10x128xbf16> -> vector<2x10x10x128xbf16>
    %c0_14 = arith.constant 0 : index
    %c0_15 = arith.constant 0 : index
    %c0_16 = arith.constant 0 : index
    %c0_17 = arith.constant 0 : index
    %39 = vector.load %arg7[%c0_14, %c0_15, %c0_16, %c0_17] : memref<2x10x10x128xbf16, #tpu.memory_space<vmem>>, vector<2x10x10x128xbf16>
    tpu.vector_store %arg7[%c0_14, %c0_15, %c0_16, %c0_17], %38 {strides = array<i32>} : memref<2x10x10x128xbf16, #tpu.memory_space<vmem>>, vector<2x10x10x128xbf16>,
    %c0_18 = arith.constant 0 : index
    %c0_19 = arith.constant 0 : index
    %c0_20 = arith.constant 0 : index
    %c0_21 = arith.constant 0 : index
    %40 = vector.load %arg7[%c0_18, %c0_19, %c0_20, %c0_21] : memref<2x10x10x128xbf16, #tpu.memory_space<vmem>>, vector<2x8x8x128xbf16>
    %c0_22 = arith.constant 0 : index
    %c0_23 = arith.constant 0 : index
    %c1_24 = arith.constant 1 : index
    %c0_25 = arith.constant 0 : index
    %41 = vector.load %arg7[%c0_22, %c0_23, %c1_24, %c0_25] : memref<2x10x10x128xbf16, #tpu.memory_space<vmem>>, vector<2x8x8x128xbf16>
    %c0_26 = arith.constant 0 : index
    %c0_27 = arith.constant 0 : index
    %c2 = arith.constant 2 : index
    %c0_28 = arith.constant 0 : index
    %42 = vector.load %arg7[%c0_26, %c0_27, %c2, %c0_28] : memref<2x10x10x128xbf16, #tpu.memory_space<vmem>>, vector<2x8x8x128xbf16>
    %c0_29 = arith.constant 0 : index
    %c1_30 = arith.constant 1 : index
    %c0_31 = arith.constant 0 : index
    %c0_32 = arith.constant 0 : index
    %43 = vector.load %arg7[%c0_29, %c1_30, %c0_31, %c0_32] : memref<2x10x10x128xbf16, #tpu.memory_space<vmem>>, vector<2x8x8x128xbf16>
    %c0_33 = arith.constant 0 : index
    %c1_34 = arith.constant 1 : index
    %c1_35 = arith.constant 1 : index
    %c0_36 = arith.constant 0 : index
    %44 = vector.load %arg7[%c0_33, %c1_34, %c1_35, %c0_36] : memref<2x10x10x128xbf16, #tpu.memory_space<vmem>>, vector<2x8x8x128xbf16>
    %c0_37 = arith.constant 0 : index
    %c1_38 = arith.constant 1 : index
    %c2_39 = arith.constant 2 : index
    %c0_40 = arith.constant 0 : index
    %45 = vector.load %arg7[%c0_37, %c1_38, %c2_39, %c0_40] : memref<2x10x10x128xbf16, #tpu.memory_space<vmem>>, vector<2x8x8x128xbf16>
    %c0_41 = arith.constant 0 : index
    %c2_42 = arith.constant 2 : index
    %c0_43 = arith.constant 0 : index
    %c0_44 = arith.constant 0 : index
    %46 = vector.load %arg7[%c0_41, %c2_42, %c0_43, %c0_44] : memref<2x10x10x128xbf16, #tpu.memory_space<vmem>>, vector<2x8x8x128xbf16>
    %c0_45 = arith.constant 0 : index
    %c2_46 = arith.constant 2 : index
    %c1_47 = arith.constant 1 : index
    %c0_48 = arith.constant 0 : index
    %47 = vector.load %arg7[%c0_45, %c2_46, %c1_47, %c0_48] : memref<2x10x10x128xbf16, #tpu.memory_space<vmem>>, vector<2x8x8x128xbf16>
    %c0_49 = arith.constant 0 : index
    %c2_50 = arith.constant 2 : index
    %c2_51 = arith.constant 2 : index
    %c0_52 = arith.constant 0 : index
    %48 = vector.load %arg7[%c0_49, %c2_50, %c2_51, %c0_52] : memref<2x10x10x128xbf16, #tpu.memory_space<vmem>>, vector<2x8x8x128xbf16>
    %49 = tpu.concatenate %40, %41, %42, %43, %44, %45, %46, %47, %48 in 3 : vector<2x8x8x128xbf16>, vector<2x8x8x128xbf16>, vector<2x8x8x128xbf16>, vector<2x8x8x128xbf16>, vector<2x8x8x128xbf16>, vector<2x8x8x128xbf16>, vector<2x8x8x128xbf16>, vector<2x8x8x128xbf16>, vector<2x8x8x128xbf16> -> vector<2x8x8x1152xbf16>
    %50 = vector.shape_cast %49 : vector<2x8x8x1152xbf16> to vector<128x1152xbf16>
    %c0_53 = arith.constant 0 : index
    %c0_54 = arith.constant 0 : index
    %51 = vector.load %arg4[%c0_53, %c0_54] : memref<1152x464xbf16, #tpu.memory_space<vmem>>, vector<1152x464xbf16>
    %cst_55 = arith.constant dense<0.000000e+00> : vector<128x464xf32>
    %52 = tpu.matmul %50, %51, %cst_55 {dimension_numbers = #tpu.dot_dimension_numbers<[1], [0], [0], [1], [0, 0, 1, 1], [], []>} : vector<128x1152xbf16>, vector<1152x464xbf16>, vector<128x464xf32> -> vector<128x464xf32>
    %c0_56 = arith.constant 0 : index
    %c0_57 = arith.constant 0 : index
    %53 = vector.load %arg5[%c0_56, %c0_57] : memref<1x464xf32, #tpu.memory_space<vmem>>, vector<1x464xf32>
    %54 = vector.broadcast %53 : vector<1x464xf32> to vector<128x464xf32>
    %55 = arith.addf %52, %54 : vector<128x464xf32>
    %cst_58 = arith.constant 0.000000e+00 : f32
    %56 = vector.broadcast %cst_58 : f32 to vector<128x464xf32>
    %57 = arith.maximumf %55, %56 : vector<128x464xf32>
    %58 = vector.extract_strided_slice %57 {offsets = [0, 0], sizes = [128, 208], strides = [1, 1]} : vector<128x464xf32> to vector<128x208xf32>
    %59 = vector.shape_cast %58 : vector<128x208xf32> to vector<2x8x8x208xf32>
    %c0_59 = arith.constant 0 : index
    %c0_60 = arith.constant 0 : index
    %c0_61 = arith.constant 0 : index
    %c0_62 = arith.constant 0 : index
    %c0_63 = arith.constant 0 : index
    %60 = vector.load %arg6[%c0_59, %c0_60, %c0_61, %c0_62, %c0_63] : memref<3x2x8x8x208xf32, #tpu.memory_space<vmem>>, vector<1x2x8x8x208xf32>
    %61 = vector.shape_cast %60 : vector<1x2x8x8x208xf32> to vector<2x8x8x208xf32>
    %62 = vector.shape_cast %59 : vector<2x8x8x208xf32> to vector<1x2x8x8x208xf32>
    tpu.vector_store %arg6[%c0_59, %c0_60, %c0_61, %c0_62, %c0_63], %62 {strides = array<i32>} : memref<3x2x8x8x208xf32, #tpu.memory_space<vmem>>, vector<1x2x8x8x208xf32>,
    %63 = vector.extract_strided_slice %57 {offsets = [0, 256], sizes = [128, 208], strides = [1, 1]} : vector<128x464xf32> to vector<128x208xf32>
    %64 = vector.shape_cast %63 : vector<128x208xf32> to vector<2x8x8x208xf32>
    %c2_64 = arith.constant 2 : index
    %c0_65 = arith.constant 0 : index
    %c0_66 = arith.constant 0 : index
    %c0_67 = arith.constant 0 : index
    %c0_68 = arith.constant 0 : index
    %65 = vector.load %arg6[%c2_64, %c0_65, %c0_66, %c0_67, %c0_68] : memref<3x2x8x8x208xf32, #tpu.memory_space<vmem>>, vector<1x2x8x8x208xf32>
    %66 = vector.shape_cast %65 : vector<1x2x8x8x208xf32> to vector<2x8x8x208xf32>
    %67 = vector.shape_cast %64 : vector<2x8x8x208xf32> to vector<1x2x8x8x208xf32>
    tpu.vector_store %arg6[%c2_64, %c0_65, %c0_66, %c0_67, %c0_68], %67 {strides = array<i32>} : memref<3x2x8x8x208xf32, #tpu.memory_space<vmem>>, vector<1x2x8x8x208xf32>,
    return
  }
  func.func @transform_0(%arg0: i32) -> (i32, i32, i32, i32) {
    %c0_i32 = arith.constant 0 : i32
    %c0_i32_0 = arith.constant 0 : i32
    %c0_i32_1 = arith.constant 0 : i32
    %c0_i32_2 = arith.constant 0 : i32
    return %arg0, %c0_i32, %c0_i32_0, %c0_i32_1 : i32, i32, i32, i32
  }
  func.func @transform_1(%arg0: i32) -> (i32, i32) {
    %c0_i32 = arith.constant 0 : i32
    %c0_i32_0 = arith.constant 0 : i32
    %c0_i32_1 = arith.constant 0 : i32
    return %c0_i32, %c0_i32_0 : i32, i32
  }
  func.func @transform_2(%arg0: i32) -> (i32, i32) {
    %c0_i32 = arith.constant 0 : i32
    %c0_i32_0 = arith.constant 0 : i32
    %c0_i32_1 = arith.constant 0 : i32
    return %c0_i32, %c0_i32_0 : i32, i32
  }
  func.func @transform_3(%arg0: i32) -> (i32, i32) {
    %c0_i32 = arith.constant 0 : i32
    %c0_i32_0 = arith.constant 0 : i32
    %c0_i32_1 = arith.constant 0 : i32
    return %c0_i32, %c0_i32_0 : i32, i32
  }
  func.func @transform_4(%arg0: i32) -> (i32, i32) {
    %c0_i32 = arith.constant 0 : i32
    %c0_i32_0 = arith.constant 0 : i32
    %c0_i32_1 = arith.constant 0 : i32
    return %c0_i32, %c0_i32_0 : i32, i32
  }
  func.func @transform_5(%arg0: i32) -> (i32, i32, i32, i32, i32) {
    %c0_i32 = arith.constant 0 : i32
    %c0_i32_0 = arith.constant 0 : i32
    %c0_i32_1 = arith.constant 0 : i32
    %c0_i32_2 = arith.constant 0 : i32
    %c0_i32_3 = arith.constant 0 : i32
    return %c0_i32, %arg0, %c0_i32_0, %c0_i32_1, %c0_i32_2 : i32, i32, i32, i32, i32
  }
}

</mosaic_0001>

<bundles_post_ra>
// kernel: block2_forward.1
= control target key start
LH: loop header
LB: loop body
LE: loop exit
PB: predicated region body
PF: predicated region fallthrough
CT: control target
= control target key end

     0   :  { %vm210_vm0 = vcmask 1040384   ;;  %vm211_vm1 = vsmask.f32 256  ;;  %vm277_vm2 = vcmask 1043456   ;;  %vm278_vm3 = vsmask.f32 3328  ;;  %s9080_s0 = inlined_call_operand.vmem [shape: f32[2,8,8,64], index: 0, kind: input, shape index: {}]   ;;  %s9081_s1 = inlined_call_operand.vmem [shape: bf16[128,336], index: 1, kind: input, shape index: {}]   ;;  %s9082_s2 = inlined_call_operand.vmem [shape: f32[1,336], index: 2, kind: input, shape index: {}]   ;;  %s9083_s3 = inlined_call_operand.vmem [shape: bf16[1152,464], index: 3, kind: input, shape index: {}]   ;;  %s9084_s4 = inlined_call_operand.vmem [shape: f32[1,464], index: 4, kind: input, shape index: {}]   ;;  %s9085_s5 = inlined_call_operand.hbm [shape: f32[3,2,8,8,208], index: 5, kind: output, shape index: {}]  }
   0x1   :  { %v22_v0 = vld [vmem:[%s9080_s0] sm:$0xff]  ;;  %v23_v1 = vld [vmem:[%s9080_s0 + $0x8] sm:$0xff]  ;;  %v24_v4 = vld [vmem:[%s9080_s0 + $0x10] sm:$0xff]  ;;  %s6965_s27 = smov 64   ;;  %vm376_vm6 = vcmask 523264  }
   0x2   :  { %v7006_v2 = vpack.c.bf16 %v22_v0, %v22_v0  ;;  %v7008_v3 = vpack.c.bf16 %v23_v1, %v23_v1  ;;  %v25_v5 = vld [vmem:[%s9080_s0 + $0x18] sm:$0xff]  ;;  %v7016_v6 = vpack.c.bf16 %v24_v4, %v24_v4  ;;  %v26_v8 = vld [vmem:[%s9080_s0 + $0x20] sm:$0xff]  ;;  %v27_v9 = vld [vmem:[%s9080_s0 + $0x28] sm:$0xff] }
   0x3   :  { %v7018_v7 = vpack.c.bf16 %v25_v5, %v25_v5  ;;  %v7028_v11 = vpack.c.bf16 %v26_v8, %v26_v8  ;;  %v28_v12 = vld [vmem:[%s9080_s0 + $0x30] sm:$0xff]  ;;  %v7033_v13 = vpack.c.bf16 %v27_v9, %v27_v9  ;;  %v29_v14 = vld [vmem:[%s9080_s0 + $0x38] sm:$0xff]  ;;  %vm7063_vm4 = vmand %vm210_vm0, %vm211_vm1 }
   0x4   :  { %v54_v10 = vmax.bf16 %v7008_v3, %v7006_v2  ;;  %v55_v15 = vmax.bf16 %v7016_v6, %v7008_v3  ;;  %v7042_v17 = vpack.c.bf16 %v28_v12, %v28_v12  ;;  %v7044_v18 = vpack.c.bf16 %v29_v14, %v29_v14  ;;  %v6354_v32 = vld [vmem:[%s9081_s1 + $0x4] ss:$12 sps:$4 sm:$0xff]   ;;  %vm7074_vm5 = vmand %vm277_vm2, %vm278_vm3  ;;  %v6356_v38 = vld [vmem:[%s9081_s1] ss:$12 sps:$4 sm:$0xff]  }
   0x5   :  { %v56_v16 = vmax.bf16 %v7018_v7, %v7016_v6  ;;  %v58_v22 = vmax.bf16 %v7033_v13, %v7028_v11  ;;  %v57_v25 = vmax.bf16 %v7028_v11, %v7018_v7  ;;  %650 = vmatprep.subr.bf16.mxu0 %v6354_v32  ;;  %v6357_v47 = vld [vmem:[%s9081_s1 + $0x8] ss:$12 sps:$4 sm:$0xff]   ;;  %v6360_v57 = vld [vmem:[%s9081_s1 + $0x18] ss:$12 sps:$4 sm:$0xff]   ;;  %v6361_v62 = vld [vmem:[%s9081_s1 + $0x20] ss:$12 sps:$4 sm:$0xff]  }
   0x6   :  { %v83_v19 = vshrl.u32 %v54_v10, 16  ;;  %v86_v20 = vshll.u32 %v54_v10, 16  ;;  %v7047_v21 = vmax.bf16 %v54_v10, %v7016_v6  ;;  %v7052_v23 = vmax.bf16 %v55_v15, %v7018_v7  ;;  %651 = vmatpush1.bf16.msra.mxu0 %v6356_v38  ;;  %v6358_v52 = vld [vmem:[%s9081_s1 + $0x1c] ss:$12 sps:$4 sm:$0xff]   ;;  %5997 = vmatprep.subr.bf16.mxu1 %v6357_v47  ;;  %v6362_v5 = vld [vmem:[%s9081_s1 + $0x34] ss:$12 sps:$4 sm:$0xff]  }
   0x7   :  { %v7055_v24 = vmax.bf16 %v56_v16, %v7028_v11  ;;  %v60_v26 = vmax.bf16 %v7044_v18, %v7042_v17  ;;  %v7105_v61 = vmax.bf16 %v58_v22, %v7042_v17  ;;  %5998 = vmatpush3.bf16.msra.mxu1 %v6357_v47  ;;  %652 = vmatprep.subr.bf16.mxu0 %v6358_v52  ;;  %v6364_v8 = vld [vmem:[%s9081_s1 + $0x30] ss:$12 sps:$4 sm:$0xff]   ;;  %v6365_v15 = vld [vmem:[%s9081_s1 + $0x38] ss:$12 sps:$4 sm:$0xff]  }
   0x8   :  { %v85_v27 = vrot.slane %v83_v19, 7  ;;  %v229_v29 = vrot.slane %v86_v20, 1  ;;  %v90_v30 = vshrl.u32 %v7047_v21, 16  ;;  %v93_v31 = vshll.u32 %v7047_v21, 16  ;;  %5999 = vmatprep.subr.bf16.mxu1 %v6361_v62  ;;  %v30_v22 = vld [vmem:[%s9080_s0 + $0x40] sm:$0xff] }
   0x9   :  { %v97_v34 = vshrl.u32 %v7052_v23, 16  ;;  %v100_v35 = vshll.u32 %v7052_v23, 16  ;;  %v104_v36 = vshrl.u32 %v7055_v24, 16  ;;  %v107_v37 = vshll.u32 %v7055_v24, 16 }
   0xa   :  { %v88_v39 = vor.u32 %v86_v20, %v85_v27  ;;  %v230_v40 = vor.u32 %v229_v29, %v83_v19  ;;  %v92_v41 = vrot.slane %v90_v30, 7  ;;  %v231_v42 = vrot.slane %v93_v31, 1  ;;  %653 = vmatpush1.bf16.msra.mxu0 %v6360_v57  ;;  %v6373_v57 = vld [vmem:[%s9081_s1 + $0x68] ss:$12 sps:$4 sm:$0xff]  }
   0xb   :  { %v99_v43 = vrot.slane %v97_v34, 7  ;;  %v233_v44 = vrot.slane %v100_v35, 1  ;;  %v106_v45 = vrot.slane %v104_v36, 7  ;;  %v235_v46 = vrot.slane %v107_v37, 1  ;;  %654 = vmatprep.subr.bf16.mxu0 %v6362_v5  ;;  %6000 = vmatpush3.bf16.msra.mxu1 %v6361_v62 }
   0xc   :  { %v213_v48 = vsel %vm7063_vm4, %v54_v10, %v88_v39  ;;  %v280_v49 = vsel %vm7074_vm5, %v230_v40, %v54_v10  ;;  %v95_v50 = vor.u32 %v93_v31, %v92_v41  ;;  %v232_v51 = vor.u32 %v231_v42, %v90_v30  ;;  %6001 = vmatprep.subr.bf16.mxu1 %v6365_v15  ;;  %v6368_v39 = vld [vmem:[%s9081_s1 + $0x48] ss:$12 sps:$4 sm:$0xff]   ;;  %v6370_v40 = vld [vmem:[%s9081_s1 + $0x64] ss:$12 sps:$4 sm:$0xff]  }
   0xd   :  { %v296_v53 = vmax.bf16 %v213_v48, %v54_v10  ;;  %v102_v54 = vor.u32 %v100_v35, %v99_v43  ;;  %v234_v55 = vor.u32 %v233_v44, %v97_v34  ;;  %v109_v56 = vor.u32 %v107_v37, %v106_v45  ;;  %v6369_v35 = vld [vmem:[%s9081_s1 + $0x50] ss:$12 sps:$4 sm:$0xff]  }
   0xe   :  { %v214_v58 = vsel %vm7063_vm4, %v7047_v21, %v95_v50  ;;  %v281_v59 = vsel %vm7074_vm5, %v232_v51, %v7047_v21  ;;  %v236_v60 = vor.u32 %v235_v46, %v104_v36  ;;  %v118_v14 = vshrl.u32 %v7105_v61, 16  ;;  %655 = vmatpush1.bf16.msra.mxu0 %v6364_v8  ;;  %v32_v50 = vld [vmem:[%s9080_s0 + $0x50] sm:$0xff] }
   0xf   :  { %v312_v63 = vmax.bf16 %v296_v53, %v280_v49  ;;  %v215_v0 = vsel %vm7063_vm4, %v7052_v23, %v102_v54  ;;  %v282_v1 = vsel %vm7074_vm5, %v234_v55, %v7052_v23  ;;  %v297_v4 = vmax.bf16 %v214_v58, %v7047_v21  ;;  %v31_v49 = vld [vmem:[%s9080_s0 + $0x48] sm:$0xff]  ;;  %6002 = vmatpush3.bf16.msra.mxu1 %v6365_v15  ;;  %v33_v55 = vld [vmem:[%s9080_s0 + $0x58] sm:$0xff] }
  0x10   :  { %v298_v9 = vmax.bf16 %v215_v0, %v7052_v23  ;;  %v216_v10 = vsel %vm7063_vm4, %v7055_v24, %v109_v56  ;;  %v283_v12 = vsel %vm7074_vm5, %v236_v60, %v7055_v24  ;;  %v121_v20 = vshll.u32 %v7105_v61, 16  ;;  %v6366_v23 = vld [vmem:[%s9081_s1 + $0x4c] ss:$12 sps:$4 sm:$0xff]   ;;  %v34_v56 = vld [vmem:[%s9080_s0 + $0x60] sm:$0xff]  ;;  %6003 = vmatprep.subr.bf16.mxu1 %v6369_v35 }
  0x11   :  { %344 = vrot.lane.b32.xlu0 %v312_v63, %s6965_s27  ;;  %v313_v16 = vmax.bf16 %v297_v4, %v281_v59  ;;  %v299_v19 = vmax.bf16 %v216_v10, %v7055_v24  ;;  %v7138_v21 = vmax.bf16 %v57_v25, %v7033_v13  ;;  %v120_v29 = vrot.slane %v118_v14, 7  ;;  %656 = vmatprep.subr.bf16.mxu0 %v6366_v23  ;;  %v6372_v4 = vld [vmem:[%s9081_s1 + $0x60] ss:$12 sps:$4 sm:$0xff]  }
  0x12   :  { %v314_v27 = vmax.bf16 %v298_v9, %v282_v1  ;;  %v7150_v24 = vmax.bf16 %v60_v26, %v7044_v18  ;;  %v59_v25 = vmax.bf16 %v7042_v17, %v7033_v13  ;;  %v239_v31 = vrot.slane %v121_v20, 1  ;;  %657 = vmatpush1.bf16.msra.mxu0 %v6368_v39 }
  0x13   :  { %v315_v30 = vmax.bf16 %v299_v19, %v283_v12  ;;  %v111_v32 = vshrl.u32 %v7138_v21, 16  ;;  %v114_v34 = vshll.u32 %v7138_v21, 16  ;;  %v123_v36 = vor.u32 %v121_v20, %v120_v29  ;;  %658 = vmatprep.subr.bf16.mxu0 %v6370_v40  ;;  %v35_v12 = vld [vmem:[%s9080_s0 + $0x68] sm:$0xff]  ;;  %6004 = vmatpush3.bf16.msra.mxu1 %v6369_v35  ;;  %v6378_v35 = vld [vmem:[%s9081_s1 + $0x94] ss:$12 sps:$4 sm:$0xff]  }
  0x14   :  { %348 = vrot.lane.b32.xlu1 %v314_v27, %s6965_s27  ;;  %v132_v26 = vshrl.u32 %v7150_v24, 16  ;;  %v135_v37 = vshll.u32 %v7150_v24, 16  ;;  %v7163_v38 = vmax.bf16 %v59_v25, %v7044_v18  ;;  %v240_v41 = vor.u32 %v239_v31, %v118_v14  ;;  %v6374_v14 = vld [vmem:[%s9081_s1 + $0x7c] ss:$12 sps:$4 sm:$0xff]   ;;  %6005 = vmatprep.subr.bf16.mxu1 %v6373_v57  ;;  %v6376_v25 = vld [vmem:[%s9081_s1 + $0x78] ss:$12 sps:$4 sm:$0xff]  }
  0x15   :  { %346 = vrot.lane.b32.xlu0 %v313_v16, %s6965_s27  ;;  %v113_v42 = vrot.slane %v111_v32, 7  ;;  %v237_v43 = vrot.slane %v114_v34, 1  ;;  %v7172_v44 = vpack.c.bf16 %v30_v22, %v30_v22  ;;  %v218_v45 = vsel %vm7063_vm4, %v7105_v61, %v123_v36  ;;  %v6381_v36 = vld [vmem:[%s9081_s1 + $0x98] ss:$12 sps:$4 sm:$0xff]  }
  0x16   :  { %v134_v46 = vrot.slane %v132_v26, 7  ;;  %v243_v47 = vrot.slane %v135_v37, 1  ;;  %v125_v48 = vshrl.u32 %v7163_v38, 16  ;;  %v285_v51 = vsel %vm7074_vm5, %v240_v41, %v7105_v61  ;;  %659 = vmatpush1.bf16.msra.mxu0 %v6372_v4 }
  0x17   :  { %v301_v52 = vmax.bf16 %v218_v45, %v7105_v61  ;;  %v116_v53 = vor.u32 %v114_v34, %v113_v42  ;;  %v238_v54 = vor.u32 %v237_v43, %v111_v32  ;;  %v128_v61 = vshll.u32 %v7163_v38, 16  ;;  %6006 = vmatpush3.bf16.msra.mxu1 %v6373_v57  ;;  %660 = vmatprep.subr.bf16.mxu0 %v6374_v14 }
  0x18   :  { %350 = vrot.lane.b32.xlu1 %v315_v30, %s6965_s27  ;;  %v137_v58 = vor.u32 %v135_v37, %v134_v46  ;;  %v244_v59 = vor.u32 %v243_v47, %v132_v26  ;;  %v127_v60 = vrot.slane %v125_v48, 7  ;;  %v7205_v1 = vpack.c.bf16 %v31_v49, %v31_v49  ;;  %v6380_v46 = vld [vmem:[%s9081_s1 + $0x90] ss:$12 sps:$4 sm:$0xff]  }
  0x19   :  { %v317_v62 = vmax.bf16 %v301_v52, %v285_v51  ;;  %v217_v63 = vsel %vm7063_vm4, %v7138_v21, %v116_v53  ;;  %v284_v0 = vsel %vm7074_vm5, %v238_v54, %v7138_v21  ;;  %v241_v16 = vrot.slane %v128_v61, 1 }
  0x1a   :  { %v300_v5 = vmax.bf16 %v217_v63, %v7138_v21  ;;  %v220_v8 = vsel %vm7063_vm4, %v7150_v24, %v137_v58  ;;  %v287_v9 = vsel %vm7074_vm5, %v244_v59, %v7150_v24  ;;  %v130_v10 = vor.u32 %v128_v61, %v127_v60  ;;  %v6377_v21 = vld [vmem:[%s9081_s1 + $0x80] ss:$12 sps:$4 sm:$0xff]   ;;  %661 = vmatpush1.bf16.msra.mxu0 %v6376_v25 }
  0x1b   :  { %v303_v15 = vmax.bf16 %v220_v8, %v7150_v24  ;;  %v7224_v19 = vpack.c.bf16 %v32_v50, %v32_v50  ;;  %v7228_v20 = vmax.bf16 %v7205_v1, %v7172_v44  ;;  %v7237_v27 = vpack.c.bf16 %v33_v55, %v33_v55  ;;  %v36_v24 = vld [vmem:[%s9080_s0 + $0x70] sm:$0xff]  ;;  %6007 = vmatprep.subr.bf16.mxu1 %v6377_v21 }
  0x1c   :  { %354 = vrot.lane.b32.xlu1 %v317_v62, %s6965_s27  ;;  %v316_v22 = vmax.bf16 %v300_v5, %v284_v0  ;;  %v219_v23 = vsel %vm7063_vm4, %v7163_v38, %v130_v10  ;;  %v7239_v29 = vpack.c.bf16 %v34_v56, %v34_v56  ;;  %v242_v31 = vor.u32 %v241_v16, %v125_v48  ;;  %v6385_v55 = vld [vmem:[%s9081_s1 + $0xb0] ss:$12 sps:$4 sm:$0xff]   ;;  %v6384_v16 = vld [vmem:[%s9081_s1 + $0xa8] ss:$12 sps:$4 sm:$0xff]  }
  0x1d   :  { %v319_v30 = vmax.bf16 %v303_v15, %v287_v9  ;;  %v302_v32 = vmax.bf16 %v219_v23, %v7163_v38  ;;  %v7250_v34 = vmax.bf16 %v7228_v20, %v7224_v19  ;;  %v139_v26 = vshrl.u32 %v7228_v20, 16  ;;  %6008 = vmatpush3.bf16.msra.mxu1 %v6377_v21  ;;  %662 = vmatprep.subr.bf16.mxu0 %v6378_v35  ;;  %v37_v15 = vld [vmem:[%s9080_s0 + $0x78] sm:$0xff] }
  0x1e   :  { %352 = vrot.lane.b32.xlu0 %v316_v22, %s6965_s27  ;;  %v142_v37 = vshll.u32 %v7228_v20, 16  ;;  %v63_v39 = vmax.bf16 %v7237_v27, %v7224_v19  ;;  %v62_v40 = vmax.bf16 %v7224_v19, %v7205_v1  ;;  %v286_v41 = vsel %vm7074_vm5, %v242_v31, %v7163_v38  ;;  %v6382_v38 = vld [vmem:[%s9081_s1 + $0xac] ss:$12 sps:$4 sm:$0xff]   ;;  %6009 = vmatprep.subr.bf16.mxu1 %v6381_v36 }
  0x1f   :  { %v146_v42 = vshrl.u32 %v7250_v34, 16  ;;  %v149_v43 = vshll.u32 %v7250_v34, 16  ;;  %v7270_v45 = vpack.c.bf16 %v35_v12, %v35_v12  ;;  %v318_v47 = vmax.bf16 %v302_v32, %v286_v41  ;;  %663 = vmatpush1.bf16.msra.mxu0 %v6380_v46 }
  0x20   :  { %358 = vrot.lane.b32.xlu1 %v319_v30, %s6965_s27  ;;  %v141_v48 = vrot.slane %v139_v26, 7  ;;  %v245_v49 = vrot.slane %v142_v37, 1  ;;  %v77_v50 = vmax.bf16 %v63_v39, %v7239_v29  ;;  %v76_v53 = vmax.bf16 %v62_v40, %v7237_v27  ;;  %664 = vmatprep.subr.bf16.mxu0 %v6382_v38 }
  0x21   :  { %v148_v51 = vrot.slane %v146_v42, 7  ;;  %v247_v52 = vrot.slane %v149_v43, 1  ;;  %v7281_v54 = vpack.c.bf16 %v36_v24, %v36_v24  ;;  %6010 = vmatpush3.bf16.msra.mxu1 %v6381_v36  ;;  %v64_v31 = vmax.bf16 %v7239_v29, %v7237_v27 }
  0x22   :  { %356 = vrot.lane.b32.xlu0 %v318_v47, %s6965_s27  ;;  %v144_v56 = vor.u32 %v142_v37, %v141_v48  ;;  %v246_v57 = vor.u32 %v245_v49, %v139_v26  ;;  %v160_v58 = vshrl.u32 %v77_v50, 16  ;;  %v163_v59 = vshll.u32 %v77_v50, 16  ;;  %6011 = vmatprep.subr.bf16.mxu1 %v6385_v55 }
  0x23   :  { %v151_v60 = vor.u32 %v149_v43, %v148_v51  ;;  %v248_v61 = vor.u32 %v247_v52, %v146_v42  ;;  %v153_v62 = vshrl.u32 %v76_v53, 16  ;;  %v156_v63 = vshll.u32 %v76_v53, 16  ;;  %665 = vmatpush1.bf16.msra.mxu0 %v6384_v16 }
  0x24   :  { %v221_v0 = vsel %vm7063_vm4, %v7228_v20, %v144_v56  ;;  %v288_v4 = vsel %vm7074_vm5, %v246_v57, %v7228_v20  ;;  %v162_v5 = vrot.slane %v160_v58, 7  ;;  %v251_v8 = vrot.slane %v163_v59, 1 }
  0x25   :  { %v222_v9 = vsel %vm7063_vm4, %v7250_v34, %v151_v60  ;;  %v289_v10 = vsel %vm7074_vm5, %v248_v61, %v7250_v34  ;;  %v304_v12 = vmax.bf16 %v221_v0, %v7228_v20  ;;  %v155_v14 = vrot.slane %v153_v62, 7  ;;  %6012 = vmatpush3.bf16.msra.mxu1 %v6385_v55 }
  0x26   :  { %v305_v21 = vmax.bf16 %v222_v9, %v7250_v34  ;;  %v165_v22 = vor.u32 %v163_v59, %v162_v5  ;;  %v252_v23 = vor.u32 %v251_v8, %v160_v58  ;;  %v249_v24 = vrot.slane %v156_v63, 1 }
  0x27   :  { %v320_v25 = vmax.bf16 %v304_v12, %v288_v4  ;;  %v158_v30 = vor.u32 %v156_v63, %v155_v14  ;;  %v65_v20 = vmax.bf16 %v7270_v45, %v7239_v29  ;;  %v78_v40 = vmax.bf16 %v64_v31, %v7270_v45 }
  0x28   :  { %v321_v32 = vmax.bf16 %v305_v21, %v289_v10  ;;  %v224_v35 = vsel %vm7063_vm4, %v77_v50, %v165_v22  ;;  %v291_v34 = vsel %vm7074_vm5, %v252_v23, %v77_v50  ;;  %v250_v26 = vor.u32 %v249_v24, %v153_v62 }
  0x29   :  { %360 = vrot.lane.b32.xlu0 %v320_v25, %s6965_s27  ;;  %v307_v36 = vmax.bf16 %v224_v35, %v77_v50  ;;  %v223_v37 = vsel %vm7063_vm4, %v76_v53, %v158_v30  ;;  %v79_v39 = vmax.bf16 %v65_v20, %v7281_v54  ;;  %v7323_v43 = vpack.c.bf16 %v37_v15, %v37_v15 }
  0x2a   :  { %362 = vrot.lane.b32.xlu1 %v321_v32, %s6965_s27  ;;  %v290_v41 = vsel %vm7074_vm5, %v250_v26, %v76_v53  ;;  %v306_v42 = vmax.bf16 %v223_v37, %v76_v53  ;;  %v66_v46 = vmax.bf16 %v7281_v54, %v7270_v45  ;;  %v167_v50 = vshrl.u32 %v78_v40, 16 }
  0x2b   :  { %v323_v47 = vmax.bf16 %v307_v36, %v291_v34  ;;  %v174_v48 = vshrl.u32 %v79_v39, 16  ;;  %v177_v49 = vshll.u32 %v79_v39, 16  ;;  %v170_v51 = vshll.u32 %v78_v40, 16 }
  0x2c   :  { %v322_v38 = vmax.bf16 %v306_v42, %v290_v41  ;;  %v67_v52 = vmax.bf16 %v7323_v43, %v7281_v54  ;;  %v80_v56 = vmax.bf16 %v66_v46, %v7323_v43  ;;  %v169_v58 = vrot.slane %v167_v50, 7 }
  0x2d   :  { %v176_v57 = vrot.slane %v174_v48, 7  ;;  %v255_v53 = vrot.slane %v177_v49, 1  ;;  %v253_v59 = vrot.slane %v170_v51, 1  ;;  %v9089_v4 = vmov 0  }
  0x2e   :  { %366 = vrot.lane.b32.xlu1 %v323_v47, %s6965_s27  ;;  %364 = vrot.lane.b32.xlu0 %v322_v38, %s6965_s27  ;;  %v81_v60 = vmax.bf16 %v67_v52, %v7323_v43  ;;  %v181_v61 = vshrl.u32 %v80_v56, 16  ;;  %v184_v62 = vshll.u32 %v80_v56, 16  ;;  %v172_v0 = vor.u32 %v170_v51, %v169_v58  ;;  %v6388_v47 = vld [vmem:[%s9083_s3 + $0x4] ss:$16 sps:$4 sm:$0xff]  }
  0x2f   :  { %v179_v55 = vor.u32 %v177_v49, %v176_v57  ;;  %v256_v63 = vor.u32 %v255_v53, %v174_v48  ;;  %682 = vmatprep.mubr.bf16.mxu0 %v9089_v4  ;;  %v254_v5 = vor.u32 %v253_v59, %v167_v50  ;;  %v6391_v48 = vld [vmem:[%s9083_s3 + $0xc] ss:$16 sps:$4 sm:$0xff]   ;;  %4184 = vmatprep.subr.bf16.mxu0 %v6388_v47  ;;  %v6386_v50 = vld [vmem:[%s9083_s3] ss:$16 sps:$4 sm:$0xff]   ;;  %v6394_v51 = vld [vmem:[%s9083_s3 + $0x24] ss:$16 sps:$4 sm:$0xff]  }
  0x30   :  { %v188_v8 = vshrl.u32 %v81_v60, 16  ;;  %v191_v9 = vshll.u32 %v81_v60, 16  ;;  %v183_v10 = vrot.slane %v181_v61, 7  ;;  %v225_v15 = vsel %vm7063_vm4, %v78_v40, %v172_v0  ;;  %4749 = vmatprep.subr.bf16.mxu1 %v6391_v48 }
  0x31   :  { %v226_v12 = vsel %vm7063_vm4, %v79_v39, %v179_v55  ;;  %v293_v14 = vsel %vm7074_vm5, %v256_v63, %v79_v39  ;;  %v257_v16 = vrot.slane %v184_v62, 1  ;;  %v292_v22 = vsel %vm7074_vm5, %v254_v5, %v78_v40 }
  0x32   :  { %v309_v21 = vmax.bf16 %v226_v12, %v79_v39  ;;  %v308_v23 = vmax.bf16 %v225_v15, %v78_v40  ;;  %v190_v24 = vrot.slane %v188_v8, 7  ;;  %v259_v25 = vrot.slane %v191_v9, 1 }
  0x33   :  { %v186_v30 = vor.u32 %v184_v62, %v183_v10  ;;  %v258_v20 = vor.u32 %v257_v16, %v181_v61 }
  0x34   :  { %v325_v31 = vmax.bf16 %v309_v21, %v293_v14  ;;  %v324_v32 = vmax.bf16 %v308_v23, %v292_v22  ;;  %v193_v35 = vor.u32 %v191_v9, %v190_v24  ;;  %v260_v34 = vor.u32 %v259_v25, %v188_v8 }
  0x35   :  { %v227_v26 = vsel %vm7063_vm4, %v80_v56, %v186_v30  ;;  %v294_v36 = vsel %vm7074_vm5, %v258_v20, %v80_v56 }
  0x36   :  { %370 = vrot.lane.b32.xlu1 %v325_v31, %s6965_s27  ;;  %368 = vrot.lane.b32.xlu0 %v324_v32, %s6965_s27  ;;  %v228_v37 = vsel %vm7063_vm4, %v81_v60, %v193_v35  ;;  %v310_v39 = vmax.bf16 %v227_v26, %v80_v56  ;;  %v295_v40 = vsel %vm7074_vm5, %v260_v34, %v81_v60 }
  0x37   :  { %v311_v41 = vmax.bf16 %v228_v37, %v81_v60 }
  0x38   :  { %v326_v42 = vmax.bf16 %v310_v39, %v294_v36 }
  0x39   :  { %v327_v46 = vmax.bf16 %v311_v41, %v295_v40 }
  0x3a   :  { %372 = vrot.lane.b32.xlu0 %v326_v42, %s6965_s27 }
  0x3b   :  { %374 = vrot.lane.b32.xlu1 %v327_v46, %s6965_s27 }
  0x83   :  { %v345_v49 = vpop.permute.xlu0 %344 }
  0x84   :  { %v379_v52 = vsel %vm376_vm6, %v7006_v2, %v345_v49 }
  0x86   :  { %v349_v33 = vpop.permute.xlu1 %348 }
  0x87   :  { %v347_v38 = vpop.permute.xlu0 %346  ;;  %v385_v57 = vsel %vm376_vm6, %v7016_v6, %v349_v33 }
  0x88   :  { %v382_v56 = vsel %vm376_vm6, %v7008_v3, %v347_v38 }
  0x89   :  { %v5459_v53 = vcombine.low %v379_v52, %v382_v56 }
  0x8a   :  { %v351_v58 = vpop.permute.xlu1 %350 }
  0x8b   :  { %10 = vsyncpa [#allocation4], 0  ;;  %v388_v59 = vsel %vm376_vm6, %v7018_v7, %v351_v58  ;;  %683 = vmatmul.mubr.bf16.vlgmr.msra.gmra.mrb[0].mxu0 %v5459_v53  ;;  %6013 = vmatprep.mubr.bf16.mxu1 %v5459_v53  ;;  %v6389_v60 = vld [vmem:[%s9083_s3 + $0x8] ss:$16 sps:$4 sm:$0xff]   ;;  %v6392_v2 = vld [vmem:[%s9083_s3 + $0x20] ss:$16 sps:$4 sm:$0xff]  }
  0x8c   :  { %v5460_v61 = vcombine.low %v385_v57, %v388_v59  ;;  %692 = vmatprep.mubr.bf16.mxu0 %v9089_v4  ;;  %4185 = vmatpush1.bf16.msra.mxu0 %v6386_v50  ;;  %v6397_v3 = vld [vmem:[%s9083_s3 + $0x2c] ss:$16 sps:$4 sm:$0xff]   ;;  %v6400_v6 = vld [vmem:[%s9083_s3 + $0x44] ss:$16 sps:$4 sm:$0xff]   ;;  %v6395_v55 = vld [vmem:[%s9083_s3 + $0x28] ss:$16 sps:$4 sm:$0xff]  }
  0x8d   :  { %4186 = vmatprep.subr.bf16.mxu0 %v6394_v51  ;;  %v6398_v5 = vld [vmem:[%s9083_s3 + $0x40] ss:$16 sps:$4 sm:$0xff]   ;;  %v6406_v10 = vld [vmem:[%s9083_s3 + $0x64] ss:$16 sps:$4 sm:$0xff]   ;;  %v6409_v15 = vld [vmem:[%s9083_s3 + $0x6c] ss:$16 sps:$4 sm:$0xff]  }
  0x8e   :  { %6014 = vmatmul.mubr.bf16.vlgmr.msra.gmra.mrb[0].mxu1 %v5460_v61  ;;  %v355_v7 = vpop.permute.xlu1 %354  ;;  %v6412_v22 = vld [vmem:[%s9083_s3 + $0x84] ss:$16 sps:$4 sm:$0xff]   ;;  %v6407_v23 = vld [vmem:[%s9083_s3 + $0x68] ss:$16 sps:$4 sm:$0xff]   ;;  %v6410_v24 = vld [vmem:[%s9083_s3 + $0x80] ss:$16 sps:$4 sm:$0xff]  }
  0x8f   :  { %v394_v62 = vsel %vm376_vm6, %v7033_v13, %v355_v7  ;;  %4750 = vmatpush1.bf16.msra.mxu1 %v6389_v60  ;;  %v6403_v13 = vld [vmem:[%s9083_s3 + $0x4c] ss:$16 sps:$4 sm:$0xff]   ;;  %v6418_v25 = vld [vmem:[%s9083_s3 + $0xa4] ss:$16 sps:$4 sm:$0xff]   ;;  %v6413_v20 = vld [vmem:[%s9083_s3 + $0x88] ss:$16 sps:$4 sm:$0xff]  }
  0x90   :  { %v353_v63 = vpop.permute.xlu0 %352  ;;  %4751 = vmatprep.subr.bf16.mxu1 %v6397_v3  ;;  %4187 = vmatpush1.bf16.msra.mxu0 %v6392_v2  ;;  %v6421_v35 = vld [vmem:[%s9083_s3 + $0xac] ss:$16 sps:$4 sm:$0xff]   ;;  %v6416_v26 = vld [vmem:[%s9083_s3 + $0xa0] ss:$16 sps:$4 sm:$0xff]   ;;  %v6424_v37 = vld [vmem:[%s9083_s3 + $0xc4] ss:$16 sps:$4 sm:$0xff]  }
  0x91   :  { %v391_v0 = vsel %vm376_vm6, %v7028_v11, %v353_v63  ;;  %4188 = vmatprep.subr.bf16.mxu0 %v6400_v6  ;;  %v6401_v11 = vld [vmem:[%s9083_s3 + $0x48] ss:$16 sps:$4 sm:$0xff]   ;;  %v6422_v42 = vld [vmem:[%s9083_s3 + $0xc0] ss:$16 sps:$4 sm:$0xff]   ;;  %v6427_v46 = vld [vmem:[%s9083_s3 + $0xcc] ss:$16 sps:$4 sm:$0xff]  }
  0x92   :  { %v5461_v8 = vcombine.low %v391_v0, %v394_v62  ;;  %v359_v9 = vpop.permute.xlu1 %358  ;;  %v6430_v48 = vld [vmem:[%s9083_s3 + $0xe4] ss:$16 sps:$4 sm:$0xff]   ;;  %v6428_v49 = vld [vmem:[%s9083_s3 + $0xe0] ss:$16 sps:$4 sm:$0xff]   ;;  %v6431_v33 = vld [vmem:[%s9083_s3 + $0xe8] ss:$16 sps:$4 sm:$0xff]  }
  0x93   :  { %693 = vmatmul.mubr.bf16.gmra.mrb[4].mxu0 %v5460_v61  ;;  %v400_v12 = vsel %vm376_vm6, %v7044_v18, %v359_v9  ;;  %4752 = vmatpush1.bf16.msra.mxu1 %v6395_v55  ;;  %v6404_v18 = vld [vmem:[%s9083_s3 + $0x60] ss:$16 sps:$4 sm:$0xff]   ;;  %v6442_v61 = vld [vmem:[%s9083_s3 + $0x124] ss:$16 sps:$4 sm:$0xff]   ;;  %v6445_v2 = vld [vmem:[%s9083_s3 + $0x12c] ss:$16 sps:$4 sm:$0xff]   ;;  %v5491_v9 = vcombine.low %v9089_v4, %v9089_v4 }
  0x94   :  { %702 = vmatprep.mubr.bf16.mxu0 %v9089_v4  ;;  %6017 = vmatprep.mubr.bf16.mxu1 %v5461_v8  ;;  %v357_v14 = vpop.permute.xlu0 %356  ;;  %v6440_v3 = vld [vmem:[%s9083_s3 + $0x120] ss:$16 sps:$4 sm:$0xff]   ;;  %v6443_v6 = vld [vmem:[%s9083_s3 + $0x128] ss:$16 sps:$4 sm:$0xff]   ;;  %v6448_v7 = vld [vmem:[%s9083_s3 + $0x144] ss:$16 sps:$4 sm:$0xff]  }
  0x95   :  { %v397_v16 = vsel %vm376_vm6, %v7042_v17, %v357_v14  ;;  %4753 = vmatprep.subr.bf16.mxu1 %v6403_v13  ;;  %4189 = vmatpush1.bf16.msra.mxu0 %v6398_v5  ;;  %v6415_v17 = vld [vmem:[%s9083_s3 + $0x8c] ss:$16 sps:$4 sm:$0xff]   ;;  %v6446_v55 = vld [vmem:[%s9083_s3 + $0x140] ss:$16 sps:$4 sm:$0xff]   ;;  %v6449_v63 = vld [vmem:[%s9083_s3 + $0x148] ss:$16 sps:$4 sm:$0xff]  }
  0x96   :  { %v5462_v21 = vcombine.low %v397_v16, %v400_v12  ;;  %4190 = vmatprep.subr.bf16.mxu0 %v6406_v10  ;;  %v6451_v62 = vld [vmem:[%s9083_s3 + $0x14c] ss:$16 sps:$4 sm:$0xff]   ;;  %v6454_v0 = vld [vmem:[%s9083_s3 + $0x164] ss:$16 sps:$4 sm:$0xff]   ;;  %v6452_v13 = vld [vmem:[%s9083_s3 + $0x160] ss:$16 sps:$4 sm:$0xff]   ;;  %v5492_v10 = vcombine.high %v9089_v4, %v9089_v4 }
  0x97   :  { %4754 = vmatpush1.bf16.msra.mxu1 %v6401_v11  ;;  %v6457_v5 = vld [vmem:[%s9083_s3 + $0x16c] ss:$16 sps:$4 sm:$0xff]   ;;  %1240 = vst [vmem:[#allocation2] sm:$0xf] %v5491_v9  ;;  %1258 = vst [vmem:[#allocation2 + $0x48] sm:$0xf] %v5491_v9 }
  0x98   :  { %6018 = vmatmul.mubr.bf16.gmra.mrb[4].mxu1 %v5462_v21  ;;  %4755 = vmatprep.subr.bf16.mxu1 %v6409_v15  ;;  %1241 = vst [vmem:[#allocation2 + $0x4] sm:$0x1] %v5492_v10  ;;  %1259 = vst [vmem:[#allocation2 + $0x4c] sm:$0x1] %v5492_v10  ;;  %v6460_v12 = vld [vmem:[%s9083_s3 + $0x184] ss:$16 sps:$4 sm:$0xff]  }
  0x99   :  { %4191 = vmatpush1.bf16.msra.mxu0 %v6404_v18  ;;  %1260 = vst [vmem:[#allocation2 + $0x50] sm:$0xf] %v5491_v9  ;;  %1261 = vst [vmem:[#allocation2 + $0x54] sm:$0x1] %v5492_v10  ;;  %v6463_v11 = vld [vmem:[%s9083_s3 + $0x18c] ss:$16 sps:$4 sm:$0xff]  }
  0x9a   :  { %4192 = vmatprep.subr.bf16.mxu0 %v6412_v22  ;;  %1278 = vst [vmem:[#allocation2 + $0x98] sm:$0xf] %v5491_v9  ;;  %1279 = vst [vmem:[#allocation2 + $0x9c] sm:$0x1] %v5492_v10  ;;  %v6458_v14 = vld [vmem:[%s9083_s3 + $0x180] ss:$16 sps:$4 sm:$0xff]  }
  0x9b   :  { %703 = vmatmul.mubr.bf16.gmra.mrb[8].mxu0 %v5461_v8  ;;  %v361_v30 = vpop.permute.xlu0 %360  ;;  %4756 = vmatpush1.bf16.msra.mxu1 %v6407_v23  ;;  %v6455_v8 = vld [vmem:[%s9083_s3 + $0x168] ss:$16 sps:$4 sm:$0xff]   ;;  %v6466_v16 = vld [vmem:[%s9083_s3 + $0x1a4] ss:$16 sps:$4 sm:$0xff]   ;;  %v6469_v18 = vld [vmem:[%s9083_s3 + $0x1ac] ss:$16 sps:$4 sm:$0xff]  }
  0x9c   :  { %712 = vmatprep.mubr.bf16.mxu0 %v9089_v4  ;;  %v363_v31 = vpop.permute.xlu1 %362  ;;  %v403_v32 = vsel %vm376_vm6, %v7172_v44, %v361_v30  ;;  %4757 = vmatprep.subr.bf16.mxu1 %v6415_v17  ;;  %v6419_v44 = vld [vmem:[%s9083_s3 + $0xa8] ss:$16 sps:$4 sm:$0xff]   ;;  %v6472_v23 = vld [vmem:[%s9083_s3 + $0x1c4] ss:$16 sps:$4 sm:$0xff]   ;;  %v6475_v17 = vld [vmem:[%s9083_s3 + $0x1cc] ss:$16 sps:$4 sm:$0xff]  }
  0x9d   :  { %v406_v34 = vsel %vm376_vm6, %v7205_v1, %v363_v31  ;;  %4193 = vmatpush1.bf16.msra.mxu0 %v6410_v24  ;;  %v6461_v15 = vld [vmem:[%s9083_s3 + $0x188] ss:$16 sps:$4 sm:$0xff]   ;;  %v6470_v24 = vld [vmem:[%s9083_s3 + $0x1c0] ss:$16 sps:$4 sm:$0xff]   ;;  %v6478_v30 = vld [vmem:[%s9083_s3 + $0x1e4] ss:$16 sps:$4 sm:$0xff]  }
  0x9e   :  { %v5463_v36 = vcombine.low %v403_v32, %v406_v34  ;;  %4194 = vmatprep.subr.bf16.mxu0 %v6418_v25  ;;  %v6467_v22 = vld [vmem:[%s9083_s3 + $0x1a8] ss:$16 sps:$4 sm:$0xff]   ;;  %v6476_v31 = vld [vmem:[%s9083_s3 + $0x1e0] ss:$16 sps:$4 sm:$0xff]   ;;  %v6491_v34 = vld [vmem:[%s9083_s3 + $0x20c] ss:$16 sps:$4 sm:$0xff]  }
  0x9f   :  { %4758 = vmatpush1.bf16.msra.mxu1 %v6413_v20  ;;  %v6473_v25 = vld [vmem:[%s9083_s3 + $0x1c8] ss:$16 sps:$4 sm:$0xff]   ;;  %v6481_v20 = vld [vmem:[%s9083_s3 + $0x1ec] ss:$16 sps:$4 sm:$0xff]   ;;  %vm910_vm7 = vcmask 654336   ;;  %vm1102_vm8 = vcmask 1044480  }
  0xa0   :  { %6021 = vmatprep.mubr.bf16.mxu1 %v5463_v36  ;;  %v367_v39 = vpop.permute.xlu1 %366  ;;  %v365_v40 = vpop.permute.xlu0 %364  ;;  %4759 = vmatprep.subr.bf16.mxu1 %v6421_v35  ;;  %v6479_v32 = vld [vmem:[%s9083_s3 + $0x1e8] ss:$16 sps:$4 sm:$0xff]   ;;  %v6488_v35 = vld [vmem:[%s9083_s3 + $0x204] ss:$16 sps:$4 sm:$0xff]   ;;  %vm1103_vm9 = vsmask.f32 4352 }
  0xa1   :  { %v412_v1 = vsel %vm376_vm6, %v7237_v27, %v367_v39  ;;  %v409_v41 = vsel %vm376_vm6, %v7224_v19, %v365_v40  ;;  %4195 = vmatpush1.bf16.msra.mxu0 %v6416_v26  ;;  %v6425_v19 = vld [vmem:[%s9083_s3 + $0xc8] ss:$16 sps:$4 sm:$0xff]   ;;  %v6433_v27 = vld [vmem:[%s9083_s3 + $0xec] ss:$16 sps:$4 sm:$0xff]   ;;  %v459_v26 = vlaneseq  ;;  %vm7642_vm10 = vmand %vm1102_vm8, %vm1103_vm9 }
  0xa2   :  { %v5464_v47 = vcombine.low %v409_v41, %v412_v1  ;;  %4196 = vmatprep.subr.bf16.mxu0 %v6424_v37 }
  0xa3   :  { %713 = vmatmul.mubr.bf16.gmra.mrb[12].mxu0 %v5462_v21  ;;  %4760 = vmatpush1.bf16.msra.mxu1 %v6419_v44  ;;  %v6464_v21 = vld [vmem:[%s9083_s3 + $0x1a0] ss:$16 sps:$4 sm:$0xff]  }
  0xa4   :  { %722 = vmatprep.mubr.bf16.mxu0 %v9089_v4  ;;  %6022 = vmatmul.mubr.bf16.gmra.mrb[8].mxu1 %v5464_v47  ;;  %v457_v44 = vld [vmem:[%s9082_s2] sm:$0x7] }
  0xa5   :  { %4761 = vmatprep.subr.bf16.mxu1 %v6427_v46  ;;  %4197 = vmatpush1.bf16.msra.mxu0 %v6422_v42 }
  0xa6   :  { %4198 = vmatprep.subr.bf16.mxu0 %v6430_v48 }
  0xa7   :  { %4762 = vmatpush1.bf16.msra.mxu1 %v6425_v19  ;;  %v7616_v19 = vld [vmem:[#allocation2] sm:$0xf] }
  0xa8   :  { %v371_v50 = vpop.permute.xlu1 %370  ;;  %v369_v38 = vpop.permute.xlu0 %368  ;;  %4763 = vmatprep.subr.bf16.mxu1 %v6433_v27  ;;  %v7618_v27 = vld [vmem:[#allocation2 + $0x4] sm:$0x1] }
  0xa9   :  { %v418_v51 = vsel %vm376_vm6, %v7270_v45, %v371_v50  ;;  %v415_v52 = vsel %vm376_vm6, %v7239_v29, %v369_v38  ;;  %4199 = vmatpush1.bf16.msra.mxu0 %v6428_v49  ;;  %v6436_v29 = vld [vmem:[%s9083_s3 + $0x104] ss:$16 sps:$4 sm:$0xff]   ;;  %v6439_v45 = vld [vmem:[%s9083_s3 + $0x10c] ss:$16 sps:$4 sm:$0xff]  }
  0xaa   :  { %v5465_v56 = vcombine.low %v415_v52, %v418_v51  ;;  %4200 = vmatprep.subr.bf16.mxu0 %v6436_v29 }
  0xab   :  { %723 = vmatmul.mubr.bf16.gmra.mrb[16].mxu0 %v5463_v36  ;;  %4764 = vmatpush1.bf16.msra.mxu1 %v6431_v33  ;;  %v7595_v36 = vshrl.u32 %v459_v26, 7 }
  0xac   :  { %732 = vmatprep.mubr.bf16.mxu0 %v9089_v4  ;;  %6025 = vmatprep.mubr.bf16.mxu1 %v5465_v56  ;;  %v373_v57 = vpop.permute.xlu0 %372 }
  0xad   :  { %v375_v53 = vpop.permute.xlu1 %374  ;;  %v421_v58 = vsel %vm376_vm6, %v7281_v54, %v373_v57  ;;  %v6434_v54 = vld [vmem:[%s9083_s3 + $0x100] ss:$16 sps:$4 sm:$0xff]   ;;  %4765 = vmatprep.subr.bf16.mxu1 %v6439_v45  ;;  %9100 = vst [vmem:[#allocation6_spill] sm:$0xff] %v7595_v36  ;;  %v9088_v37 = vsub.s32 0, %v7595_v36  ;;  %v9086_v39 = vsub.s32 1, %v7595_v36  ;;  %v9087_v40 = vsub.s32 2, %v7595_v36 }
  0xae   :  { %v424_v59 = vsel %vm376_vm6, %v7323_v43, %v375_v53  ;;  %v6437_v43 = vld [vmem:[%s9083_s3 + $0x108] ss:$16 sps:$4 sm:$0xff]   ;;  %4201 = vmatpush1.bf16.msra.mxu0 %v6434_v54 }
  0xaf   :  { %v5466_v60 = vcombine.low %v421_v58, %v424_v59  ;;  %4766 = vmatpush1.bf16.msra.mxu1 %v6437_v43  ;;  %4202 = vmatprep.subr.bf16.mxu0 %v6442_v61  ;;  %v7605_v1 = vrot.slane %v457_v44, %v9088_v37  ;;  %v7609_v41 = vrot.slane %v457_v44, %v9086_v39  ;;  %v6725_v37 = vld [vmem:[%s9083_s3 + $0x5cc] ss:$16 sps:$4 sm:$0xff]  }
  0xb0   :  { %4767 = vmatprep.subr.bf16.mxu1 %v6445_v2  ;;  %v7613_v46 = vrot.slane %v457_v44, %v9087_v40  ;;  %v7626_v59 = vcombine.low %v7616_v19, %v7618_v27  ;;  %v6722_v40 = vld [vmem:[%s9083_s3 + $0x5c4] ss:$16 sps:$4 sm:$0xff]  }
  0xb1   :  { %6026 = vmatmul.mubr.bf16.gmra.mrb[12].mxu1 %v5466_v60 }
  0xb2   :  { %4203 = vmatpush1.bf16.msra.mxu0 %v6440_v3 }
  0xb3   :  { %733 = vmatmul.mubr.bf16.gmra.mrb[20].mxu0 %v5464_v47  ;;  %4768 = vmatpush1.bf16.msra.mxu1 %v6443_v6 }
  0xb4   :  { %742 = vmatprep.mubr.bf16.mxu0 %v9089_v4  ;;  %4204 = vmatprep.subr.bf16.mxu0 %v6448_v7 }
  0xb5   :  { %4769 = vmatprep.subr.bf16.mxu1 %v6451_v62 }
  0xb6   :  { %4205 = vmatpush1.bf16.msra.mxu0 %v6446_v55 }
  0xb7   :  { %4770 = vmatpush1.bf16.msra.mxu1 %v6449_v63  ;;  %4206 = vmatprep.subr.bf16.mxu0 %v6454_v0 }
  0xb8   :  { %4771 = vmatprep.subr.bf16.mxu1 %v6457_v5  ;;  %v1509_v5 = vshll.u32 %v7626_v59, 16 }
  0xba   :  { %4207 = vmatpush1.bf16.msra.mxu0 %v6452_v13 }
  0xbb   :  { %743 = vmatmul.mubr.bf16.gmra.mrb[24].mxu0 %v5465_v56  ;;  %4772 = vmatpush1.bf16.msra.mxu1 %v6455_v8 }
  0xbc   :  { %752 = vmatprep.mubr.bf16.mxu0 %v9089_v4  ;;  %4208 = vmatprep.subr.bf16.mxu0 %v6460_v12 }
  0xbd   :  { %4773 = vmatprep.subr.bf16.mxu1 %v6463_v11  ;;  %v7635_v11 = vld [vmem:[#allocation2] sm:$0xe] }
  0xbe   :  { %4209 = vmatpush1.bf16.msra.mxu0 %v6458_v14  ;;  %v5541_v26 = vcombine.low %v7635_v11, %v7618_v27  ;;  %v6548_v11 = vld [vmem:[%s9083_s3 + $0x304] ss:$16 sps:$4 sm:$0xff]  }
  0xbf   :  { %4774 = vmatpush1.bf16.msra.mxu1 %v6461_v15  ;;  %4210 = vmatprep.subr.bf16.mxu0 %v6466_v16 }
  0xc0   :  { %4775 = vmatprep.subr.bf16.mxu1 %v6469_v18 }
  0xc2   :  { %4211 = vmatpush1.bf16.msra.mxu0 %v6464_v21  ;;  %v1507_v21 = vshrl.u32 %v7626_v59, 16 }
  0xc3   :  { %753 = vmatmul.mubr.bf16.gmra.mrb[28].mxu0 %v5466_v60  ;;  %4776 = vmatpush1.bf16.msra.mxu1 %v6467_v22  ;;  %v1288_v22 = vld [vmem:[#allocation2 + $0x50] sm:$0xf] }
  0xc4   :  { %4212 = vmatprep.subr.bf16.mxu0 %v6472_v23  ;;  %4777 = vmatprep.subr.bf16.mxu1 %v6475_v17 }
  0xc6   :  { %4213 = vmatpush1.bf16.msra.mxu0 %v6470_v24 }
  0xc7   :  { %4778 = vmatpush1.bf16.msra.mxu1 %v6473_v25  ;;  %4214 = vmatprep.subr.bf16.mxu0 %v6478_v30 }
  0xc8   :  { %4779 = vmatprep.subr.bf16.mxu1 %v6481_v20 }
  0xca   :  { %4215 = vmatpush1.bf16.msra.mxu0 %v6476_v31  ;;  %v1304_v31 = vld [vmem:[#allocation2 + $0x54] sm:$0x1] }
  0xcb   :  { %4780 = vmatpush1.bf16.msra.mxu1 %v6479_v32  ;;  %4297 = vmatprep.subr.bf16.mxu0 %v6488_v35 }
  0xcc   :  { %4862 = vmatprep.subr.bf16.mxu1 %v6491_v34  ;;  %v7649_v34 = vrot.slane %v1509_v5, 1 }
 0x15e   :  { %v684_v42 = vpop.f32.mrb[0].mxu0 }
 0x15f   :  { %v685_v47 = vadd.f32 %v684_v42, %v7605_v1  ;;  %v686_v48 = vpop.f32.mrb[1].mxu0 }
 0x160   :  { %v687_v49 = vadd.f32 %v686_v48, %v7609_v41  ;;  %v688_v33 = vpop.f32.mrb[2].mxu0 }
 0x161   :  { %v860_v50 = vmax.f32 %v685_v47, 0.0  ;;  %v689_v38 = vadd.f32 %v688_v33, %v7605_v1  ;;  %v6015_v51 = vpop.f32.mrb[0].mxu1  ;;  %v690_v52 = vpop.f32.mrb[3].mxu0 }
 0x162   :  { %v861_v56 = vmax.f32 %v687_v49, 0.0  ;;  %v806_v57 = vadd.f32 %v6015_v51, %v7613_v46  ;;  %v691_v53 = vadd.f32 %v690_v52, %v7609_v41  ;;  %v797_v58 = vpop.f32.mrb[1].mxu1  ;;  %v7658_v52 = vcombine.low %v1288_v22, %v1304_v31 }
 0x163   :  { %v942_v60 = vpack.c.bf16 %v860_v50, %v860_v50  ;;  %v863_v29 = vmax.f32 %v689_v38, 0.0  ;;  %v798_v45 = vadd.f32 %v797_v58, %v7613_v46  ;;  %v6016_v54 = vpop.f32.mrb[2].mxu1 }
 0x164   :  { %909 = vst [vmem:[#allocation3 + $0x100] sm:$0xff] %v861_v56  ;;  %v868_v43 = vmax.f32 %v806_v57, 0.0  ;;  %v864_v61 = vmax.f32 %v691_v53, 0.0  ;;  %v809_v2 = vadd.f32 %v6016_v54, %v7613_v46  ;;  %v800_v3 = vpop.f32.mrb[3].mxu1 }
 0x165   :  { %v959_v6 = vshrl.u32 %v942_v60, 16  ;;  %v943_v7 = vpack.c.bf16 %v863_v29, %v863_v29  ;;  %v862_v62 = vmax.f32 %v798_v45, 0.0  ;;  %v801_v63 = vadd.f32 %v800_v3, %v7613_v46 }
 0x166   :  { %915 = vst.msk [vmem:[#allocation3 + $0x128] sm:$0xff] %vm910_vm7, %v868_v43  ;;  %912 = vst [vmem:[#allocation3 + $0x110] sm:$0xff] %v864_v61  ;;  %v871_v55 = vmax.f32 %v809_v2, 0.0  ;;  %v694_v0 = vpop.f32.mrb[4].mxu0  ;;  %v962_v8 = vshll.u32 %v942_v60, 16 }
 0x167   :  { %v961_v13 = vrot.slane %v959_v6, 7  ;;  %v966_v9 = vshrl.u32 %v943_v7, 16  ;;  %911 = vst.msk [vmem:[#allocation3 + $0x108] sm:$0xff] %vm910_vm7, %v862_v62  ;;  %v695_v10 = vadd.f32 %v694_v0, %v7605_v1  ;;  %v696_v12 = vpop.f32.mrb[5].mxu0  ;;  %v969_v14 = vshll.u32 %v943_v7, 16 }
 0x168   :  { %917 = vst.msk [vmem:[#allocation3 + $0x138] sm:$0xff] %vm910_vm7, %v871_v55  ;;  %v865_v15 = vmax.f32 %v801_v63, 0.0  ;;  %v697_v16 = vadd.f32 %v696_v12, %v7609_v41  ;;  %v698_v18 = vpop.f32.mrb[6].mxu0 }
 0x169   :  { %v964_v23 = vor.u32 %v962_v8, %v961_v13  ;;  %v968_v24 = vrot.slane %v966_v9, 7  ;;  %v866_v25 = vmax.f32 %v695_v10, 0.0  ;;  %v699_v30 = vadd.f32 %v698_v18, %v7605_v1  ;;  %v700_v20 = vpop.f32.mrb[7].mxu0 }
 0x16a   :  { %913 = vst.msk [vmem:[#allocation3 + $0x118] sm:$0xff] %vm910_vm7, %v865_v15  ;;  %v867_v32 = vmax.f32 %v697_v16, 0.0  ;;  %v701_v35 = vadd.f32 %v700_v20, %v7609_v41 }
 0x16b   :  { %v1086_v44 = vsel %vm7063_vm4, 0, %v964_v23  ;;  %v971_v42 = vor.u32 %v969_v14, %v968_v24  ;;  %v944_v47 = vpack.c.bf16 %v866_v25, %v866_v25  ;;  %v869_v48 = vmax.f32 %v699_v30, 0.0  ;;  %v6019_v49 = vpop.f32.mrb[4].mxu1 }
 0x16c   :  { %v1105_v33 = vsel %vm7642_vm10, %v1086_v44, 0  ;;  %914 = vst [vmem:[#allocation3 + $0x120] sm:$0xff] %v867_v32  ;;  %v870_v50 = vmax.f32 %v701_v35, 0.0  ;;  %v822_v38 = vadd.f32 %v6019_v49, %v7613_v46  ;;  %v813_v51 = vpop.f32.mrb[5].mxu1  ;;  %v1563_v49 = vshrl.u32 %v7658_v52, 16 }
 0x16d   :  { %v5493_v56 = vcombine.low %v1105_v33, %v1105_v33  ;;  %v5494_v57 = vcombine.high %v1105_v33, %v1105_v33  ;;  %v1087_v53 = vsel %vm7063_vm4, 0, %v971_v42  ;;  %v973_v58 = vshrl.u32 %v944_v47, 16  ;;  %v6020_v60 = vpop.f32.mrb[6].mxu1 }
 0x16e   :  { %v1106_v29 = vsel %vm7642_vm10, %v1087_v53, 0  ;;  %v976_v45 = vshll.u32 %v944_v47, 16  ;;  %v945_v54 = vpack.c.bf16 %v869_v48, %v869_v48  ;;  %916 = vst [vmem:[#allocation3 + $0x130] sm:$0xff] %v870_v50  ;;  %v704_v43 = vpop.f32.mrb[8].mxu0  ;;  %v880_v61 = vmax.f32 %v822_v38, 0.0  ;;  %v816_v2 = vpop.f32.mrb[7].mxu1 }
 0x16f   :  { %1242 = vst [vmem:[#allocation2 + $0x8] sm:$0xf] %v5493_v56  ;;  %1243 = vst [vmem:[#allocation2 + $0xc] sm:$0x1] %v5494_v57  ;;  %v5495_v3 = vcombine.low %v1106_v29, %v1106_v29  ;;  %v5496_v6 = vcombine.high %v1106_v29, %v1106_v29  ;;  %v975_v7 = vrot.slane %v973_v58, 7  ;;  %v705_v62 = vadd.f32 %v704_v43, %v7605_v1  ;;  %v706_v55 = vpop.f32.mrb[9].mxu0 }
 0x170   :  { %v980_v63 = vshrl.u32 %v945_v54, 16  ;;  %v983_v0 = vshll.u32 %v945_v54, 16  ;;  %v707_v5 = vadd.f32 %v706_v55, %v7609_v41  ;;  %v708_v13 = vpop.f32.mrb[10].mxu0  ;;  %923 = vst.msk [vmem:[#allocation3 + $0x168] sm:$0xff] %vm910_vm7, %v880_v61  ;;  %v814_v8 = vadd.f32 %v813_v51, %v7613_v46 }
 0x171   :  { %1244 = vst [vmem:[#allocation2 + $0x10] sm:$0xf] %v5495_v3  ;;  %1245 = vst [vmem:[#allocation2 + $0x14] sm:$0x1] %v5496_v6  ;;  %v978_v9 = vor.u32 %v976_v45, %v975_v7  ;;  %v872_v10 = vmax.f32 %v705_v62, 0.0  ;;  %v709_v12 = vadd.f32 %v708_v13, %v7605_v1  ;;  %v710_v14 = vpop.f32.mrb[11].mxu0  ;;  %v825_v15 = vadd.f32 %v6020_v60, %v7613_v46 }
 0x172   :  { %v982_v16 = vrot.slane %v980_v63, 7  ;;  %v873_v18 = vmax.f32 %v707_v5, 0.0  ;;  %v711_v22 = vadd.f32 %v710_v14, %v7609_v41  ;;  %v874_v23 = vmax.f32 %v814_v8, 0.0 }
 0x173   :  { %v1088_v24 = vsel %vm7063_vm4, 0, %v978_v9  ;;  %v946_v25 = vpack.c.bf16 %v872_v10, %v872_v10  ;;  %v875_v30 = vmax.f32 %v709_v12, 0.0  ;;  %v883_v20 = vmax.f32 %v825_v15, 0.0 }
 0x174   :  { %v1107_v31 = vsel %vm7642_vm10, %v1088_v24, 0  ;;  %v985_v32 = vor.u32 %v983_v0, %v982_v16  ;;  %918 = vst [vmem:[#allocation3 + $0x140] sm:$0xff] %v873_v18  ;;  %v876_v35 = vmax.f32 %v711_v22, 0.0  ;;  %919 = vst.msk [vmem:[#allocation3 + $0x148] sm:$0xff] %vm910_vm7, %v874_v23  ;;  %v817_v44 = vadd.f32 %v816_v2, %v7613_v46 }
 0x175   :  { %v5497_v42 = vcombine.low %v1107_v31, %v1107_v31  ;;  %v5498_v47 = vcombine.high %v1107_v31, %v1107_v31  ;;  %v987_v48 = vshrl.u32 %v946_v25, 16  ;;  %925 = vst.msk [vmem:[#allocation3 + $0x178] sm:$0xff] %vm910_vm7, %v883_v20  ;;  %v990_v50 = vshll.u32 %v946_v25, 16 }
 0x176   :  { %v1089_v33 = vsel %vm7063_vm4, 0, %v985_v32  ;;  %v947_v38 = vpack.c.bf16 %v875_v30, %v875_v30  ;;  %920 = vst [vmem:[#allocation3 + $0x150] sm:$0xff] %v876_v35  ;;  %v714_v51 = vpop.f32.mrb[12].mxu0  ;;  %v877_v56 = vmax.f32 %v817_v44, 0.0  ;;  %v1281_v57 = vld [vmem:[#allocation2 + $0x8] sm:$0xf]  ;;  %v7689_v54 = vor.u32 %v7649_v34, %v1507_v21 }
 0x177   :  { %1246 = vst [vmem:[#allocation2 + $0x18] sm:$0xf] %v5497_v42  ;;  %1247 = vst [vmem:[#allocation2 + $0x1c] sm:$0x1] %v5498_v47  ;;  %v1108_v53 = vsel %vm7642_vm10, %v1089_v33, 0  ;;  %v989_v58 = vrot.slane %v987_v48, 7  ;;  %v715_v60 = vadd.f32 %v714_v51, %v7605_v1  ;;  %v7708_v24 = vcombine.low %v7616_v19, %v1281_v57 }
 0x178   :  { %v716_v29 = vpop.f32.mrb[13].mxu0  ;;  %v7684_v45 = vld [vmem:[#allocation2 + $0xc] sm:$0x1]  ;;  %v6023_v43 = vpop.f32.mrb[8].mxu1  ;;  %v5499_v61 = vcombine.low %v1108_v53, %v1108_v53  ;;  %v5500_v2 = vcombine.high %v1108_v53, %v1108_v53  ;;  %v994_v3 = vshrl.u32 %v947_v38, 16  ;;  %921 = vst.msk [vmem:[#allocation3 + $0x158] sm:$0xff] %vm910_vm7, %v877_v56 }
 0x179   :  { %v718_v6 = vpop.f32.mrb[14].mxu0  ;;  %v7692_v7 = vpop.f32.mrb[9].mxu1  ;;  %v1565_v62 = vshll.u32 %v7658_v52, 16  ;;  %v992_v55 = vor.u32 %v990_v50, %v989_v58  ;;  %v878_v63 = vmax.f32 %v715_v60, 0.0  ;;  %v717_v0 = vadd.f32 %v716_v29, %v7609_v41  ;;  %v6551_v52 = vld [vmem:[%s9083_s3 + $0x30c] ss:$16 sps:$4 sm:$0xff]  }
 0x17a   :  { %v719_v59 = vadd.f32 %v718_v6, %v7605_v1  ;;  %v720_v5 = vpop.f32.mrb[15].mxu0  ;;  %v7697_v21 = vpop.f32.mrb[10].mxu1  ;;  %1248 = vst [vmem:[#allocation2 + $0x20] sm:$0xf] %v5499_v61  ;;  %1249 = vst [vmem:[#allocation2 + $0x24] sm:$0x1] %v5500_v2  ;;  %v5526_v9 = vcombine.low %v1281_v57, %v7684_v45 }
 0x17b   :  { %v996_v34 = vrot.slane %v994_v3, 7  ;;  %v997_v13 = vshll.u32 %v947_v38, 16  ;;  %v721_v8 = vadd.f32 %v720_v5, %v7609_v41  ;;  %v7701_v10 = vpop.f32.mrb[11].mxu1  ;;  %v1090_v12 = vsel %vm7063_vm4, 0, %v992_v55 }
 0x17c   :  { %v948_v14 = vpack.c.bf16 %v878_v63, %v878_v63  ;;  %v879_v15 = vmax.f32 %v717_v0, 0.0  ;;  %v881_v16 = vmax.f32 %v719_v59, 0.0  ;;  %v1109_v18 = vsel %vm7642_vm10, %v1090_v12, 0 }
 0x17d   :  { %v999_v22 = vor.u32 %v997_v13, %v996_v34  ;;  %v882_v23 = vmax.f32 %v721_v8, 0.0  ;;  %v5501_v25 = vcombine.low %v1109_v18, %v1109_v18  ;;  %v5502_v30 = vcombine.high %v1109_v18, %v1109_v18 }
 0x17e   :  { %v1001_v20 = vshrl.u32 %v948_v14, 16  ;;  %922 = vst [vmem:[#allocation3 + $0x160] sm:$0xff] %v879_v15  ;;  %v1514_v31 = vshrl.u32 %v5526_v9, 16  ;;  %v1004_v35 = vshll.u32 %v948_v14, 16  ;;  %v949_v44 = vpack.c.bf16 %v881_v16, %v881_v16  ;;  %v724_v42 = vpop.f32.mrb[16].mxu0 }
 0x17f   :  { %v1091_v32 = vsel %vm7063_vm4, 0, %v999_v22  ;;  %924 = vst [vmem:[#allocation3 + $0x170] sm:$0xff] %v882_v23  ;;  %v1516_v47 = vshll.u32 %v5526_v9, 16  ;;  %1250 = vst [vmem:[#allocation2 + $0x28] sm:$0xf] %v5501_v25  ;;  %v725_v33 = vadd.f32 %v724_v42, %v7605_v1  ;;  %v726_v50 = vpop.f32.mrb[17].mxu0  ;;  %v838_v38 = vadd.f32 %v6023_v43, %v7613_v46 }
 0x180   :  { %1251 = vst [vmem:[#allocation2 + $0x2c] sm:$0x1] %v5502_v30  ;;  %v1110_v48 = vsel %vm7642_vm10, %v1091_v32, 0  ;;  %v1003_v19 = vrot.slane %v1001_v20, 7  ;;  %v1008_v57 = vshrl.u32 %v949_v44, 16  ;;  %v1011_v53 = vshll.u32 %v949_v44, 16 }
 0x181   :  { %v5503_v51 = vcombine.low %v1110_v48, %v1110_v48  ;;  %v5504_v56 = vcombine.high %v1110_v48, %v1110_v48  ;;  %v728_v58 = vpop.f32.mrb[18].mxu0  ;;  %v884_v29 = vmax.f32 %v725_v33, 0.0  ;;  %v727_v61 = vadd.f32 %v726_v50, %v7609_v41  ;;  %v6486_v14 = vld [vmem:[%s9083_s3 + $0x200] ss:$16 sps:$4 sm:$0xff]   ;;  %v6489_v25 = vld [vmem:[%s9083_s3 + $0x208] ss:$16 sps:$4 sm:$0xff]  }
 0x182   :  { %v1006_v60 = vor.u32 %v1004_v35, %v1003_v19  ;;  %v729_v2 = vadd.f32 %v728_v58, %v7605_v1  ;;  %v730_v3 = vpop.f32.mrb[19].mxu0  ;;  %v1010_v6 = vrot.slane %v1008_v57, 7  ;;  %v1518_v63 = vrot.slane %v1516_v47, 1  ;;  %v6495_v44 = vld [vmem:[%s9083_s3 + $0x224] ss:$16 sps:$4 sm:$0xff]  }
 0x183   :  { %1252 = vst [vmem:[#allocation2 + $0x30] sm:$0xf] %v5503_v51  ;;  %1253 = vst [vmem:[#allocation2 + $0x34] sm:$0x1] %v5504_v56  ;;  %v731_v55 = vadd.f32 %v730_v3, %v7609_v41  ;;  %v892_v0 = vmax.f32 %v838_v38, 0.0  ;;  %v950_v59 = vpack.c.bf16 %v884_v29, %v884_v29  ;;  %v885_v5 = vmax.f32 %v727_v61, 0.0 }
 0x184   :  { %v1092_v43 = vsel %vm7063_vm4, 0, %v1006_v60  ;;  %v887_v34 = vmax.f32 %v729_v2, 0.0  ;;  %v1013_v8 = vor.u32 %v1011_v53, %v1010_v6  ;;  %v1519_v12 = vor.u32 %v1518_v63, %v1514_v31  ;;  %v7727_v15 = vpop.f32.mrb[12].mxu1  ;;  %v6498_v42 = vld [vmem:[%s9083_s3 + $0x22c] ss:$16 sps:$4 sm:$0xff]  }
 0x185   :  { %v1111_v13 = vsel %vm7642_vm10, %v1092_v43, 0  ;;  %v888_v9 = vmax.f32 %v731_v55, 0.0  ;;  %931 = vst.msk [vmem:[#allocation3 + $0x1a8] sm:$0xff] %vm910_vm7, %v892_v0  ;;  %v1015_v22 = vshrl.u32 %v950_v59, 16  ;;  %v1018_v23 = vshll.u32 %v950_v59, 16  ;;  %926 = vst [vmem:[#allocation3 + $0x180] sm:$0xff] %v885_v5 }
 0x186   :  { %v5505_v16 = vcombine.low %v1111_v13, %v1111_v13  ;;  %v5506_v18 = vcombine.high %v1111_v13, %v1111_v13  ;;  %v7732_v30 = vpop.f32.mrb[13].mxu1  ;;  %v1093_v20 = vsel %vm7063_vm4, 0, %v1013_v8  ;;  %v951_v31 = vpack.c.bf16 %v887_v34, %v887_v34  ;;  %v734_v47 = vpop.f32.mrb[20].mxu0  ;;  %v7750_v50 = vld [vmem:[#allocation2 + $0x10] sm:$0xf] }
 0x187   :  { %928 = vst [vmem:[#allocation3 + $0x190] sm:$0xff] %v888_v9  ;;  %v5622_v32 = vcombine.low %v7689_v54, %v1519_v12  ;;  %v830_v35 = vadd.f32 %v7692_v7, %v7613_v46  ;;  %v1112_v48 = vsel %vm7642_vm10, %v1093_v20, 0  ;;  %v1017_v19 = vrot.slane %v1015_v22, 7  ;;  %v736_v33 = vpop.f32.mrb[21].mxu0  ;;  %v7752_v38 = vpop.f32.mrb[14].mxu1 }
 0x188   :  { %1254 = vst [vmem:[#allocation2 + $0x38] sm:$0xf] %v5505_v16  ;;  %1255 = vst [vmem:[#allocation2 + $0x3c] sm:$0x1] %v5506_v18  ;;  %v841_v54 = vadd.f32 %v7697_v21, %v7613_v46  ;;  %v735_v7 = vadd.f32 %v734_v47, %v7605_v1  ;;  %v5507_v51 = vcombine.low %v1112_v48, %v1112_v48  ;;  %v1022_v57 = vshrl.u32 %v951_v31, 16  ;;  %v738_v60 = vpop.f32.mrb[22].mxu0 }
 0x189   :  { %v5508_v56 = vcombine.high %v1112_v48, %v1112_v48  ;;  %v1025_v53 = vshll.u32 %v951_v31, 16  ;;  %4216 = vmatprep.mubr.bf16.mxu0 %v5622_v32  ;;  %4781 = vmatprep.mubr.bf16.mxu1 %v5622_v32  ;;  %v6493_v58 = vld [vmem:[%s9083_s3 + $0x220] ss:$16 sps:$4 sm:$0xff]   ;;  %v7757_v29 = vld [vmem:[#allocation2 + $0x14] sm:$0x1]  ;;  %v7759_v21 = vpop.f32.mrb[15].mxu1  ;;  %v1020_v61 = vor.u32 %v1018_v23, %v1017_v19  ;;  %v833_v43 = vadd.f32 %v7701_v10, %v7613_v46 }
 0x18a   :  { %4217 = vmatmul.mubr.bf16.vlgmr.msra.gmra.mrb[32].mxu0 %v7708_v24  ;;  %4782 = vmatmul.mubr.bf16.vlgmr.msra.gmra.mrb[16].mxu1 %v7708_v24  ;;  %v886_v2 = vmax.f32 %v830_v35, 0.0  ;;  %v895_v3 = vmax.f32 %v841_v54, 0.0  ;;  %v6496_v6 = vld [vmem:[%s9083_s3 + $0x228] ss:$16 sps:$4 sm:$0xff]   ;;  %v890_v55 = vmax.f32 %v735_v7, 0.0  ;;  %v740_v63 = vpop.f32.mrb[23].mxu0  ;;  %v737_v59 = vadd.f32 %v736_v33, %v7609_v41 }
 0x18b   :  { %1256 = vst [vmem:[#allocation2 + $0x40] sm:$0xf] %v5507_v51  ;;  %1257 = vst [vmem:[#allocation2 + $0x44] sm:$0x1] %v5508_v56  ;;  %v1024_v0 = vrot.slane %v1022_v57, 7  ;;  %4298 = vmatpush1.bf16.msra.mxu0 %v6486_v14  ;;  %4863 = vmatpush1.bf16.msra.mxu1 %v6489_v25  ;;  %v739_v24 = vadd.f32 %v738_v60, %v7605_v1  ;;  %v1094_v13 = vsel %vm7063_vm4, 0, %v1020_v61 }
 0x18c   :  { %v6503_v5 = vld [vmem:[%s9083_s3 + $0x244] ss:$16 sps:$4 sm:$0xff]   ;;  %v6506_v34 = vld [vmem:[%s9083_s3 + $0x24c] ss:$16 sps:$4 sm:$0xff]   ;;  %927 = vst.msk [vmem:[#allocation3 + $0x188] sm:$0xff] %vm910_vm7, %v886_v2  ;;  %933 = vst.msk [vmem:[#allocation3 + $0x1b8] sm:$0xff] %vm910_vm7, %v895_v3  ;;  %4299 = vmatprep.subr.bf16.mxu0 %v6495_v44  ;;  %4864 = vmatprep.subr.bf16.mxu1 %v6498_v42  ;;  %v952_v10 = vpack.c.bf16 %v890_v55, %v890_v55  ;;  %v741_v8 = vadd.f32 %v740_v63, %v7609_v41 }
 0x18d   :  { %v1283_v9 = vld [vmem:[#allocation2 + $0x18] sm:$0xf]  ;;  %v7781_v12 = vld [vmem:[#allocation2 + $0x1c] sm:$0x1]  ;;  %v5527_v14 = vcombine.low %v7750_v50, %v7757_v29  ;;  %v1113_v16 = vsel %vm7642_vm10, %v1094_v13, 0  ;;  %v1027_v18 = vor.u32 %v1025_v53, %v1024_v0  ;;  %v889_v22 = vmax.f32 %v833_v43, 0.0 }
 0x18e   :  { %v891_v23 = vmax.f32 %v737_v59, 0.0  ;;  %v6501_v25 = vld [vmem:[%s9083_s3 + $0x240] ss:$16 sps:$4 sm:$0xff]   ;;  %v5509_v20 = vcombine.low %v1113_v16, %v1113_v16  ;;  %v5510_v31 = vcombine.high %v1113_v16, %v1113_v16  ;;  %v1029_v32 = vshrl.u32 %v952_v10, 16  ;;  %v6504_v44 = vld [vmem:[%s9083_s3 + $0x248] ss:$16 sps:$4 sm:$0xff]  }
 0x18f   :  { %v1032_v35 = vshll.u32 %v952_v10, 16  ;;  %v6510_v42 = vld [vmem:[%s9083_s3 + $0x264] ss:$16 sps:$4 sm:$0xff]   ;;  %v1095_v47 = vsel %vm7063_vm4, 0, %v1027_v18  ;;  %929 = vst.msk [vmem:[#allocation3 + $0x198] sm:$0xff] %vm910_vm7, %v889_v22  ;;  %4300 = vmatpush1.bf16.msra.mxu0 %v6493_v58  ;;  %4865 = vmatpush1.bf16.msra.mxu1 %v6496_v6  ;;  %v893_v48 = vmax.f32 %v739_v24, 0.0  ;;  %v5528_v54 = vcombine.low %v1283_v9, %v7781_v12 }
 0x190   :  { %930 = vst [vmem:[#allocation3 + $0x1a0] sm:$0xff] %v891_v23  ;;  %v894_v19 = vmax.f32 %v741_v8, 0.0  ;;  %v6513_v7 = vld [vmem:[%s9083_s3 + $0x26c] ss:$16 sps:$4 sm:$0xff]   ;;  %v744_v33 = vpop.f32.mrb[24].mxu0  ;;  %v1114_v51 = vsel %vm7642_vm10, %v1095_v47, 0  ;;  %4301 = vmatprep.subr.bf16.mxu0 %v6503_v5  ;;  %4866 = vmatprep.subr.bf16.mxu1 %v6506_v34  ;;  %v7812_v24 = vcombine.low %v7750_v50, %v1283_v9 }
 0x191   :  { %1262 = vst [vmem:[#allocation2 + $0x58] sm:$0xf] %v5509_v20  ;;  %1263 = vst [vmem:[#allocation2 + $0x5c] sm:$0x1] %v5510_v31  ;;  %v1031_v56 = vrot.slane %v1029_v32, 7  ;;  %v1521_v57 = vshrl.u32 %v5527_v14, 16  ;;  %v5511_v60 = vcombine.low %v1114_v51, %v1114_v51  ;;  %v5512_v61 = vcombine.high %v1114_v51, %v1114_v51 }
 0x192   :  { %v1523_v53 = vshll.u32 %v5527_v14, 16  ;;  %v746_v58 = vpop.f32.mrb[25].mxu0  ;;  %v953_v2 = vpack.c.bf16 %v893_v48, %v893_v48  ;;  %932 = vst [vmem:[#allocation3 + $0x1b0] sm:$0xff] %v894_v19  ;;  %v1528_v3 = vshrl.u32 %v5528_v54, 16  ;;  %v6508_v6 = vld [vmem:[%s9083_s3 + $0x260] ss:$16 sps:$4 sm:$0xff]   ;;  %v745_v8 = vadd.f32 %v744_v33, %v7605_v1 }
 0x193   :  { %v6511_v55 = vld [vmem:[%s9083_s3 + $0x268] ss:$16 sps:$4 sm:$0xff]   ;;  %v748_v63 = vpop.f32.mrb[26].mxu0  ;;  %v1034_v0 = vor.u32 %v1032_v35, %v1031_v56  ;;  %v1530_v59 = vshll.u32 %v5528_v54, 16  ;;  %v6518_v34 = vld [vmem:[%s9083_s3 + $0x284] ss:$16 sps:$4 sm:$0xff]   ;;  %4302 = vmatpush1.bf16.msra.mxu0 %v6501_v25  ;;  %4867 = vmatpush1.bf16.msra.mxu1 %v6504_v44  ;;  %v747_v14 = vadd.f32 %v746_v58, %v7609_v41 }
 0x194   :  { %v1525_v43 = vrot.slane %v1523_v53, 1  ;;  %v750_v5 = vpop.f32.mrb[27].mxu0  ;;  %1264 = vst [vmem:[#allocation2 + $0x60] sm:$0xf] %v5511_v60  ;;  %1265 = vst [vmem:[#allocation2 + $0x64] sm:$0x1] %v5512_v61  ;;  %4303 = vmatprep.subr.bf16.mxu0 %v6510_v42  ;;  %4868 = vmatprep.subr.bf16.mxu1 %v6513_v7  ;;  %v749_v23 = vadd.f32 %v748_v63, %v7605_v1 }
 0x195   :  { %v1036_v13 = vshrl.u32 %v953_v2, 16  ;;  %v1039_v10 = vshll.u32 %v953_v2, 16  ;;  %v7819_v16 = vld [vmem:[#allocation2 + $0x20] sm:$0xf]  ;;  %v6521_v50 = vld [vmem:[%s9083_s3 + $0x28c] ss:$16 sps:$4 sm:$0xff]   ;;  %v751_v7 = vadd.f32 %v750_v5, %v7609_v41 }
 0x196   :  { %v1096_v9 = vsel %vm7063_vm4, 0, %v1034_v0  ;;  %v1526_v18 = vor.u32 %v1525_v43, %v1521_v57  ;;  %v1532_v22 = vrot.slane %v1530_v59, 1  ;;  %v1285_v25 = vld [vmem:[#allocation2 + $0x28] sm:$0xf]  ;;  %v7827_v20 = vld [vmem:[#allocation2 + $0x24] sm:$0x1] }
 0x197   :  { %v1115_v31 = vsel %vm7642_vm10, %v1096_v9, 0  ;;  %v1038_v32 = vrot.slane %v1036_v13, 7  ;;  %v896_v35 = vmax.f32 %v745_v8, 0.0  ;;  %v897_v44 = vmax.f32 %v747_v14, 0.0  ;;  %v7831_v47 = vld [vmem:[#allocation2 + $0x2c] sm:$0x1]  ;;  %4304 = vmatpush1.bf16.msra.mxu0 %v6508_v6  ;;  %4869 = vmatpush1.bf16.msra.mxu1 %v6511_v55 }
 0x198   :  { %v5513_v48 = vcombine.low %v1115_v31, %v1115_v31  ;;  %v5514_v19 = vcombine.high %v1115_v31, %v1115_v31  ;;  %v1533_v54 = vor.u32 %v1532_v22, %v1528_v3  ;;  %v899_v33 = vmax.f32 %v749_v23, 0.0  ;;  %v6516_v56 = vld [vmem:[%s9083_s3 + $0x280] ss:$16 sps:$4 sm:$0xff]   ;;  %v6519_v57 = vld [vmem:[%s9083_s3 + $0x288] ss:$16 sps:$4 sm:$0xff]   ;;  %v754_v53 = vpop.f32.mrb[28].mxu0  ;;  %4305 = vmatprep.subr.bf16.mxu0 %v6518_v34  ;;  %4870 = vmatprep.subr.bf16.mxu1 %v6521_v50 }
 0x199   :  { %v1041_v51 = vor.u32 %v1039_v10, %v1038_v32  ;;  %v954_v42 = vpack.c.bf16 %v896_v35, %v896_v35  ;;  %934 = vst [vmem:[#allocation3 + $0x1c0] sm:$0xff] %v897_v44  ;;  %v7842_v58 = vrot.slane %v1565_v62, 1  ;;  %v5529_v2 = vcombine.low %v7819_v16, %v7827_v20  ;;  %v6525_v6 = vld [vmem:[%s9083_s3 + $0x2a4] ss:$16 sps:$4 sm:$0xff]   ;;  %v6528_v55 = vld [vmem:[%s9083_s3 + $0x2ac] ss:$16 sps:$4 sm:$0xff]  }
 0x19a   :  { %1266 = vst [vmem:[#allocation2 + $0x68] sm:$0xf] %v5513_v48  ;;  %1267 = vst [vmem:[#allocation2 + $0x6c] sm:$0x1] %v5514_v19  ;;  %v5631_v60 = vcombine.low %v1526_v18, %v1533_v54  ;;  %v955_v61 = vpack.c.bf16 %v899_v33, %v899_v33  ;;  %v5530_v3 = vcombine.low %v1285_v25, %v7831_v47  ;;  %v7853_v62 = vpop.f32.mrb[29].mxu0  ;;  %v900_v59 = vmax.f32 %v751_v7, 0.0 }
 0x19b   :  { %v1097_v63 = vsel %vm7063_vm4, 0, %v1041_v51  ;;  %v1043_v0 = vshrl.u32 %v954_v42, 16  ;;  %v1046_v43 = vshll.u32 %v954_v42, 16  ;;  %v7857_v5 = vpop.f32.mrb[30].mxu0  ;;  %v1535_v8 = vshrl.u32 %v5529_v2, 16  ;;  %4306 = vmatpush1.bf16.msra.mxu0 %v6516_v56  ;;  %4871 = vmatpush1.bf16.msra.mxu1 %v6519_v57 }
 0x19c   :  { %v1116_v34 = vsel %vm7642_vm10, %v1097_v63, 0  ;;  %4226 = vmatprep.mubr.bf16.mxu0 %v5631_v60  ;;  %4791 = vmatprep.mubr.bf16.mxu1 %v5631_v60  ;;  %v1050_v13 = vshrl.u32 %v955_v61, 16  ;;  %v1053_v10 = vshll.u32 %v955_v61, 16  ;;  %v7861_v14 = vpop.f32.mrb[31].mxu0  ;;  %936 = vst [vmem:[#allocation3 + $0x1d0] sm:$0xff] %v900_v59  ;;  %v1537_v50 = vshll.u32 %v5529_v2, 16 }
 0x19d   :  { %v5515_v9 = vcombine.low %v1116_v34, %v1116_v34  ;;  %v5516_v18 = vcombine.high %v1116_v34, %v1116_v34  ;;  %4227 = vmatmul.mubr.bf16.gmra.mrb[36].mxu0 %v7812_v24  ;;  %4792 = vmatmul.mubr.bf16.gmra.mrb[20].mxu1 %v7812_v24  ;;  %v1045_v22 = vrot.slane %v1043_v0, 7  ;;  %v6523_v23 = vld [vmem:[%s9083_s3 + $0x2a0] ss:$16 sps:$4 sm:$0xff]   ;;  %v1542_v32 = vshrl.u32 %v5530_v3, 16  ;;  %v6526_v48 = vld [vmem:[%s9083_s3 + $0x2a8] ss:$16 sps:$4 sm:$0xff]  }
 0x19e   :  { %v1052_v31 = vrot.slane %v1050_v13, 7  ;;  %v1544_v35 = vshll.u32 %v5530_v3, 16  ;;  %v7869_v44 = vcombine.low %v7819_v16, %v1285_v25  ;;  %v1539_v19 = vrot.slane %v1537_v50, 1  ;;  %4307 = vmatprep.subr.bf16.mxu0 %v6525_v6  ;;  %4872 = vmatprep.subr.bf16.mxu1 %v6528_v55  ;;  %v6533_v16 = vld [vmem:[%s9083_s3 + $0x2c4] ss:$16 sps:$4 sm:$0xff]  }
 0x19f   :  { %1268 = vst [vmem:[#allocation2 + $0x70] sm:$0xf] %v5515_v9  ;;  %1269 = vst [vmem:[#allocation2 + $0x74] sm:$0x1] %v5516_v18  ;;  %v1048_v24 = vor.u32 %v1046_v43, %v1045_v22  ;;  %v854_v54 = vadd.f32 %v7727_v15, %v7613_v46  ;;  %v846_v33 = vadd.f32 %v7732_v30, %v7613_v46  ;;  %v6536_v25 = vld [vmem:[%s9083_s3 + $0x2cc] ss:$16 sps:$4 sm:$0xff]   ;;  %4308 = vmatpush1.bf16.msra.mxu0 %v6523_v23 }
 0x1a0   :  { %v1055_v51 = vor.u32 %v1053_v10, %v1052_v31  ;;  %v1546_v42 = vrot.slane %v1544_v35, 1  ;;  %v857_v7 = vadd.f32 %v7752_v38, %v7613_v46  ;;  %v755_v15 = vadd.f32 %v754_v53, %v7605_v1  ;;  %v7889_v61 = vld [vmem:[#allocation2 + $0x30] sm:$0xf]  ;;  %4873 = vmatpush1.bf16.msra.mxu1 %v6526_v48  ;;  %v7895_v38 = vld [vmem:[#allocation2 + $0x34] sm:$0x1]  ;;  %4309 = vmatprep.subr.bf16.mxu0 %v6533_v16 }
 0x1a1   :  { %v1098_v30 = vsel %vm7063_vm4, 0, %v1048_v24  ;;  %v1540_v56 = vor.u32 %v1539_v19, %v1535_v8  ;;  %v904_v57 = vmax.f32 %v854_v54, 0.0  ;;  %v898_v60 = vmax.f32 %v846_v33, 0.0  ;;  %v6531_v53 = vld [vmem:[%s9083_s3 + $0x2c0] ss:$16 sps:$4 sm:$0xff]   ;;  %4874 = vmatprep.subr.bf16.mxu1 %v6536_v25 }
 0x1a2   :  { %v1117_v2 = vsel %vm7642_vm10, %v1098_v30, 0  ;;  %v1099_v3 = vsel %vm7063_vm4, 0, %v1055_v51  ;;  %v1547_v6 = vor.u32 %v1546_v42, %v1542_v32  ;;  %v907_v55 = vmax.f32 %v857_v7, 0.0  ;;  %v7904_v34 = vld [vmem:[#allocation2 + $0x38] sm:$0xf] }
 0x1a3   :  { %v5517_v63 = vcombine.low %v1117_v2, %v1117_v2  ;;  %v5518_v0 = vcombine.high %v1117_v2, %v1117_v2  ;;  %v1118_v43 = vsel %vm7642_vm10, %v1099_v3, 0  ;;  %939 = vst.msk [vmem:[#allocation3 + $0x1e8] sm:$0xff] %vm910_vm7, %v904_v57  ;;  %935 = vst.msk [vmem:[#allocation3 + $0x1c8] sm:$0xff] %vm910_vm7, %v898_v60  ;;  %v902_v59 = vmax.f32 %v755_v15, 0.0  ;;  %v7906_v13 = vld [vmem:[#allocation2 + $0x3c] sm:$0x1]  ;;  %4310 = vmatpush1.bf16.msra.mxu0 %v6531_v53 }
 0x1a4   :  { %v5519_v10 = vcombine.low %v1118_v43, %v1118_v43  ;;  %v5520_v8 = vcombine.high %v1118_v43, %v1118_v43  ;;  %v5640_v9 = vcombine.low %v1540_v56, %v1547_v6  ;;  %941 = vst.msk [vmem:[#allocation3 + $0x1f8] sm:$0xff] %vm910_vm7, %v907_v55  ;;  %v849_v18 = vadd.f32 %v7759_v21, %v7613_v46  ;;  %v6534_v22 = vld [vmem:[%s9083_s3 + $0x2c8] ss:$16 sps:$4 sm:$0xff]   ;;  %v6540_v50 = vld [vmem:[%s9083_s3 + $0x2e4] ss:$16 sps:$4 sm:$0xff]  }
 0x1a5   :  { %v6543_v23 = vld [vmem:[%s9083_s3 + $0x2ec] ss:$16 sps:$4 sm:$0xff]   ;;  %1270 = vst [vmem:[#allocation2 + $0x78] sm:$0xf] %v5517_v63  ;;  %1271 = vst [vmem:[#allocation2 + $0x7c] sm:$0x1] %v5518_v0  ;;  %v956_v31 = vpack.c.bf16 %v902_v59, %v902_v59  ;;  %v757_v32 = vadd.f32 %v7853_v62, %v7609_v41  ;;  %v759_v46 = vadd.f32 %v7857_v5, %v7605_v1  ;;  %4875 = vmatpush1.bf16.msra.mxu1 %v6534_v22 }
 0x1a6   :  { %v761_v21 = vadd.f32 %v7861_v14, %v7609_v41  ;;  %v7926_v35 = vld [vmem:[#allocation2 + $0x58] sm:$0xf]  ;;  %v7928_v48 = vld [vmem:[#allocation2 + $0x5c] sm:$0x1]  ;;  %v7930_v24 = vld [vmem:[#allocation2 + $0x60] sm:$0xf]  ;;  %4236 = vmatprep.mubr.bf16.mxu0 %v5640_v9  ;;  %4801 = vmatprep.mubr.bf16.mxu1 %v5640_v9  ;;  %v5531_v62 = vcombine.low %v7889_v61, %v7895_v38  ;;  %v5532_v1 = vcombine.low %v7904_v34, %v7906_v13 }
 0x1a7   :  { %1272 = vst [vmem:[#allocation2 + $0x80] sm:$0xf] %v5519_v10  ;;  %1273 = vst [vmem:[#allocation2 + $0x84] sm:$0x1] %v5520_v8  ;;  %v901_v19 = vmax.f32 %v849_v18, 0.0  ;;  %v7949_v33 = vrot.slane %v5541_v26, 1  ;;  %4237 = vmatmul.mubr.bf16.gmra.mrb[40].mxu0 %v7869_v44  ;;  %4802 = vmatmul.mubr.bf16.gmra.mrb[24].mxu1 %v7869_v44  ;;  %v7959_v27 = vor.u32 %v7842_v58, %v1563_v49 }
 0x1a8   :  { %v6538_v41 = vld [vmem:[%s9083_s3 + $0x2e0] ss:$16 sps:$4 sm:$0xff]   ;;  %v6541_v5 = vld [vmem:[%s9083_s3 + $0x2e8] ss:$16 sps:$4 sm:$0xff]   ;;  %v7944_v54 = vld [vmem:[#allocation2 + $0x64] sm:$0x1]  ;;  %4311 = vmatprep.subr.bf16.mxu0 %v6540_v50  ;;  %4876 = vmatprep.subr.bf16.mxu1 %v6543_v23  ;;  %v5534_v60 = vcombine.low %v7926_v35, %v7928_v48 }
 0x1a9   :  { %v7942_v14 = vld [vmem:[#allocation2 + $0x68] sm:$0xf]  ;;  %v1057_v16 = vshrl.u32 %v956_v31, 16  ;;  %v903_v25 = vmax.f32 %v757_v32, 0.0  ;;  %v905_v51 = vmax.f32 %v759_v46, 0.0  ;;  %v1060_v7 = vshll.u32 %v956_v31, 16  ;;  %4312 = vmatpush1.bf16.msra.mxu0 %v6538_v41  ;;  %4877 = vmatpush1.bf16.msra.mxu1 %v6541_v5 }
 0x1aa   :  { %v7953_v42 = vld [vmem:[#allocation2 + $0x6c] sm:$0x1]  ;;  %937 = vst.msk [vmem:[#allocation3 + $0x1d8] sm:$0xff] %vm910_vm7, %v901_v19  ;;  %v906_v15 = vmax.f32 %v761_v21, 0.0  ;;  %v1551_v30 = vshll.u32 %v5531_v62, 16  ;;  %v1558_v57 = vshll.u32 %v5532_v1, 16  ;;  %v7974_v3 = vcombine.low %v7930_v24, %v7944_v54  ;;  %4313 = vmatprep.subr.bf16.mxu0 %v6548_v11  ;;  %4878 = vmatprep.subr.bf16.mxu1 %v6551_v52 }
 0x1ab   :  { %v1313_v26 = vld [vmem:[#allocation2 + $0x8] sm:$0xe]  ;;  %v1059_v44 = vrot.slane %v1057_v16, 7  ;;  %938 = vst [vmem:[#allocation3 + $0x1e0] sm:$0xff] %v903_v25  ;;  %v957_v56 = vpack.c.bf16 %v905_v51, %v905_v51  ;;  %v1549_v49 = vshrl.u32 %v5531_v62, 16  ;;  %v5536_v6 = vcombine.low %v7942_v14, %v7953_v42 }
 0x1ac   :  { %940 = vst [vmem:[#allocation3 + $0x1f0] sm:$0xff] %v906_v15  ;;  %v1553_v58 = vrot.slane %v1551_v30, 1  ;;  %v6546_v2 = vld [vmem:[%s9083_s3 + $0x300] ss:$16 sps:$4 sm:$0xff]   ;;  %v1556_v63 = vshrl.u32 %v5532_v1, 16  ;;  %v1560_v0 = vrot.slane %v1558_v57, 1  ;;  %v5542_v59 = vcombine.low %v1313_v26, %v7684_v45 }
 0x1ad   :  { %v1062_v55 = vor.u32 %v1060_v7, %v1059_v44  ;;  %v1064_v53 = vshrl.u32 %v957_v56, 16  ;;  %v6549_v43 = vld [vmem:[%s9083_s3 + $0x308] ss:$16 sps:$4 sm:$0xff]   ;;  %v1067_v10 = vshll.u32 %v957_v56, 16  ;;  %v1572_v9 = vshll.u32 %v5534_v60, 16  ;;  %4314 = vmatpush1.bf16.msra.mxu0 %v6546_v2 }
 0x1ae   :  { %v1554_v8 = vor.u32 %v1553_v58, %v1549_v49  ;;  %v7982_v18 = vld [vmem:[#allocation2 + $0x70] sm:$0xf]  ;;  %v7984_v22 = vld [vmem:[#allocation2 + $0x74] sm:$0x1]  ;;  %v1561_v31 = vor.u32 %v1560_v0, %v1556_v63  ;;  %v1579_v32 = vshll.u32 %v7974_v3, 16  ;;  %v1570_v21 = vshrl.u32 %v5534_v60, 16  ;;  %4879 = vmatpush1.bf16.msra.mxu1 %v6549_v43 }
 0x1af   :  { %v1100_v50 = vsel %vm7063_vm4, 0, %v1062_v55  ;;  %v1066_v23 = vrot.slane %v1064_v53, 7  ;;  %v7989_v46 = vld [vmem:[#allocation2 + $0x78] sm:$0xf]  ;;  %v1574_v19 = vrot.slane %v1572_v9, 1  ;;  %v1586_v62 = vshll.u32 %v5536_v6, 16 }
 0x1b0   :  { %v1119_v45 = vsel %vm7642_vm10, %v1100_v50, 0  ;;  %v7993_v1 = vld [vmem:[#allocation2 + $0x7c] sm:$0x1]  ;;  %v5649_v25 = vcombine.low %v1554_v8, %v1561_v31  ;;  %v6555_v51 = vld [vmem:[%s9083_s3 + $0x324] ss:$16 sps:$4 sm:$0xff]   ;;  %v5648_v15 = vcombine.low %v7889_v61, %v7904_v34  ;;  %v1584_v11 = vshrl.u32 %v5536_v6, 16 }
 0x1b1   :  { %v5521_v41 = vcombine.low %v1119_v45, %v1119_v45  ;;  %v5522_v5 = vcombine.high %v1119_v45, %v1119_v45  ;;  %v1069_v16 = vor.u32 %v1067_v10, %v1066_v23  ;;  %v6558_v7 = vld [vmem:[%s9083_s3 + $0x32c] ss:$16 sps:$4 sm:$0xff]   ;;  %v1575_v30 = vor.u32 %v1574_v19, %v1570_v21  ;;  %v6553_v56 = vld [vmem:[%s9083_s3 + $0x320] ss:$16 sps:$4 sm:$0xff]   ;;  %v6556_v61 = vld [vmem:[%s9083_s3 + $0x328] ss:$16 sps:$4 sm:$0xff]   ;;  %4315 = vmatprep.subr.bf16.mxu0 %v6555_v51 }
 0x1b2   :  { %v1588_v26 = vrot.slane %v1586_v62, 1  ;;  %4246 = vmatprep.mubr.bf16.mxu0 %v5649_v25  ;;  %4811 = vmatprep.mubr.bf16.mxu1 %v5649_v25  ;;  %v1581_v34 = vrot.slane %v1579_v32, 1  ;;  %v8013_v57 = vcombine.low %v7982_v18, %v7984_v22  ;;  %v5538_v60 = vcombine.low %v7989_v46, %v7993_v1  ;;  %v6563_v58 = vld [vmem:[%s9083_s3 + $0x344] ss:$16 sps:$4 sm:$0xff]   ;;  %v6566_v2 = vld [vmem:[%s9083_s3 + $0x34c] ss:$16 sps:$4 sm:$0xff]  }
 0x1b3   :  { %1274 = vst [vmem:[#allocation2 + $0x88] sm:$0xf] %v5521_v41  ;;  %1275 = vst [vmem:[#allocation2 + $0x8c] sm:$0x1] %v5522_v5  ;;  %v1101_v44 = vsel %vm7063_vm4, 0, %v1069_v16  ;;  %v1667_v28 = vrot.slane %v5542_v59, 1  ;;  %4247 = vmatmul.mubr.bf16.gmra.mrb[44].mxu0 %v5648_v15  ;;  %4812 = vmatmul.mubr.bf16.gmra.mrb[28].mxu1 %v5648_v15  ;;  %v5658_v49 = vcombine.low %v7959_v27, %v1575_v30 }
 0x1b4   :  { %v1120_v52 = vsel %vm7642_vm10, %v1101_v44, 0  ;;  %4880 = vmatprep.subr.bf16.mxu1 %v6558_v7  ;;  %v1577_v53 = vshrl.u32 %v7974_v3, 16  ;;  %v1589_v17 = vor.u32 %v1588_v26, %v1584_v11  ;;  %v1600_v63 = vshll.u32 %v5538_v60, 16  ;;  %4316 = vmatpush1.bf16.msra.mxu0 %v6553_v56  ;;  %v6561_v0 = vld [vmem:[%s9083_s3 + $0x340] ss:$16 sps:$4 sm:$0xff]  }
 0x1b5   :  { %v5523_v6 = vcombine.low %v1120_v52, %v1120_v52  ;;  %v5524_v55 = vcombine.high %v1120_v52, %v1120_v52  ;;  %4256 = vmatprep.mubr.bf16.mxu0 %v5658_v49  ;;  %4821 = vmatprep.mubr.bf16.mxu1 %v5658_v49  ;;  %v6564_v43 = vld [vmem:[%s9083_s3 + $0x348] ss:$16 sps:$4 sm:$0xff]   ;;  %v1593_v59 = vshll.u32 %v8013_v57, 16  ;;  %v8034_v3 = vld [vmem:[#allocation2 + $0x80] sm:$0xf]  ;;  %v8039_v8 = vcombine.low %v7949_v33, %v1667_v28 }
 0x1b6   :  { %4881 = vmatpush1.bf16.msra.mxu1 %v6556_v61  ;;  %v1582_v27 = vor.u32 %v1581_v34, %v1577_v53  ;;  %4317 = vmatprep.subr.bf16.mxu0 %v6563_v58  ;;  %v8036_v10 = vld [vmem:[#allocation2 + $0x84] sm:$0x1]  ;;  %v6568_v50 = vld [vmem:[%s9083_s3 + $0x360] ss:$16 sps:$4 sm:$0xff]   ;;  %v1602_v31 = vrot.slane %v1600_v63, 1  ;;  %v1598_v5 = vshrl.u32 %v5538_v60, 16 }
 0x1b7   :  { %1276 = vst [vmem:[#allocation2 + $0x90] sm:$0xf] %v5523_v6  ;;  %1277 = vst [vmem:[#allocation2 + $0x94] sm:$0x1] %v5524_v55  ;;  %4882 = vmatprep.subr.bf16.mxu1 %v6566_v2  ;;  %v6570_v23 = vld [vmem:[%s9083_s3 + $0x364] ss:$16 sps:$4 sm:$0xff]   ;;  %v8060_v16 = vcombine.low %v8034_v3, %v8036_v10 }
 0x1b8   :  { %v5667_v9 = vcombine.low %v1582_v27, %v1589_v17  ;;  %v6934_v32 = vld [vmem:[#allocation2 + $0x50] sm:$0xf]  ;;  %v6573_v21 = vld [vmem:[%s9083_s3 + $0x36c] ss:$16 sps:$4 sm:$0xff]   ;;  %4318 = vmatpush1.bf16.msra.mxu0 %v6561_v0  ;;  %v6571_v62 = vld [vmem:[%s9083_s3 + $0x368] ss:$16 sps:$4 sm:$0xff]   ;;  %v1603_v11 = vor.u32 %v1602_v31, %v1598_v5  ;;  %v5666_v27 = vcombine.low %v7930_v24, %v7942_v14 }
 0x1b9   :  { %v5657_v45 = vcombine.low %v6934_v32, %v7926_v35  ;;  %v1595_v41 = vrot.slane %v1593_v59, 1  ;;  %v1314_v25 = vld [vmem:[#allocation2 + $0x10] sm:$0xe]  ;;  %v6578_v51 = vld [vmem:[%s9083_s3 + $0x384] ss:$16 sps:$4 sm:$0xff]   ;;  %v1591_v30 = vshrl.u32 %v8013_v57, 16  ;;  %4319 = vmatprep.subr.bf16.mxu0 %v6570_v23 }
 0x1ba   :  { %v8051_v19 = vld [vmem:[#allocation2 + $0x88] sm:$0xf]  ;;  %v8053_v33 = vld [vmem:[#allocation2 + $0x8c] sm:$0x1]  ;;  %4883 = vmatpush1.bf16.msra.mxu1 %v6564_v43  ;;  %v1315_v15 = vld [vmem:[#allocation2 + $0x18] sm:$0xe]  ;;  %v5543_v34 = vcombine.low %v1314_v25, %v7757_v29 }
 0x1bb   :  { %v5540_v35 = vcombine.low %v8051_v19, %v8053_v33  ;;  %4257 = vmatmul.mubr.bf16.gmra.mrb[48].mxu0 %v5657_v45  ;;  %4822 = vmatmul.mubr.bf16.gmra.mrb[32].mxu1 %v5657_v45  ;;  %v6581_v7 = vld [vmem:[%s9083_s3 + $0x38c] ss:$16 sps:$4 sm:$0xff]   ;;  %v1316_v44 = vld [vmem:[#allocation2 + $0x20] sm:$0xe]  ;;  %v1317_v56 = vld [vmem:[#allocation2 + $0x28] sm:$0xe]  ;;  %v1596_v60 = vor.u32 %v1595_v41, %v1591_v30  ;;  %v5544_v52 = vcombine.low %v1315_v15, %v7781_v12 }
 0x1bc   :  { %4266 = vmatprep.mubr.bf16.mxu0 %v5667_v9  ;;  %4831 = vmatprep.mubr.bf16.mxu1 %v5667_v9  ;;  %v6576_v61 = vld [vmem:[%s9083_s3 + $0x380] ss:$16 sps:$4 sm:$0xff]   ;;  %v6579_v28 = vld [vmem:[%s9083_s3 + $0x388] ss:$16 sps:$4 sm:$0xff]   ;;  %v1607_v57 = vshll.u32 %v8060_v16, 16  ;;  %v5545_v29 = vcombine.low %v1316_v44, %v7827_v20  ;;  %v5546_v2 = vcombine.low %v1317_v56, %v7831_v47  ;;  %v1668_v17 = vrot.slane %v5543_v34, 1 }
 0x1bd   :  { %v1614_v26 = vshll.u32 %v5540_v35, 16  ;;  %4884 = vmatprep.subr.bf16.mxu1 %v6573_v21  ;;  %4320 = vmatpush1.bf16.msra.mxu0 %v6568_v50  ;;  %v1320_v49 = vld [vmem:[#allocation2 + $0x50] sm:$0xe]  ;;  %v6585_v58 = vld [vmem:[%s9083_s3 + $0x3a4] ss:$16 sps:$4 sm:$0xff]   ;;  %v5676_v6 = vcombine.low %v1596_v60, %v1603_v11  ;;  %v1669_v63 = vrot.slane %v5544_v52, 1 }
 0x1be   :  { %4885 = vmatpush1.bf16.msra.mxu1 %v6571_v62  ;;  %4321 = vmatprep.subr.bf16.mxu0 %v6578_v51  ;;  %v6583_v55 = vld [vmem:[%s9083_s3 + $0x3a0] ss:$16 sps:$4 sm:$0xff]   ;;  %v6588_v0 = vld [vmem:[%s9083_s3 + $0x3ac] ss:$16 sps:$4 sm:$0xff]   ;;  %v1670_v43 = vrot.slane %v5545_v29, 1  ;;  %v1671_v20 = vrot.slane %v5546_v2, 1 }
 0x1bf   :  { %4886 = vmatprep.subr.bf16.mxu1 %v6581_v7  ;;  %v1616_v53 = vrot.slane %v1614_v26, 1  ;;  %v1318_v12 = vld [vmem:[#allocation2 + $0x30] sm:$0xe]  ;;  %v1319_v59 = vld [vmem:[#allocation2 + $0x38] sm:$0xe]  ;;  %v1609_v23 = vrot.slane %v1607_v57, 1  ;;  %v8096_v32 = vcombine.low %v1668_v17, %v1669_v63  ;;  %v5675_v57 = vcombine.low %v7982_v18, %v7989_v46 }
 0x1c0   :  { %v6935_v47 = vld [vmem:[#allocation2 + $0x54] sm:$0x1]  ;;  %v6586_v50 = vld [vmem:[%s9083_s3 + $0x3a8] ss:$16 sps:$4 sm:$0xff]   ;;  %v1612_v31 = vshrl.u32 %v5540_v35, 16  ;;  %v8104_v21 = vcombine.low %v1670_v43, %v1671_v20  ;;  %v5547_v62 = vcombine.low %v1318_v12, %v7895_v38  ;;  %v1605_v41 = vshrl.u32 %v8060_v16, 16 }
 0x1c1   :  { %v5549_v9 = vcombine.low %v1320_v49, %v6935_v47  ;;  %4322 = vmatpush1.bf16.msra.mxu0 %v6576_v61  ;;  %v1321_v24 = vld [vmem:[#allocation2 + $0x58] sm:$0xe]  ;;  %v6593_v14 = vld [vmem:[%s9083_s3 + $0x3c4] ss:$16 sps:$4 sm:$0xff]   ;;  %v6596_v45 = vld [vmem:[%s9083_s3 + $0x3cc] ss:$16 sps:$4 sm:$0xff]   ;;  %v5548_v35 = vcombine.low %v1319_v59, %v7906_v13  ;;  %v5684_v59 = vcombine.low %v8034_v3, %v8051_v19 }
 0x1c2   :  { %4887 = vmatpush1.bf16.msra.mxu1 %v6579_v28  ;;  %v1617_v5 = vor.u32 %v1616_v53, %v1612_v31  ;;  %v1322_v25 = vld [vmem:[#allocation2 + $0x60] sm:$0xe]  ;;  %4323 = vmatprep.subr.bf16.mxu0 %v6585_v58  ;;  %v5550_v51 = vcombine.low %v1321_v24, %v7928_v48  ;;  %v1323_v15 = vld [vmem:[#allocation2 + $0x68] sm:$0xe]  ;;  %v1610_v30 = vor.u32 %v1609_v23, %v1605_v41  ;;  %v1672_v11 = vrot.slane %v5547_v62, 1 }
 0x1c3   :  { %4267 = vmatmul.mubr.bf16.gmra.mrb[52].mxu0 %v5666_v27  ;;  %4832 = vmatmul.mubr.bf16.gmra.mrb[36].mxu1 %v5666_v27  ;;  %v1674_v7 = vrot.slane %v5549_v9, 1  ;;  %v6591_v38 = vld [vmem:[%s9083_s3 + $0x3c0] ss:$16 sps:$4 sm:$0xff]   ;;  %v6594_v16 = vld [vmem:[%s9083_s3 + $0x3c8] ss:$16 sps:$4 sm:$0xff]   ;;  %v1673_v13 = vrot.slane %v5548_v35, 1  ;;  %v5551_v48 = vcombine.low %v1322_v25, %v7944_v54  ;;  %v5552_v28 = vcombine.low %v1323_v15, %v7953_v42 }
 0x1c4   :  { %4276 = vmatprep.mubr.bf16.mxu0 %v5676_v6  ;;  %4841 = vmatprep.mubr.bf16.mxu1 %v5676_v6  ;;  %v1675_v26 = vrot.slane %v5550_v51, 1  ;;  %v1324_v44 = vld [vmem:[#allocation2 + $0x70] sm:$0xe]  ;;  %v1325_v56 = vld [vmem:[#allocation2 + $0x78] sm:$0xe]  ;;  %v5685_v61 = vcombine.low %v1610_v30, %v1617_v5 }
 0x1c5   :  { %4888 = vmatprep.subr.bf16.mxu1 %v6588_v0  ;;  %4324 = vmatpush1.bf16.msra.mxu0 %v6583_v55  ;;  %v6601_v34 = vld [vmem:[%s9083_s3 + $0x3e0] ss:$16 sps:$4 sm:$0xff]   ;;  %v8120_v60 = vcombine.low %v1672_v11, %v1673_v13  ;;  %v6603_v52 = vld [vmem:[%s9083_s3 + $0x3e4] ss:$16 sps:$4 sm:$0xff]   ;;  %v6606_v54 = vld [vmem:[%s9083_s3 + $0x3ec] ss:$16 sps:$4 sm:$0xff]   ;;  %v5553_v18 = vcombine.low %v1324_v44, %v7984_v22  ;;  %v5554_v46 = vcombine.low %v1325_v56, %v7993_v1 }
 0x1c6   :  { %4889 = vmatpush1.bf16.msra.mxu1 %v6586_v50  ;;  %4325 = vmatprep.subr.bf16.mxu0 %v6593_v14  ;;  %v8131_v49 = vcombine.low %v1674_v7, %v1675_v26  ;;  %v1326_v58 = vld [vmem:[#allocation2 + $0x80] sm:$0xe]  ;;  %v6604_v42 = vld [vmem:[%s9083_s3 + $0x3e8] ss:$16 sps:$4 sm:$0xff]   ;;  %v1676_v29 = vrot.slane %v5551_v48, 1  ;;  %v1677_v2 = vrot.slane %v5552_v28, 1 }
 0x1c7   :  { %4890 = vmatprep.subr.bf16.mxu1 %v6596_v45  ;;  %v1327_v6 = vld [vmem:[#allocation2 + $0x88] sm:$0xe]  ;;  %v6609_v55 = vld [vmem:[%s9083_s3 + $0x404] ss:$16 sps:$4 sm:$0xff]   ;;  %v6612_v53 = vld [vmem:[%s9083_s3 + $0x40c] ss:$16 sps:$4 sm:$0xff]   ;;  %v5555_v22 = vcombine.low %v1326_v58, %v8036_v10 }
 0x1c8   :  { %v8144_v17 = vcombine.low %v1676_v29, %v1677_v2  ;;  %v1678_v63 = vrot.slane %v5553_v18, 1  ;;  %v1679_v12 = vrot.slane %v5554_v46, 1  ;;  %v5556_v1 = vcombine.low %v1327_v6, %v8053_v33  ;;  %v8150_v0 = vld [vmem:[#allocation2 + $0x10] sm:$0xf]  ;;  %v8154_v47 = vld [vmem:[#allocation2 + $0x8] sm:$0xf] }
 0x1c9   :  { %4326 = vmatpush1.bf16.msra.mxu0 %v6591_v38  ;;  %v1680_v43 = vrot.slane %v5555_v22, 1  ;;  %v5624_v33 = vcombine.low %v8154_v47, %v8150_v0  ;;  %v6607_v9 = vld [vmem:[%s9083_s3 + $0x400] ss:$16 sps:$4 sm:$0xff]   ;;  %v6610_v50 = vld [vmem:[%s9083_s3 + $0x408] ss:$16 sps:$4 sm:$0xff]  }
 0x1ca   :  { %4891 = vmatpush1.bf16.msra.mxu1 %v6594_v16  ;;  %4327 = vmatprep.subr.bf16.mxu0 %v6603_v52  ;;  %v8148_v27 = vcombine.low %v1678_v63, %v1679_v12  ;;  %v1681_v20 = vrot.slane %v5556_v1, 1  ;;  %v8166_v3 = vld [vmem:[#allocation2 + $0x20] sm:$0xf]  ;;  %v8168_v19 = vld [vmem:[#allocation2 + $0x18] sm:$0xf] }
 0x1cb   :  { %4277 = vmatmul.mubr.bf16.gmra.mrb[56].mxu0 %v5675_v57  ;;  %4842 = vmatmul.mubr.bf16.gmra.mrb[40].mxu1 %v5675_v57  ;;  %v6618_v23 = vld [vmem:[%s9083_s3 + $0x424] ss:$16 sps:$4 sm:$0xff]   ;;  %v6621_v31 = vld [vmem:[%s9083_s3 + $0x42c] ss:$16 sps:$4 sm:$0xff]   ;;  %v5633_v24 = vcombine.low %v8168_v19, %v8166_v3  ;;  %v6616_v14 = vld [vmem:[%s9083_s3 + $0x420] ss:$16 sps:$4 sm:$0xff]  }
 0x1cc   :  { %4286 = vmatprep.mubr.bf16.mxu0 %v5685_v61  ;;  %4851 = vmatprep.mubr.bf16.mxu1 %v5685_v61  ;;  %v8156_v10 = vcombine.low %v1680_v43, %v1681_v20  ;;  %v6619_v45 = vld [vmem:[%s9083_s3 + $0x428] ss:$16 sps:$4 sm:$0xff]   ;;  %v6624_v62 = vld [vmem:[%s9083_s3 + $0x444] ss:$16 sps:$4 sm:$0xff]   ;;  %v6622_v41 = vld [vmem:[%s9083_s3 + $0x440] ss:$16 sps:$4 sm:$0xff]  }
 0x1cd   :  { %4892 = vmatprep.subr.bf16.mxu1 %v6606_v54  ;;  %4328 = vmatpush1.bf16.msra.mxu0 %v6601_v34  ;;  %v6625_v5 = vld [vmem:[%s9083_s3 + $0x448] ss:$16 sps:$4 sm:$0xff]   ;;  %v8198_v35 = vld [vmem:[#allocation2 + $0x30] sm:$0xf]  ;;  %v6633_v51 = vld [vmem:[%s9083_s3 + $0x464] ss:$16 sps:$4 sm:$0xff]  }
 0x1ce   :  { %4893 = vmatpush1.bf16.msra.mxu1 %v6604_v42  ;;  %4410 = vmatprep.subr.bf16.mxu0 %v6609_v55  ;;  %v8200_v25 = vld [vmem:[#allocation2 + $0x28] sm:$0xf]  ;;  %v6636_v7 = vld [vmem:[%s9083_s3 + $0x46c] ss:$16 sps:$4 sm:$0xff]   ;;  %v6631_v30 = vld [vmem:[%s9083_s3 + $0x460] ss:$16 sps:$4 sm:$0xff]  }
 0x1cf   :  { %4975 = vmatprep.subr.bf16.mxu1 %v6612_v53  ;;  %v5642_v15 = vcombine.low %v8200_v25, %v8198_v35  ;;  %v6634_v38 = vld [vmem:[%s9083_s3 + $0x468] ss:$16 sps:$4 sm:$0xff]   ;;  %v6639_v16 = vld [vmem:[%s9083_s3 + $0x484] ss:$16 sps:$4 sm:$0xff]   ;;  %v8226_v13 = vld [vmem:[#allocation2 + $0x1c] sm:$0x1] }
 0x1d0   :  { %v8224_v11 = vld [vmem:[#allocation2 + $0x14] sm:$0x1]  ;;  %v1410_v26 = vld [vmem:[#allocation2 + $0x10] sm:$0xe]  ;;  %v1411_v48 = vld [vmem:[#allocation2 + $0x18] sm:$0xe] }
 0x1d1   :  { %v6637_v44 = vld [vmem:[%s9083_s3 + $0x480] ss:$16 sps:$4 sm:$0xff]   ;;  %v6640_v56 = vld [vmem:[%s9083_s3 + $0x488] ss:$16 sps:$4 sm:$0xff]   ;;  %v5605_v34 = vcombine.low %v1410_v26, %v8224_v11  ;;  %v5606_v28 = vcombine.low %v1411_v48, %v8226_v13  ;;  %v6648_v57 = vld [vmem:[%s9083_s3 + $0x4a4] ss:$16 sps:$4 sm:$0xff]  }
 0x1d2   :  { %v8234_v61 = vld [vmem:[#allocation2 + $0x40] sm:$0xf]  ;;  %v8241_v52 = vld [vmem:[#allocation2 + $0x38] sm:$0xf]  ;;  %v6651_v54 = vld [vmem:[%s9083_s3 + $0x4ac] ss:$16 sps:$4 sm:$0xff]  }
 0x1d3   :  { %4287 = vmatmul.mubr.bf16.gmra.mrb[60].mxu0 %v5684_v59  ;;  %4852 = vmatmul.mubr.bf16.gmra.mrb[44].mxu1 %v5684_v59  ;;  %v2178_v58 = vrot.slane %v5605_v34, 1  ;;  %v2179_v42 = vrot.slane %v5606_v28, 1  ;;  %v5651_v29 = vcombine.low %v8241_v52, %v8234_v61  ;;  %v6646_v2 = vld [vmem:[%s9083_s3 + $0x4a0] ss:$16 sps:$4 sm:$0xff]   ;;  %v6649_v18 = vld [vmem:[%s9083_s3 + $0x4a8] ss:$16 sps:$4 sm:$0xff]  }
 0x1d4   :  { %4329 = vmatprep.mubr.bf16.mxu0 %v5624_v33  ;;  %4894 = vmatprep.mubr.bf16.mxu1 %v5624_v33  ;;  %v6657_v6 = vld [vmem:[%s9083_s3 + $0x4cc] ss:$16 sps:$4 sm:$0xff]   ;;  %v6652_v55 = vld [vmem:[%s9083_s3 + $0x4c0] ss:$16 sps:$4 sm:$0xff]   ;;  %v6655_v53 = vld [vmem:[%s9083_s3 + $0x4c8] ss:$16 sps:$4 sm:$0xff]  }
 0x1d5   :  { %v8256_v46 = vcombine.low %v2178_v58, %v2179_v42  ;;  %v8270_v63 = vld [vmem:[#allocation2 + $0x60] sm:$0xf]  ;;  %v8272_v12 = vld [vmem:[#allocation2 + $0x58] sm:$0xf]  ;;  %v6665_v22 = vld [vmem:[%s9083_s3 + $0x4e4] ss:$16 sps:$4 sm:$0xff]  }
 0x1d6   :  { %v6668_v1 = vld [vmem:[%s9083_s3 + $0x4ec] ss:$16 sps:$4 sm:$0xff]   ;;  %v5660_v43 = vcombine.low %v8272_v12, %v8270_v63  ;;  %v6663_v20 = vld [vmem:[%s9083_s3 + $0x4e0] ss:$16 sps:$4 sm:$0xff]   ;;  %v6666_v59 = vld [vmem:[%s9083_s3 + $0x4e8] ss:$16 sps:$4 sm:$0xff]  }
 0x1d7   :  { %9103 = vst [vmem:[#allocation7_spill] sm:$0xff] %v8256_v46  ;;  %v6671_v33 = vld [vmem:[%s9083_s3 + $0x504] ss:$16 sps:$4 sm:$0xff]   ;;  %v6700_v26 = vld [vmem:[%s9083_s3 + $0x568] ss:$16 sps:$4 sm:$0xff]  }
 0x1d8   :  { %v6702_v48 = vld [vmem:[%s9083_s3 + $0x56c] ss:$16 sps:$4 sm:$0xff]   ;;  %v6705_v34 = vld [vmem:[%s9083_s3 + $0x584] ss:$16 sps:$4 sm:$0xff]   ;;  %v1419_v39 = vld [vmem:[#allocation2 + $0x68] sm:$0xe] }
 0x1d9   :  { %v6708_v28 = vld [vmem:[%s9083_s3 + $0x58c] ss:$16 sps:$4 sm:$0xff]   ;;  %v1422_v58 = vld [vmem:[#allocation2 + $0x80] sm:$0xe] }
 0x1db   :  { %4330 = vmatmul.mubr.bf16.vlgmr.msra.gmra.mrb[32].mxu0 %v8039_v8  ;;  %4895 = vmatmul.mubr.bf16.vlgmr.msra.gmra.mrb[16].mxu1 %v8039_v8  ;;  %v6627_v8 = vld [vmem:[%s9083_s3 + $0x44c] ss:$16 sps:$4 sm:$0xff]  }
 0x1dc   :  { %4411 = vmatpush1.bf16.msra.mxu0 %v6607_v9  ;;  %4976 = vmatpush1.bf16.msra.mxu1 %v6610_v50  ;;  %v6669_v9 = vld [vmem:[%s9083_s3 + $0x500] ss:$16 sps:$4 sm:$0xff]   ;;  %v6672_v50 = vld [vmem:[%s9083_s3 + $0x508] ss:$16 sps:$4 sm:$0xff]  }
 0x1dd   :  { %4339 = vmatprep.mubr.bf16.mxu0 %v5633_v24  ;;  %4904 = vmatprep.mubr.bf16.mxu1 %v5633_v24  ;;  %v6682_v24 = vld [vmem:[%s9083_s3 + $0x524] ss:$16 sps:$4 sm:$0xff]  }
 0x1de   :  { %4412 = vmatprep.subr.bf16.mxu0 %v6618_v23  ;;  %4977 = vmatprep.subr.bf16.mxu1 %v6621_v31  ;;  %v8302_v23 = vld [vmem:[#allocation2 + $0x70] sm:$0xf]  ;;  %v8304_v31 = vld [vmem:[#allocation2 + $0x68] sm:$0xf] }
 0x1e0   :  { %4413 = vmatpush1.bf16.msra.mxu0 %v6616_v14  ;;  %4978 = vmatpush1.bf16.msra.mxu1 %v6619_v45  ;;  %v6685_v14 = vld [vmem:[%s9083_s3 + $0x52c] ss:$16 sps:$4 sm:$0xff]   ;;  %v5669_v45 = vcombine.low %v8304_v31, %v8302_v23 }
 0x1e1   :  { %4414 = vmatprep.subr.bf16.mxu0 %v6624_v62  ;;  %4979 = vmatprep.subr.bf16.mxu1 %v6627_v8  ;;  %v8316_v62 = vld [vmem:[#allocation2 + $0xc] sm:$0x1]  ;;  %v6680_v8 = vld [vmem:[%s9083_s3 + $0x520] ss:$16 sps:$4 sm:$0xff]  }
 0x1e3   :  { %4340 = vmatmul.mubr.bf16.gmra.mrb[36].mxu0 %v8096_v32  ;;  %4905 = vmatmul.mubr.bf16.gmra.mrb[20].mxu1 %v8096_v32  ;;  %v6642_v32 = vld [vmem:[%s9083_s3 + $0x48c] ss:$16 sps:$4 sm:$0xff]  }
 0x1e4   :  { %4415 = vmatpush1.bf16.msra.mxu0 %v6622_v41  ;;  %4980 = vmatpush1.bf16.msra.mxu1 %v6625_v5  ;;  %v6683_v41 = vld [vmem:[%s9083_s3 + $0x528] ss:$16 sps:$4 sm:$0xff]   ;;  %v8324_v5 = vld [vmem:[#allocation2 + $0x14] sm:$0x1] }
 0x1e5   :  { %4349 = vmatprep.mubr.bf16.mxu0 %v5642_v15  ;;  %4914 = vmatprep.mubr.bf16.mxu1 %v5642_v15  ;;  %v8338_v15 = vcombine.low %v8150_v0, %v8324_v5  ;;  %v8351_v0 = vld [vmem:[#allocation2 + $0x78] sm:$0xf] }
 0x1e6   :  { %4416 = vmatprep.subr.bf16.mxu0 %v6633_v51  ;;  %4981 = vmatprep.subr.bf16.mxu1 %v6636_v7  ;;  %v6691_v51 = vld [vmem:[%s9083_s3 + $0x54c] ss:$16 sps:$4 sm:$0xff]   ;;  %v8334_v7 = vcombine.low %v8154_v47, %v8316_v62  ;;  %v6699_v47 = vld [vmem:[%s9083_s3 + $0x564] ss:$16 sps:$4 sm:$0xff]  }
 0x1e8   :  { %4417 = vmatpush1.bf16.msra.mxu0 %v6631_v30  ;;  %4982 = vmatpush1.bf16.msra.mxu1 %v6634_v38  ;;  %v6686_v30 = vld [vmem:[%s9083_s3 + $0x540] ss:$16 sps:$4 sm:$0xff]   ;;  %v6689_v38 = vld [vmem:[%s9083_s3 + $0x548] ss:$16 sps:$4 sm:$0xff]  }
 0x1e9   :  { %4418 = vmatprep.subr.bf16.mxu0 %v6639_v16  ;;  %4983 = vmatprep.subr.bf16.mxu1 %v6642_v32  ;;  %v8346_v16 = vld [vmem:[#allocation2 + $0x80] sm:$0xf] }
 0x1ea   :  { %v6697_v32 = vld [vmem:[%s9083_s3 + $0x560] ss:$16 sps:$4 sm:$0xff]  }
 0x1eb   :  { %4350 = vmatmul.mubr.bf16.gmra.mrb[40].mxu0 %v8104_v21  ;;  %4915 = vmatmul.mubr.bf16.gmra.mrb[24].mxu1 %v8104_v21  ;;  %v6654_v21 = vld [vmem:[%s9083_s3 + $0x4c4] ss:$16 sps:$4 sm:$0xff]  }
 0x1ec   :  { %4419 = vmatpush1.bf16.msra.mxu0 %v6637_v44  ;;  %4984 = vmatpush1.bf16.msra.mxu1 %v6640_v56  ;;  %v8362_v44 = vld [vmem:[#allocation2 + $0x24] sm:$0x1]  ;;  %v5678_v56 = vcombine.low %v8351_v0, %v8346_v16 }
 0x1ed   :  { %4359 = vmatprep.mubr.bf16.mxu0 %v5651_v29  ;;  %4924 = vmatprep.mubr.bf16.mxu1 %v5651_v29  ;;  %v8379_v29 = vld [vmem:[#allocation2 + $0x90] sm:$0xf] }
 0x1ee   :  { %4420 = vmatprep.subr.bf16.mxu0 %v6648_v57  ;;  %4985 = vmatprep.subr.bf16.mxu1 %v6651_v54  ;;  %v1412_v57 = vld [vmem:[#allocation2 + $0x20] sm:$0xe]  ;;  %v1409_v54 = vld [vmem:[#allocation2 + $0x9c] sm:$0x1] }
 0x1f0   :  { %4421 = vmatpush1.bf16.msra.mxu0 %v6646_v2  ;;  %4986 = vmatpush1.bf16.msra.mxu1 %v6649_v18  ;;  %v8381_v2 = vld [vmem:[#allocation2 + $0x8] sm:$0xe]  ;;  %v8383_v18 = vld [vmem:[#allocation2 + $0x34] sm:$0x1] }
 0x1f1   :  { %4422 = vmatprep.subr.bf16.mxu0 %v6654_v21  ;;  %4987 = vmatprep.subr.bf16.mxu1 %v6657_v6  ;;  %v8385_v21 = vld [vmem:[#allocation2 + $0x3c] sm:$0x1]  ;;  %v5607_v6 = vcombine.low %v1412_v57, %v8362_v44 }
 0x1f3   :  { %4360 = vmatmul.mubr.bf16.gmra.mrb[44].mxu0 %v8120_v60  ;;  %4925 = vmatmul.mubr.bf16.gmra.mrb[28].mxu1 %v8120_v60  ;;  %v6674_v60 = vld [vmem:[%s9083_s3 + $0x50c] ss:$16 sps:$4 sm:$0xff]  }
 0x1f4   :  { %4423 = vmatpush1.bf16.msra.mxu0 %v6652_v55  ;;  %4988 = vmatpush1.bf16.msra.mxu1 %v6655_v53  ;;  %v6703_v55 = vld [vmem:[%s9083_s3 + $0x580] ss:$16 sps:$4 sm:$0xff]   ;;  %v6706_v53 = vld [vmem:[%s9083_s3 + $0x588] ss:$16 sps:$4 sm:$0xff]  }
 0x1f5   :  { %4369 = vmatprep.mubr.bf16.mxu0 %v5660_v43  ;;  %4934 = vmatprep.mubr.bf16.mxu1 %v5660_v43  ;;  %v8398_v43 = vld [vmem:[#allocation2 + $0x4c] sm:$0x1] }
 0x1f6   :  { %4424 = vmatprep.subr.bf16.mxu0 %v6665_v22  ;;  %4989 = vmatprep.subr.bf16.mxu1 %v6668_v1  ;;  %v8394_v22 = vld [vmem:[#allocation2 + $0x10] sm:$0xe]  ;;  %v8396_v1 = vld [vmem:[#allocation2 + $0x44] sm:$0x1]  ;;  %9105 = vst [vmem:[#allocation9_spill] sm:$0xff] %v8398_v43 }
 0x1f7   :  { %9104 = vst [vmem:[#allocation8_spill] sm:$0xff] %v8396_v1  ;;  %v5574_v4 = vcombine.low %v8394_v22, %v8324_v5 }
 0x1f8   :  { %4425 = vmatpush1.bf16.msra.mxu0 %v6663_v20  ;;  %4990 = vmatpush1.bf16.msra.mxu1 %v6666_v59  ;;  %v1413_v20 = vld [vmem:[#allocation2 + $0x28] sm:$0xe] }
 0x1f9   :  { %4426 = vmatprep.subr.bf16.mxu0 %v6671_v33  ;;  %4991 = vmatprep.subr.bf16.mxu1 %v6674_v60  ;;  %v8400_v59 = vld [vmem:[#allocation2 + $0x88] sm:$0xf]  ;;  %v8402_v33 = vld [vmem:[#allocation2 + $0x64] sm:$0x1]  ;;  %v8404_v60 = vld [vmem:[#allocation2 + $0x6c] sm:$0x1] }
 0x1fa   :  { %v5614_v46 = vcombine.low %v1419_v39, %v8404_v60 }
 0x1fb   :  { %4370 = vmatmul.mubr.bf16.gmra.mrb[48].mxu0 %v8131_v49  ;;  %4935 = vmatmul.mubr.bf16.gmra.mrb[32].mxu1 %v8131_v49  ;;  %v6688_v49 = vld [vmem:[%s9083_s3 + $0x544] ss:$16 sps:$4 sm:$0xff]  }
 0x1fc   :  { %4427 = vmatpush1.bf16.msra.mxu0 %v6669_v9  ;;  %4992 = vmatpush1.bf16.msra.mxu1 %v6672_v50  ;;  %v1414_v50 = vld [vmem:[#allocation2 + $0x30] sm:$0xe] }
 0x1fd   :  { %4379 = vmatprep.mubr.bf16.mxu0 %v5669_v45  ;;  %4944 = vmatprep.mubr.bf16.mxu1 %v5669_v45  ;;  %v6716_v45 = vld [vmem:[%s9083_s3 + $0x5a4] ss:$16 sps:$4 sm:$0xff]  }
 0x1fe   :  { %4428 = vmatprep.subr.bf16.mxu0 %v6682_v24  ;;  %4993 = vmatprep.subr.bf16.mxu1 %v6685_v14  ;;  %v1415_v24 = vld [vmem:[#allocation2 + $0x38] sm:$0xe]  ;;  %v8407_v14 = vld [vmem:[#allocation2 + $0x24] sm:$0x1] }
 0x1ff   :  { %v8455_v22 = vcombine.low %v8166_v3, %v8407_v14  ;;  %v6720_v3 = vld [vmem:[%s9083_s3 + $0x5c0] ss:$16 sps:$4 sm:$0xff]  }
 0x200   :  { %4429 = vmatpush1.bf16.msra.mxu0 %v6680_v8  ;;  %4994 = vmatpush1.bf16.msra.mxu1 %v6683_v41  ;;  %v6719_v8 = vld [vmem:[%s9083_s3 + $0x5ac] ss:$16 sps:$4 sm:$0xff]   ;;  %v8415_v41 = vld [vmem:[#allocation2 + $0x74] sm:$0x1] }
 0x201   :  { %4430 = vmatprep.subr.bf16.mxu0 %v6688_v49  ;;  %4995 = vmatprep.subr.bf16.mxu1 %v6691_v51  ;;  %v5609_v49 = vcombine.low %v1414_v50, %v8383_v18  ;;  %v5610_v51 = vcombine.low %v1415_v24, %v8385_v21  ;;  %v5687_v50 = vcombine.low %v8400_v59, %v8379_v29 }
 0x203   :  { %4380 = vmatmul.mubr.bf16.gmra.mrb[52].mxu0 %v8144_v17  ;;  %4945 = vmatmul.mubr.bf16.gmra.mrb[36].mxu1 %v8144_v17  ;;  %v8377_v17 = vld [vmem:[#allocation2 + $0x2c] sm:$0x1]  ;;  %v2182_v24 = vrot.slane %v5609_v49, 1 }
 0x204   :  { %4431 = vmatpush1.bf16.msra.mxu0 %v6686_v30  ;;  %4996 = vmatpush1.bf16.msra.mxu1 %v6689_v38  ;;  %v5608_v9 = vcombine.low %v1413_v20, %v8377_v17  ;;  %v1416_v30 = vld [vmem:[#allocation2 + $0x40] sm:$0xe]  ;;  %v1417_v38 = vld [vmem:[#allocation2 + $0x48] sm:$0xe] }
 0x205   :  { %4389 = vmatprep.mubr.bf16.mxu0 %v5678_v56  ;;  %4954 = vmatprep.mubr.bf16.mxu1 %v5678_v56  ;;  %v5611_v56 = vcombine.low %v1416_v30, %v8396_v1  ;;  %v5612_v57 = vcombine.low %v1417_v38, %v8398_v43  ;;  %v1418_v20 = vld [vmem:[#allocation2 + $0x60] sm:$0xe]  ;;  %v2183_v30 = vrot.slane %v5610_v51, 1  ;;  %v1420_v38 = vld [vmem:[#allocation2 + $0x70] sm:$0xe]  ;;  %v9106_v1 = vshll.u32 %v8338_v15, 16 }
 0x206   :  { %4432 = vmatprep.subr.bf16.mxu0 %v6699_v47  ;;  %4997 = vmatprep.subr.bf16.mxu1 %v6702_v48  ;;  %v8419_v47 = vld [vmem:[#allocation2 + $0x7c] sm:$0x1]  ;;  %v2181_v48 = vrot.slane %v5608_v9, 1  ;;  %v1407_v9 = vld [vmem:[#allocation2 + $0x8c] sm:$0x1]  ;;  %v5613_v36 = vcombine.low %v1418_v20, %v8402_v33 }
 0x207   :  { %v2185_v49 = vrot.slane %v5612_v57, 1  ;;  %v1421_v51 = vld [vmem:[#allocation2 + $0x78] sm:$0xe]  ;;  %v8447_v42 = vcombine.low %v2182_v24, %v2183_v30  ;;  %v1423_v43 = vld [vmem:[#allocation2 + $0x88] sm:$0xe]  ;;  %v1774_v5 = vrot.slane %v9106_v1, 1 }
 0x208   :  { %4433 = vmatpush1.bf16.msra.mxu0 %v6697_v32  ;;  %4998 = vmatpush1.bf16.msra.mxu1 %v6700_v26  ;;  %v8421_v32 = vld [vmem:[#allocation2 + $0x84] sm:$0x1]  ;;  %v2180_v26 = vrot.slane %v5607_v6, 1  ;;  %v5573_v6 = vcombine.low %v8381_v2, %v8316_v62  ;;  %v2184_v2 = vrot.slane %v5611_v56, 1  ;;  %v8460_v56 = vld [vmem:[#allocation2 + $0x1c] sm:$0x1]  ;;  %v5616_v1 = vcombine.low %v1421_v51, %v8419_v47 }
 0x209   :  { %4434 = vmatprep.subr.bf16.mxu0 %v6705_v34  ;;  %4999 = vmatprep.subr.bf16.mxu1 %v6708_v28  ;;  %v6714_v34 = vld [vmem:[%s9083_s3 + $0x5a0] ss:$16 sps:$4 sm:$0xff]   ;;  %v6717_v28 = vld [vmem:[%s9083_s3 + $0x5a8] ss:$16 sps:$4 sm:$0xff]   ;;  %v2186_v39 = vrot.slane %v5613_v36, 1  ;;  %v2187_v57 = vrot.slane %v5614_v46, 1  ;;  %v5617_v20 = vcombine.low %v1422_v58, %v8421_v32  ;;  %v5618_v30 = vcombine.low %v1423_v43, %v1407_v9 }
 0x20a   :  { %v8445_v62 = vcombine.low %v2180_v26, %v2181_v48  ;;  %v1424_v26 = vld [vmem:[#allocation2 + $0x90] sm:$0xe]  ;;  %v1425_v48 = vld [vmem:[#allocation2 + $0x98] sm:$0xe]  ;;  %v1364_v24 = vld [vmem:[#allocation2 + $0x20] sm:$0xe] }
 0x20b   :  { %4390 = vmatmul.mubr.bf16.gmra.mrb[56].mxu0 %v8148_v27  ;;  %4955 = vmatmul.mubr.bf16.gmra.mrb[40].mxu1 %v8148_v27  ;;  %v1408_v27 = vld [vmem:[#allocation2 + $0x94] sm:$0x1]  ;;  %v6723_v36 = vld [vmem:[%s9083_s3 + $0x5c8] ss:$16 sps:$4 sm:$0xff]   ;;  %v1922_v46 = vrot.slane %v5573_v6, 1  ;;  %v2189_v58 = vrot.slane %v5616_v1, 1 }
 0x20c   :  { %4435 = vmatpush1.bf16.msra.mxu0 %v6703_v55  ;;  %5000 = vmatpush1.bf16.msra.mxu1 %v6706_v53  ;;  %v8457_v55 = vcombine.low %v2184_v2, %v2185_v49  ;;  %v5615_v53 = vcombine.low %v1420_v38, %v8415_v41  ;;  %v5619_v41 = vcombine.low %v1424_v26, %v1408_v27  ;;  %v2190_v32 = vrot.slane %v5617_v20, 1  ;;  %v6732_v43 = vld [vmem:[%s9083_s3 + $0x5e4] ss:$16 sps:$4 sm:$0xff]   ;;  %v6741_v1 = vld [vmem:[%s9083_s3 + $0x60c] ss:$16 sps:$4 sm:$0xff]  }
 0x20d   :  { %4399 = vmatprep.mubr.bf16.mxu0 %v5687_v50  ;;  %4964 = vmatprep.mubr.bf16.mxu1 %v5687_v50  ;;  %v1923_v50 = vrot.slane %v5574_v4, 1  ;;  %v5620_v38 = vcombine.low %v1425_v48, %v1409_v54  ;;  %v2191_v2 = vrot.slane %v5618_v30, 1  ;;  %v8474_v54 = vcombine.low %v8168_v19, %v8460_v56  ;;  %v6739_v30 = vld [vmem:[%s9083_s3 + $0x608] ss:$16 sps:$4 sm:$0xff]  }
 0x20e   :  { %4436 = vmatprep.subr.bf16.mxu0 %v6716_v45  ;;  %5001 = vmatprep.subr.bf16.mxu1 %v6719_v8  ;;  %v8470_v45 = vcombine.low %v2186_v39, %v2187_v57  ;;  %v2188_v8 = vrot.slane %v5615_v53, 1  ;;  %v2192_v4 = vrot.slane %v5619_v41, 1  ;;  %v9107_v6 = vshll.u32 %v8334_v7, 16  ;;  %v6733_v53 = vld [vmem:[%s9083_s3 + $0x5e8] ss:$16 sps:$4 sm:$0xff]  }
 0x20f   :  { %v2193_v49 = vrot.slane %v5620_v38, 1  ;;  %v5626_v19 = vcombine.low %v1922_v46, %v1923_v50  ;;  %v8489_v51 = vcombine.low %v2190_v32, %v2191_v2  ;;  %v1763_v26 = vshrl.u32 %v8334_v7, 16  ;;  %v6738_v57 = vld [vmem:[%s9083_s3 + $0x604] ss:$16 sps:$4 sm:$0xff]   ;;  %v1366_v41 = vld [vmem:[#allocation2 + $0x30] sm:$0xe] }
 0x210   :  { %4437 = vmatpush1.bf16.msra.mxu0 %v6714_v34  ;;  %5002 = vmatpush1.bf16.msra.mxu1 %v6717_v28  ;;  %v6735_v34 = vld [vmem:[%s9083_s3 + $0x5ec] ss:$16 sps:$4 sm:$0xff]   ;;  %v1363_v28 = vld [vmem:[#allocation2 + $0x18] sm:$0xe]  ;;  %v1767_v9 = vrot.slane %v9107_v6, 1  ;;  %v9108_v48 = vshrl.u32 %v8338_v15, 16 }
 0x211   :  { %4438 = vmatprep.subr.bf16.mxu0 %v6722_v40  ;;  %5003 = vmatprep.subr.bf16.mxu1 %v6725_v37  ;;  %v5576_v40 = vcombine.low %v1364_v24, %v8407_v14  ;;  %v8483_v37 = vcombine.low %v2188_v8, %v2189_v58  ;;  %v8491_v27 = vcombine.low %v2192_v4, %v2193_v49  ;;  %v6730_v14 = vld [vmem:[%s9083_s3 + $0x5e0] ss:$16 sps:$4 sm:$0xff]   ;;  %v1786_v39 = vshll.u32 %v8455_v22, 16  ;;  %v6746_v58 = vld [vmem:[%s9083_s3 + $0x624] ss:$16 sps:$4 sm:$0xff]  }
 0x212   :  { %v5575_v20 = vcombine.low %v1363_v28, %v8460_v56  ;;  %v1768_v7 = vor.u32 %v1767_v9, %v1763_v26  ;;  %v1779_v15 = vshll.u32 %v8474_v54, 16  ;;  %v6736_v24 = vld [vmem:[%s9083_s3 + $0x600] ss:$16 sps:$4 sm:$0xff]   ;;  %v6749_v32 = vld [vmem:[%s9083_s3 + $0x62c] ss:$16 sps:$4 sm:$0xff]   ;;  %v1784_v49 = vshrl.u32 %v8455_v22, 16 }
 0x213   :  { %4400 = vmatmul.mubr.bf16.gmra.mrb[60].mxu0 %v8156_v10  ;;  %4965 = vmatmul.mubr.bf16.gmra.mrb[44].mxu1 %v8156_v10  ;;  %v1775_v10 = vor.u32 %v1774_v5, %v9108_v48  ;;  %v1349_v5 = vld [vmem:[#allocation2 + $0x2c] sm:$0x1]  ;;  %v1925_v50 = vrot.slane %v5576_v40, 1  ;;  %v1788_v46 = vrot.slane %v1786_v39, 1  ;;  %v1365_v2 = vld [vmem:[#allocation2 + $0x28] sm:$0xe] }
 0x214   :  { %4439 = vmatpush1.bf16.msra.mxu0 %v6720_v3  ;;  %5004 = vmatpush1.bf16.msra.mxu1 %v6723_v36  ;;  %v1350_v3 = vld [vmem:[#allocation2 + $0x34] sm:$0x1]  ;;  %v1924_v36 = vrot.slane %v5575_v20, 1  ;;  %v8521_v8 = vcombine.low %v8200_v25, %v1349_v5  ;;  %v1781_v4 = vrot.slane %v1779_v15, 1  ;;  %v6744_v25 = vld [vmem:[%s9083_s3 + $0x620] ss:$16 sps:$4 sm:$0xff]  }
 0x215   :  { %4442 = vmatprep.mubr.bf16.mxu0 %v5626_v19  ;;  %5007 = vmatprep.mubr.bf16.mxu1 %v5626_v19  ;;  %v8518_v56 = vcombine.low %v8198_v35, %v1350_v3  ;;  %v5625_v38 = vcombine.low %v1768_v7, %v1775_v10  ;;  %v6752_v40 = vld [vmem:[%s9083_s3 + $0x644] ss:$16 sps:$4 sm:$0xff]   ;;  %v6755_v22 = vld [vmem:[%s9083_s3 + $0x64c] ss:$16 sps:$4 sm:$0xff]   ;;  %v1777_v6 = vshrl.u32 %v8474_v54, 16  ;;  %v1789_v9 = vor.u32 %v1788_v46, %v1784_v49 }
 0x216   :  { %4440 = vmatprep.subr.bf16.mxu0 %v6732_v43  ;;  %5005 = vmatprep.subr.bf16.mxu1 %v6735_v34  ;;  %v5635_v35 = vcombine.low %v1924_v36, %v1925_v50  ;;  %v5578_v43 = vcombine.low %v1366_v41, %v1350_v3  ;;  %v6747_v34 = vld [vmem:[%s9083_s3 + $0x628] ss:$16 sps:$4 sm:$0xff]   ;;  %v5577_v19 = vcombine.low %v1365_v2, %v1349_v5  ;;  %v1351_v26 = vld [vmem:[#allocation2 + $0x3c] sm:$0x1]  ;;  %v6750_v39 = vld [vmem:[%s9083_s3 + $0x640] ss:$16 sps:$4 sm:$0xff]  }
 0x217   :  { %v1800_v28 = vshll.u32 %v8518_v56, 16  ;;  %v1782_v48 = vor.u32 %v1781_v4, %v1777_v6  ;;  %v6753_v54 = vld [vmem:[%s9083_s3 + $0x648] ss:$16 sps:$4 sm:$0xff]   ;;  %v8555_v15 = vcombine.low %v8241_v52, %v1351_v26  ;;  %v6760_v5 = vld [vmem:[%s9083_s3 + $0x664] ss:$16 sps:$4 sm:$0xff]   ;;  %v1798_v41 = vshrl.u32 %v8518_v56, 16 }
 0x218   :  { %4441 = vmatpush1.bf16.msra.mxu0 %v6730_v14  ;;  %5006 = vmatpush1.bf16.msra.mxu1 %v6733_v53  ;;  %v1352_v14 = vld [vmem:[#allocation2 + $0x44] sm:$0x1]  ;;  %v1793_v53 = vshll.u32 %v8521_v8, 16  ;;  %v1927_v10 = vrot.slane %v5578_v43, 1  ;;  %v1926_v3 = vrot.slane %v5577_v19, 1 }
 0x219   :  { %4523 = vmatprep.subr.bf16.mxu0 %v6738_v57  ;;  %5088 = vmatprep.subr.bf16.mxu1 %v6741_v1  ;;  %v1368_v57 = vld [vmem:[#allocation2 + $0x40] sm:$0xe]  ;;  %v8552_v1 = vcombine.low %v8234_v61, %v1352_v14  ;;  %v5634_v20 = vcombine.low %v1782_v48, %v1789_v9  ;;  %v1802_v7 = vrot.slane %v1800_v28, 1  ;;  %v6763_v50 = vld [vmem:[%s9083_s3 + $0x66c] ss:$16 sps:$4 sm:$0xff]   ;;  %v1807_v49 = vshll.u32 %v8555_v15, 16 }
 0x21a   :  { %v5644_v61 = vcombine.low %v1926_v3, %v1927_v10  ;;  %v6758_v52 = vld [vmem:[%s9083_s3 + $0x660] ss:$16 sps:$4 sm:$0xff]   ;;  %v6761_v36 = vld [vmem:[%s9083_s3 + $0x668] ss:$16 sps:$4 sm:$0xff]   ;;  %v6769_v56 = vld [vmem:[%s9083_s3 + $0x68c] ss:$16 sps:$4 sm:$0xff]  }
 0x21b   :  { %4443 = vmatmul.mubr.bf16.vlgmr.msra.gmra.mrb[32].mxu0 %v5625_v38  ;;  %5008 = vmatmul.mubr.bf16.vlgmr.msra.gmra.mrb[16].mxu1 %v5625_v38  ;;  %v5580_v38 = vcombine.low %v1368_v57, %v1352_v14  ;;  %v1814_v46 = vshll.u32 %v8552_v1, 16  ;;  %v1803_v2 = vor.u32 %v1802_v7, %v1798_v41  ;;  %v1354_v4 = vld [vmem:[#allocation2 + $0x64] sm:$0x1]  ;;  %v1353_v43 = vld [vmem:[#allocation2 + $0x5c] sm:$0x1]  ;;  %v1809_v10 = vrot.slane %v1807_v49, 1 }
 0x21c   :  { %4524 = vmatpush1.bf16.msra.mxu0 %v6736_v24  ;;  %5089 = vmatpush1.bf16.msra.mxu1 %v6739_v30  ;;  %v1367_v24 = vld [vmem:[#allocation2 + $0x38] sm:$0xe]  ;;  %v1795_v30 = vrot.slane %v1793_v53, 1  ;;  %v6764_v28 = vld [vmem:[%s9083_s3 + $0x680] ss:$16 sps:$4 sm:$0xff]   ;;  %v8589_v14 = vcombine.low %v8272_v12, %v1353_v43  ;;  %v1805_v7 = vshrl.u32 %v8555_v15, 16 }
 0x21d   :  { %4452 = vmatprep.mubr.bf16.mxu0 %v5635_v35  ;;  %5017 = vmatprep.mubr.bf16.mxu1 %v5635_v35  ;;  %v5579_v35 = vcombine.low %v1367_v24, %v1351_v26  ;;  %v1816_v19 = vrot.slane %v1814_v46, 1  ;;  %v6774_v53 = vld [vmem:[%s9083_s3 + $0x6a4] ss:$16 sps:$4 sm:$0xff]   ;;  %v6777_v26 = vld [vmem:[%s9083_s3 + $0x6ac] ss:$16 sps:$4 sm:$0xff]  }
 0x21e   :  { %4525 = vmatprep.subr.bf16.mxu0 %v6746_v58  ;;  %5090 = vmatprep.subr.bf16.mxu1 %v6749_v32  ;;  %v6766_v58 = vld [vmem:[%s9083_s3 + $0x684] ss:$16 sps:$4 sm:$0xff]   ;;  %v1791_v32 = vshrl.u32 %v8521_v8, 16  ;;  %v6767_v8 = vld [vmem:[%s9083_s3 + $0x688] ss:$16 sps:$4 sm:$0xff]   ;;  %v1810_v41 = vor.u32 %v1809_v10, %v1805_v7 }
 0x21f   :  { %v1928_v9 = vrot.slane %v5579_v35, 1  ;;  %v1369_v48 = vld [vmem:[#allocation2 + $0x58] sm:$0xe]  ;;  %v6772_v12 = vld [vmem:[%s9083_s3 + $0x6a0] ss:$16 sps:$4 sm:$0xff]  }
 0x220   :  { %4526 = vmatpush1.bf16.msra.mxu0 %v6744_v25  ;;  %5091 = vmatpush1.bf16.msra.mxu1 %v6747_v34  ;;  %v1796_v25 = vor.u32 %v1795_v30, %v1791_v32  ;;  %v1929_v34 = vrot.slane %v5580_v38, 1  ;;  %v6775_v57 = vld [vmem:[%s9083_s3 + $0x6a8] ss:$16 sps:$4 sm:$0xff]   ;;  %v6780_v3 = vld [vmem:[%s9083_s3 + $0x6c4] ss:$16 sps:$4 sm:$0xff]  }
 0x221   :  { %4527 = vmatprep.subr.bf16.mxu0 %v6752_v40  ;;  %5092 = vmatprep.subr.bf16.mxu1 %v6755_v22  ;;  %v1370_v40 = vld [vmem:[#allocation2 + $0x60] sm:$0xe]  ;;  %v8586_v22 = vcombine.low %v8270_v63, %v1354_v4  ;;  %v1356_v24 = vld [vmem:[#allocation2 + $0x74] sm:$0x1]  ;;  %v1355_v30 = vld [vmem:[#allocation2 + $0x6c] sm:$0x1] }
 0x222   :  { %v5643_v6 = vcombine.low %v1796_v25, %v1803_v2  ;;  %v5653_v63 = vcombine.low %v1928_v9, %v1929_v34  ;;  %v6781_v15 = vld [vmem:[%s9083_s3 + $0x6c8] ss:$16 sps:$4 sm:$0xff]   ;;  %v8620_v46 = vcombine.low %v8302_v23, %v1356_v24  ;;  %v8623_v2 = vcombine.low %v8304_v31, %v1355_v30  ;;  %v6788_v35 = vld [vmem:[%s9083_s3 + $0x6e4] ss:$16 sps:$4 sm:$0xff]   ;;  %v6786_v31 = vld [vmem:[%s9083_s3 + $0x6e0] ss:$16 sps:$4 sm:$0xff]  }
 0x223   :  { %4453 = vmatmul.mubr.bf16.gmra.mrb[36].mxu0 %v5634_v20  ;;  %5018 = vmatmul.mubr.bf16.gmra.mrb[20].mxu1 %v5634_v20  ;;  %v1828_v20 = vshll.u32 %v8586_v22, 16  ;;  %v1371_v49 = vld [vmem:[#allocation2 + $0x68] sm:$0xe]  ;;  %v1826_v25 = vshrl.u32 %v8586_v22, 16  ;;  %v6797_v22 = vld [vmem:[%s9083_s3 + $0x70c] ss:$16 sps:$4 sm:$0xff]  }
 0x224   :  { %4528 = vmatpush1.bf16.msra.mxu0 %v6750_v39  ;;  %5093 = vmatpush1.bf16.msra.mxu1 %v6753_v54  ;;  %v1812_v39 = vshrl.u32 %v8552_v1, 16  ;;  %v5582_v54 = vcombine.low %v1370_v40, %v1354_v4  ;;  %v6783_v1 = vld [vmem:[%s9083_s3 + $0x6cc] ss:$16 sps:$4 sm:$0xff]   ;;  %v6794_v40 = vld [vmem:[%s9083_s3 + $0x704] ss:$16 sps:$4 sm:$0xff]  }
 0x225   :  { %4462 = vmatprep.mubr.bf16.mxu0 %v5644_v61  ;;  %5027 = vmatprep.mubr.bf16.mxu1 %v5644_v61  ;;  %v1821_v61 = vshll.u32 %v8589_v14, 16  ;;  %v1830_v32 = vrot.slane %v1828_v20, 1  ;;  %v6791_v4 = vld [vmem:[%s9083_s3 + $0x6ec] ss:$16 sps:$4 sm:$0xff]   ;;  %v6802_v7 = vld [vmem:[%s9083_s3 + $0x724] ss:$16 sps:$4 sm:$0xff]  }
 0x226   :  { %4529 = vmatprep.subr.bf16.mxu0 %v6760_v5  ;;  %5094 = vmatprep.subr.bf16.mxu1 %v6763_v50  ;;  %v1817_v5 = vor.u32 %v1816_v19, %v1812_v39  ;;  %v5581_v50 = vcombine.low %v1369_v48, %v1353_v43  ;;  %v1931_v38 = vrot.slane %v5582_v54, 1  ;;  %v5583_v19 = vcombine.low %v1371_v49, %v1355_v30  ;;  %v1357_v48 = vld [vmem:[#allocation2 + $0x7c] sm:$0x1]  ;;  %v6792_v39 = vld [vmem:[%s9083_s3 + $0x700] ss:$16 sps:$4 sm:$0xff]  }
 0x227   :  { %v1823_v43 = vrot.slane %v1821_v61, 1  ;;  %v1831_v9 = vor.u32 %v1830_v32, %v1826_v25  ;;  %v1374_v54 = vld [vmem:[#allocation2 + $0x80] sm:$0xe]  ;;  %v1840_v61 = vshrl.u32 %v8620_v46, 16  ;;  %v1376_v25 = vld [vmem:[#allocation2 + $0x90] sm:$0xe] }
 0x228   :  { %4530 = vmatpush1.bf16.msra.mxu0 %v6758_v52  ;;  %5095 = vmatpush1.bf16.msra.mxu1 %v6761_v36  ;;  %v6778_v52 = vld [vmem:[%s9083_s3 + $0x6c0] ss:$16 sps:$4 sm:$0xff]   ;;  %v1932_v20 = vrot.slane %v5583_v19, 1 }
 0x229   :  { %4531 = vmatprep.subr.bf16.mxu0 %v6766_v58  ;;  %5096 = vmatprep.subr.bf16.mxu1 %v6769_v56  ;;  %v1372_v36 = vld [vmem:[#allocation2 + $0x70] sm:$0xe]  ;;  %v5652_v58 = vcombine.low %v1810_v41, %v1817_v5  ;;  %v1930_v56 = vrot.slane %v5581_v50, 1  ;;  %v6805_v5 = vld [vmem:[%s9083_s3 + $0x72c] ss:$16 sps:$4 sm:$0xff]  }
 0x22a   :  { %v5584_v34 = vcombine.low %v1372_v36, %v1356_v24  ;;  %v1373_v50 = vld [vmem:[#allocation2 + $0x78] sm:$0xe]  ;;  %v1360_v41 = vld [vmem:[#allocation2 + $0x94] sm:$0x1]  ;;  %v6811_v36 = vld [vmem:[%s9083_s3 + $0x74c] ss:$16 sps:$4 sm:$0xff]  }
 0x22b   :  { %4463 = vmatmul.mubr.bf16.gmra.mrb[40].mxu0 %v5643_v6  ;;  %5028 = vmatmul.mubr.bf16.gmra.mrb[24].mxu1 %v5643_v6  ;;  %v5662_v23 = vcombine.low %v1930_v56, %v1931_v38  ;;  %v1819_v6 = vshrl.u32 %v8589_v14, 16  ;;  %v6795_v14 = vld [vmem:[%s9083_s3 + $0x708] ss:$16 sps:$4 sm:$0xff]   ;;  %v5585_v56 = vcombine.low %v1373_v50, %v1357_v48  ;;  %v8701_v19 = vld [vmem:[#allocation2 + $0x10] sm:$0xf] }
 0x22c   :  { %4532 = vmatpush1.bf16.msra.mxu0 %v6764_v28  ;;  %5097 = vmatpush1.bf16.msra.mxu1 %v6767_v8  ;;  %v6789_v28 = vld [vmem:[%s9083_s3 + $0x6e8] ss:$16 sps:$4 sm:$0xff]   ;;  %v1842_v8 = vshll.u32 %v8620_v46, 16  ;;  %v1933_v10 = vrot.slane %v5584_v34, 1  ;;  %v1833_v46 = vshrl.u32 %v8623_v2, 16 }
 0x22d   :  { %4472 = vmatprep.mubr.bf16.mxu0 %v5653_v63  ;;  %5037 = vmatprep.mubr.bf16.mxu1 %v5653_v63  ;;  %v1824_v63 = vor.u32 %v1823_v43, %v1819_v6  ;;  %v6803_v38 = vld [vmem:[%s9083_s3 + $0x728] ss:$16 sps:$4 sm:$0xff]   ;;  %v8685_v43 = vcombine.low %v8379_v29, %v1360_v41  ;;  %v6819_v29 = vld [vmem:[%s9083_s3 + $0x76c] ss:$16 sps:$4 sm:$0xff]  }
 0x22e   :  { %4533 = vmatprep.subr.bf16.mxu0 %v6774_v53  ;;  %5098 = vmatprep.subr.bf16.mxu1 %v6777_v26  ;;  %v1358_v53 = vld [vmem:[#allocation2 + $0x84] sm:$0x1]  ;;  %v1835_v26 = vshll.u32 %v8623_v2, 16  ;;  %v6809_v2 = vld [vmem:[%s9083_s3 + $0x748] ss:$16 sps:$4 sm:$0xff]  }
 0x22f   :  { %v5586_v30 = vcombine.low %v1374_v54, %v1358_v53  ;;  %v8690_v34 = vld [vmem:[#allocation2 + $0x18] sm:$0xf] }
 0x230   :  { %4534 = vmatpush1.bf16.msra.mxu0 %v6772_v12  ;;  %5099 = vmatpush1.bf16.msra.mxu1 %v6775_v57  ;;  %v8654_v12 = vcombine.low %v8346_v16, %v1358_v53  ;;  %v5661_v57 = vcombine.low %v1824_v63, %v1831_v9  ;;  %v5671_v16 = vcombine.low %v1932_v20, %v1933_v10  ;;  %v1837_v24 = vrot.slane %v1835_v26, 1  ;;  %v1375_v9 = vld [vmem:[#allocation2 + $0x88] sm:$0xe] }
 0x231   :  { %4535 = vmatprep.subr.bf16.mxu0 %v6780_v3  ;;  %5100 = vmatprep.subr.bf16.mxu1 %v6783_v1  ;;  %v1844_v3 = vrot.slane %v1842_v8, 1  ;;  %v8657_v1 = vcombine.low %v8351_v0, %v1357_v48  ;;  %v6800_v0 = vld [vmem:[%s9083_s3 + $0x720] ss:$16 sps:$4 sm:$0xff]   ;;  %v6816_v8 = vld [vmem:[%s9083_s3 + $0x764] ss:$16 sps:$4 sm:$0xff]   ;;  %v5588_v48 = vcombine.low %v1376_v25, %v1360_v41  ;;  %v5590_v63 = vcombine.low %v8690_v34, %v8226_v13 }
 0x232   :  { %v1838_v49 = vor.u32 %v1837_v24, %v1833_v46  ;;  %v1854_v26 = vshrl.u32 %v8654_v12, 16  ;;  %v1870_v10 = vshll.u32 %v8685_v43, 16  ;;  %v6825_v13 = vld [vmem:[%s9083_s3 + $0x78c] ss:$16 sps:$4 sm:$0xff]   ;;  %v5589_v20 = vcombine.low %v8701_v19, %v8224_v11  ;;  %v8729_v24 = vld [vmem:[#allocation2 + $0x28] sm:$0xf] }
 0x233   :  { %4473 = vmatmul.mubr.bf16.gmra.mrb[44].mxu0 %v5652_v58  ;;  %5038 = vmatmul.mubr.bf16.gmra.mrb[28].mxu1 %v5652_v58  ;;  %v1845_v58 = vor.u32 %v1844_v3, %v1840_v61  ;;  %v1849_v32 = vshll.u32 %v8657_v1, 16  ;;  %v1847_v54 = vshrl.u32 %v8657_v1, 16  ;;  %v2028_v50 = vshll.u32 %v5590_v63, 16  ;;  %v6823_v1 = vld [vmem:[%s9083_s3 + $0x788] ss:$16 sps:$4 sm:$0xff]  }
 0x234   :  { %4536 = vmatpush1.bf16.msra.mxu0 %v6778_v52  ;;  %5101 = vmatpush1.bf16.msra.mxu1 %v6781_v15  ;;  %v1856_v52 = vshll.u32 %v8654_v12, 16  ;;  %v6808_v15 = vld [vmem:[%s9083_s3 + $0x744] ss:$16 sps:$4 sm:$0xff]   ;;  %v1872_v41 = vrot.slane %v1870_v10, 1  ;;  %v1868_v46 = vshrl.u32 %v8685_v43, 16 }
 0x235   :  { %4482 = vmatprep.mubr.bf16.mxu0 %v5662_v23  ;;  %5047 = vmatprep.mubr.bf16.mxu1 %v5662_v23  ;;  %v1935_v23 = vrot.slane %v5586_v30, 1  ;;  %v1851_v6 = vrot.slane %v1849_v32, 1  ;;  %v6830_v30 = vld [vmem:[%s9083_s3 + $0x7a4] ss:$16 sps:$4 sm:$0xff]   ;;  %v6828_v32 = vld [vmem:[%s9083_s3 + $0x7a0] ss:$16 sps:$4 sm:$0xff]  }
 0x236   :  { %4537 = vmatprep.subr.bf16.mxu0 %v6788_v35  ;;  %5102 = vmatprep.subr.bf16.mxu1 %v6791_v4  ;;  %v1359_v35 = vld [vmem:[#allocation2 + $0x8c] sm:$0x1]  ;;  %v6806_v4 = vld [vmem:[%s9083_s3 + $0x740] ss:$16 sps:$4 sm:$0xff]  }
 0x238   :  { %4538 = vmatpush1.bf16.msra.mxu0 %v6786_v31  ;;  %5103 = vmatpush1.bf16.msra.mxu1 %v6789_v28  ;;  %v5670_v31 = vcombine.low %v1838_v49, %v1845_v58  ;;  %v1934_v28 = vrot.slane %v5585_v56, 1  ;;  %v2030_v58 = vrot.slane %v2028_v50, 1  ;;  %v5592_v56 = vcombine.low %v8729_v24, %v8377_v17  ;;  %v6836_v49 = vld [vmem:[%s9083_s3 + $0x7c4] ss:$16 sps:$4 sm:$0xff]   ;;  %v6839_v17 = vld [vmem:[%s9083_s3 + $0x7cc] ss:$16 sps:$4 sm:$0xff]  }
 0x239   :  { %4539 = vmatprep.subr.bf16.mxu0 %v6794_v40  ;;  %5104 = vmatprep.subr.bf16.mxu1 %v6797_v22  ;;  %v1858_v40 = vrot.slane %v1856_v52, 1  ;;  %v8699_v22 = vcombine.low %v8400_v59, %v1359_v35  ;;  %v6814_v59 = vld [vmem:[%s9083_s3 + $0x760] ss:$16 sps:$4 sm:$0xff]  }
 0x23a   :  { %v5680_v53 = vcombine.low %v1934_v28, %v1935_v23  ;;  %v1873_v23 = vor.u32 %v1872_v41, %v1868_v46  ;;  %v2019_v28 = vshrl.u32 %v5589_v20, 16  ;;  %v8789_v50 = vld [vmem:[#allocation2 + $0x40] sm:$0xf]  ;;  %v6861_v41 = vld [vmem:[%s9083_s3 + $0x824] ss:$16 sps:$4 sm:$0xff]   ;;  %v9110_v46 = vld [vmem:[#allocation9_spill] sm:$0xff] }
 0x23b   :  { %4483 = vmatmul.mubr.bf16.gmra.mrb[48].mxu0 %v5661_v57  ;;  %5048 = vmatmul.mubr.bf16.gmra.mrb[32].mxu1 %v5661_v57  ;;  %v1859_v12 = vor.u32 %v1858_v40, %v1854_v26  ;;  %v5587_v57 = vcombine.low %v1375_v9, %v1359_v35  ;;  %v1863_v3 = vshll.u32 %v8699_v22, 16  ;;  %v6831_v35 = vld [vmem:[%s9083_s3 + $0x7a8] ss:$16 sps:$4 sm:$0xff]   ;;  %v8765_v26 = vld [vmem:[#allocation2 + $0x30] sm:$0xf] }
 0x23c   :  { %4540 = vmatpush1.bf16.msra.mxu0 %v6792_v39  ;;  %5105 = vmatpush1.bf16.msra.mxu1 %v6795_v14  ;;  %v6817_v39 = vld [vmem:[%s9083_s3 + $0x768] ss:$16 sps:$4 sm:$0xff]   ;;  %v6822_v14 = vld [vmem:[%s9083_s3 + $0x784] ss:$16 sps:$4 sm:$0xff]  }
 0x23d   :  { %4492 = vmatprep.mubr.bf16.mxu0 %v5671_v16  ;;  %5057 = vmatprep.mubr.bf16.mxu1 %v5671_v16  ;;  %v6820_v16 = vld [vmem:[%s9083_s3 + $0x780] ss:$16 sps:$4 sm:$0xff]   ;;  %v1936_v61 = vrot.slane %v5587_v57, 1  ;;  %v1865_v52 = vrot.slane %v1863_v3, 1  ;;  %v8757_v40 = vld [vmem:[#allocation2 + $0x38] sm:$0xf] }
 0x23e   :  { %4541 = vmatprep.subr.bf16.mxu0 %v6802_v7  ;;  %5106 = vmatprep.subr.bf16.mxu1 %v6805_v5  ;;  %v1852_v7 = vor.u32 %v1851_v6, %v1847_v54  ;;  %v1937_v5 = vrot.slane %v5588_v48, 1  ;;  %v6837_v6 = vld [vmem:[%s9083_s3 + $0x7c8] ss:$16 sps:$4 sm:$0xff]   ;;  %v6846_v48 = vld [vmem:[%s9083_s3 + $0x7e4] ss:$16 sps:$4 sm:$0xff]   ;;  %v5594_v10 = vcombine.low %v8757_v40, %v8385_v21  ;;  %v5593_v54 = vcombine.low %v8765_v26, %v8383_v18 }
 0x23f   :  { %v6852_v21 = vld [vmem:[%s9083_s3 + $0x804] ss:$16 sps:$4 sm:$0xff]   ;;  %v8791_v18 = vld [vmem:[#allocation2 + $0x48] sm:$0xf] }
 0x240   :  { %4542 = vmatpush1.bf16.msra.mxu0 %v6800_v0  ;;  %5107 = vmatpush1.bf16.msra.mxu1 %v6803_v38  ;;  %v5679_v11 = vcombine.low %v1852_v7, %v1859_v12  ;;  %v2021_v0 = vshll.u32 %v5589_v20, 16  ;;  %v6833_v38 = vld [vmem:[%s9083_s3 + $0x7ac] ss:$16 sps:$4 sm:$0xff]   ;;  %v2040_v20 = vshrl.u32 %v5592_v56, 16  ;;  %v2056_v3 = vshll.u32 %v5594_v10, 16 }
 0x241   :  { %4543 = vmatprep.subr.bf16.mxu0 %v6808_v15  ;;  %5108 = vmatprep.subr.bf16.mxu1 %v6811_v36  ;;  %v8737_v15 = vld [vmem:[#allocation2 + $0x20] sm:$0xf]  ;;  %v5689_v36 = vcombine.low %v1936_v61, %v1937_v5  ;;  %v6855_v12 = vld [vmem:[%s9083_s3 + $0x80c] ss:$16 sps:$4 sm:$0xff]   ;;  %v5627_v61 = vcombine.low %v8701_v19, %v8690_v34  ;;  %v6862_v19 = vld [vmem:[%s9083_s3 + $0x828] ss:$16 sps:$4 sm:$0xff]  }
 0x242   :  { %v2023_v43 = vrot.slane %v2021_v0, 1  ;;  %v5591_v25 = vcombine.low %v8737_v15, %v8362_v44  ;;  %v6864_v0 = vld [vmem:[%s9083_s3 + $0x82c] ss:$16 sps:$4 sm:$0xff]   ;;  %v6859_v34 = vld [vmem:[%s9083_s3 + $0x820] ss:$16 sps:$4 sm:$0xff]  }
 0x243   :  { %4493 = vmatmul.mubr.bf16.gmra.mrb[52].mxu0 %v5670_v31  ;;  %5058 = vmatmul.mubr.bf16.gmra.mrb[36].mxu1 %v5670_v31 }
 0x244   :  { %4544 = vmatpush1.bf16.msra.mxu0 %v6806_v4  ;;  %5109 = vmatpush1.bf16.msra.mxu1 %v6809_v2  ;;  %v1861_v4 = vshrl.u32 %v8699_v22, 16  ;;  %v2026_v2 = vshrl.u32 %v5590_v63, 16  ;;  %v6834_v22 = vld [vmem:[%s9083_s3 + $0x7c0] ss:$16 sps:$4 sm:$0xff]   ;;  %v2024_v9 = vor.u32 %v2023_v43, %v2019_v28  ;;  %v6849_v63 = vld [vmem:[%s9083_s3 + $0x7ec] ss:$16 sps:$4 sm:$0xff]  }
 0x245   :  { %4502 = vmatprep.mubr.bf16.mxu0 %v5680_v53  ;;  %5067 = vmatprep.mubr.bf16.mxu1 %v5680_v53  ;;  %v2035_v53 = vshll.u32 %v5591_v25, 16  ;;  %v2033_v7 = vshrl.u32 %v5591_v25, 16  ;;  %v8823_v25 = vld [vmem:[#allocation2 + $0x68] sm:$0xf]  ;;  %v6868_v28 = vld [vmem:[%s9083_s3 + $0x840] ss:$16 sps:$4 sm:$0xff]  }
 0x246   :  { %4545 = vmatprep.subr.bf16.mxu0 %v6816_v8  ;;  %5110 = vmatprep.subr.bf16.mxu1 %v6819_v29  ;;  %v1866_v31 = vor.u32 %v1865_v52, %v1861_v4  ;;  %v2031_v8 = vor.u32 %v2030_v58, %v2026_v2  ;;  %v2042_v29 = vshll.u32 %v5592_v56, 16  ;;  %v9109_v52 = vld [vmem:[#allocation8_spill] sm:$0xff]  ;;  %v5596_v58 = vcombine.low %v8791_v18, %v9110_v46 }
 0x247   :  { %v2037_v57 = vrot.slane %v2035_v53, 1  ;;  %v6870_v4 = vld [vmem:[%s9083_s3 + $0x844] ss:$16 sps:$4 sm:$0xff]  }
 0x248   :  { %4546 = vmatpush1.bf16.msra.mxu0 %v6814_v59  ;;  %5111 = vmatpush1.bf16.msra.mxu1 %v6817_v39  ;;  %v5688_v44 = vcombine.low %v1866_v31, %v1873_v23  ;;  %v5628_v59 = vcombine.low %v2024_v9, %v2031_v8  ;;  %v2044_v39 = vrot.slane %v2042_v29, 1  ;;  %v2070_v2 = vshll.u32 %v5596_v58, 16  ;;  %v6871_v29 = vld [vmem:[%s9083_s3 + $0x848] ss:$16 sps:$4 sm:$0xff]   ;;  %v6906_v46 = vld [vmem:[%s9083_s3 + $0x8c4] ss:$16 sps:$4 sm:$0xff]  }
 0x249   :  { %4547 = vmatprep.subr.bf16.mxu0 %v6822_v14  ;;  %5112 = vmatprep.subr.bf16.mxu1 %v6825_v13  ;;  %v6844_v14 = vld [vmem:[%s9083_s3 + $0x7e0] ss:$16 sps:$4 sm:$0xff]   ;;  %v6847_v13 = vld [vmem:[%s9083_s3 + $0x7e8] ss:$16 sps:$4 sm:$0xff]   ;;  %v5636_v8 = vcombine.low %v8737_v15, %v8729_v24  ;;  %v6882_v24 = vld [vmem:[%s9083_s3 + $0x86c] ss:$16 sps:$4 sm:$0xff]   ;;  %v5598_v15 = vcombine.low %v8823_v25, %v8404_v60 }
 0x24a   :  { %v2045_v5 = vor.u32 %v2044_v39, %v2040_v20  ;;  %v2072_v53 = vrot.slane %v2070_v2, 1  ;;  %v6880_v39 = vld [vmem:[%s9083_s3 + $0x868] ss:$16 sps:$4 sm:$0xff]   ;;  %v6886_v20 = vld [vmem:[%s9083_s3 + $0x880] ss:$16 sps:$4 sm:$0xff]  }
 0x24b   :  { %4503 = vmatmul.mubr.bf16.gmra.mrb[56].mxu0 %v5679_v11  ;;  %5068 = vmatmul.mubr.bf16.gmra.mrb[40].mxu1 %v5679_v11  ;;  %v2049_v11 = vshll.u32 %v5593_v54, 16 }
 0x24c   :  { %4548 = vmatpush1.bf16.msra.mxu0 %v6820_v16  ;;  %5113 = vmatpush1.bf16.msra.mxu1 %v6823_v1  ;;  %v6850_v16 = vld [vmem:[%s9083_s3 + $0x800] ss:$16 sps:$4 sm:$0xff]   ;;  %v6853_v1 = vld [vmem:[%s9083_s3 + $0x808] ss:$16 sps:$4 sm:$0xff]  }
 0x24d   :  { %4512 = vmatprep.mubr.bf16.mxu0 %v5689_v36  ;;  %5077 = vmatprep.mubr.bf16.mxu1 %v5689_v36  ;;  %v5595_v36 = vcombine.low %v8789_v50, %v9109_v52 }
 0x24e   :  { %4549 = vmatprep.subr.bf16.mxu0 %v6830_v30  ;;  %5114 = vmatprep.subr.bf16.mxu1 %v6833_v38  ;;  %v2038_v30 = vor.u32 %v2037_v57, %v2033_v7  ;;  %v2058_v38 = vrot.slane %v2056_v3, 1  ;;  %v5645_v57 = vcombine.low %v8765_v26, %v8757_v40  ;;  %v6889_v3 = vld [vmem:[%s9083_s3 + $0x888] ss:$16 sps:$4 sm:$0xff]   ;;  %v8867_v7 = vld [vmem:[#allocation2 + $0x70] sm:$0xf] }
 0x24f   :  { %v2063_v43 = vshll.u32 %v5595_v36, 16  ;;  %v6897_v40 = vld [vmem:[%s9083_s3 + $0x8a4] ss:$16 sps:$4 sm:$0xff]   ;;  %v6900_v26 = vld [vmem:[%s9083_s3 + $0x8ac] ss:$16 sps:$4 sm:$0xff]  }
 0x250   :  { %4550 = vmatpush1.bf16.msra.mxu0 %v6828_v32  ;;  %5115 = vmatpush1.bf16.msra.mxu1 %v6831_v35  ;;  %v5637_v56 = vcombine.low %v2038_v30, %v2045_v5  ;;  %v2051_v32 = vrot.slane %v2049_v11, 1  ;;  %v2054_v35 = vshrl.u32 %v5594_v10, 16  ;;  %v6936_v30 = vld [vmem:[#allocation2 + $0x74] sm:$0x1] }
 0x251   :  { %4551 = vmatprep.subr.bf16.mxu0 %v6836_v49  ;;  %5116 = vmatprep.subr.bf16.mxu1 %v6839_v17  ;;  %v6873_v49 = vld [vmem:[%s9083_s3 + $0x84c] ss:$16 sps:$4 sm:$0xff]   ;;  %v2047_v17 = vshrl.u32 %v5593_v54, 16  ;;  %v2065_v9 = vrot.slane %v2063_v43, 1  ;;  %v6888_v54 = vld [vmem:[%s9083_s3 + $0x884] ss:$16 sps:$4 sm:$0xff]  }
 0x252   :  { %v2059_v23 = vor.u32 %v2058_v38, %v2054_v35  ;;  %v8894_v35 = vld [vmem:[#allocation2 + $0x80] sm:$0xf]  ;;  %v6937_v43 = vld [vmem:[#allocation2 + $0x8c] sm:$0x1] }
 0x253   :  { %4513 = vmatmul.mubr.bf16.gmra.mrb[60].mxu0 %v5688_v44  ;;  %5078 = vmatmul.mubr.bf16.gmra.mrb[44].mxu1 %v5688_v44  ;;  %v2052_v31 = vor.u32 %v2051_v32, %v2047_v17  ;;  %v5654_v32 = vcombine.low %v8789_v50, %v8791_v18  ;;  %v6915_v50 = vld [vmem:[%s9083_s3 + $0x8e4] ss:$16 sps:$4 sm:$0xff]   ;;  %v6918_v18 = vld [vmem:[%s9083_s3 + $0x8ec] ss:$16 sps:$4 sm:$0xff]  }
 0x254   :  { %4552 = vmatpush1.bf16.msra.mxu0 %v6834_v22  ;;  %5117 = vmatpush1.bf16.msra.mxu1 %v6837_v6  ;;  %v2068_v22 = vshrl.u32 %v5596_v58, 16  ;;  %v8833_v6 = vld [vmem:[#allocation2 + $0x60] sm:$0xf]  ;;  %v6909_v58 = vld [vmem:[%s9083_s3 + $0x8cc] ss:$16 sps:$4 sm:$0xff]  }
 0x255   :  { %4555 = vmatprep.mubr.bf16.mxu0 %v5628_v59  ;;  %5120 = vmatprep.mubr.bf16.mxu1 %v5628_v59  ;;  %v5646_v44 = vcombine.low %v2052_v31, %v2059_v23  ;;  %v5597_v10 = vcombine.low %v8833_v6, %v8402_v33  ;;  %v6877_v59 = vld [vmem:[%s9083_s3 + $0x860] ss:$16 sps:$4 sm:$0xff]   ;;  %v6891_v33 = vld [vmem:[%s9083_s3 + $0x88c] ss:$16 sps:$4 sm:$0xff]  }
 0x256   :  { %4553 = vmatprep.subr.bf16.mxu0 %v6846_v48  ;;  %5118 = vmatprep.subr.bf16.mxu1 %v6849_v63  ;;  %v6879_v48 = vld [vmem:[%s9083_s3 + $0x864] ss:$16 sps:$4 sm:$0xff]   ;;  %v2061_v63 = vshrl.u32 %v5595_v36, 16  ;;  %v2073_v60 = vor.u32 %v2072_v53, %v2068_v22  ;;  %v6913_v22 = vld [vmem:[%s9083_s3 + $0x8e0] ss:$16 sps:$4 sm:$0xff]  }
 0x257   :  { %v2075_v38 = vshrl.u32 %v5597_v10, 16 }
 0x258   :  { %4554 = vmatpush1.bf16.msra.mxu0 %v6844_v14  ;;  %5119 = vmatpush1.bf16.msra.mxu1 %v6847_v13  ;;  %v2066_v14 = vor.u32 %v2065_v9, %v2061_v63  ;;  %v2084_v13 = vshll.u32 %v5598_v15, 16 }
 0x259   :  { %4636 = vmatprep.subr.bf16.mxu0 %v6852_v21  ;;  %5201 = vmatprep.subr.bf16.mxu1 %v6855_v12  ;;  %v8857_v21 = vld [vmem:[#allocation2 + $0x78] sm:$0xf]  ;;  %v2077_v12 = vshll.u32 %v5597_v10, 16 }
 0x25a   :  { %v5655_v5 = vcombine.low %v2066_v14, %v2073_v60  ;;  %v6939_v60 = vld [vmem:[#allocation2 + $0x94] sm:$0x1] }
 0x25b   :  { %4556 = vmatmul.mubr.bf16.vlgmr.msra.gmra.mrb[32].mxu0 %v5627_v61  ;;  %5121 = vmatmul.mubr.bf16.vlgmr.msra.gmra.mrb[16].mxu1 %v5627_v61  ;;  %v2079_v11 = vrot.slane %v2077_v12, 1  ;;  %v2082_v61 = vshrl.u32 %v5598_v15, 16  ;;  %v1393_v15 = vld [vmem:[#allocation2 + $0x98] sm:$0xf] }
 0x25c   :  { %4637 = vmatpush1.bf16.msra.mxu0 %v6850_v16  ;;  %5202 = vmatpush1.bf16.msra.mxu1 %v6853_v1  ;;  %v2086_v16 = vrot.slane %v2084_v13, 1  ;;  %v5600_v1 = vcombine.low %v8857_v21, %v8419_v47  ;;  %v6895_v47 = vld [vmem:[%s9083_s3 + $0x8a0] ss:$16 sps:$4 sm:$0xff]  }
 0x25d   :  { %4565 = vmatprep.mubr.bf16.mxu0 %v5637_v56  ;;  %5130 = vmatprep.mubr.bf16.mxu1 %v5637_v56  ;;  %v8890_v56 = vld [vmem:[#allocation2 + $0x88] sm:$0xf] }
 0x25e   :  { %4638 = vmatprep.subr.bf16.mxu0 %v6861_v41  ;;  %5203 = vmatprep.subr.bf16.mxu1 %v6864_v0  ;;  %v5599_v41 = vcombine.low %v8867_v7, %v6936_v30  ;;  %v6898_v0 = vld [vmem:[%s9083_s3 + $0x8a8] ss:$16 sps:$4 sm:$0xff]   ;;  %v2087_v52 = vor.u32 %v2086_v16, %v2082_v61  ;;  %v2098_v36 = vshll.u32 %v5600_v1, 16  ;;  %v5602_v2 = vcombine.low %v8890_v56, %v6937_v43 }
 0x260   :  { %4639 = vmatpush1.bf16.msra.mxu0 %v6859_v34  ;;  %5204 = vmatpush1.bf16.msra.mxu1 %v6862_v19  ;;  %v2080_v34 = vor.u32 %v2079_v11, %v2075_v38  ;;  %v2091_v19 = vshll.u32 %v5599_v41, 16  ;;  %v2100_v23 = vrot.slane %v2098_v36, 1  ;;  %v2089_v9 = vshrl.u32 %v5599_v41, 16  ;;  %v9112_v38 = vld [vmem:[#allocation7_spill] sm:$0xff] }
 0x261   :  { %4640 = vmatprep.subr.bf16.mxu0 %v6870_v4  ;;  %5205 = vmatprep.subr.bf16.mxu1 %v6873_v49  ;;  %v6904_v4 = vld [vmem:[%s9083_s3 + $0x8c0] ss:$16 sps:$4 sm:$0xff]   ;;  %v6907_v49 = vld [vmem:[%s9083_s3 + $0x8c8] ss:$16 sps:$4 sm:$0xff]  }
 0x262   :  { %v5664_v17 = vcombine.low %v2080_v34, %v2087_v52  ;;  %v2093_v31 = vrot.slane %v2091_v19, 1 }
 0x263   :  { %4566 = vmatmul.mubr.bf16.gmra.mrb[36].mxu0 %v5636_v8  ;;  %5131 = vmatmul.mubr.bf16.gmra.mrb[20].mxu1 %v5636_v8  ;;  %v6938_v8 = vld [vmem:[#allocation2 + $0x84] sm:$0x1] }
 0x264   :  { %4575 = vmatprep.mubr.bf16.mxu0 %v5646_v44  ;;  %5140 = vmatprep.mubr.bf16.mxu1 %v5646_v44  ;;  %v6916_v44 = vld [vmem:[%s9083_s3 + $0x8e8] ss:$16 sps:$4 sm:$0xff]   ;;  %v2094_v63 = vor.u32 %v2093_v31, %v2089_v9 }
 0x265   :  { %4641 = vmatpush1.bf16.msra.mxu0 %v6868_v28  ;;  %5206 = vmatpush1.bf16.msra.mxu1 %v6871_v29  ;;  %v2096_v28 = vshrl.u32 %v5600_v1, 16  ;;  %v5601_v29 = vcombine.low %v8894_v35, %v6938_v8 }
 0x266   :  { %4642 = vmatprep.subr.bf16.mxu0 %v6879_v48  ;;  %5207 = vmatprep.subr.bf16.mxu1 %v6882_v24  ;;  %v2112_v48 = vshll.u32 %v5602_v2, 16  ;;  %v1392_v24 = vld [vmem:[#allocation2 + $0x90] sm:$0xf] }
 0x267   :  { %v2101_v53 = vor.u32 %v2100_v23, %v2096_v28  ;;  %v2105_v10 = vshll.u32 %v5601_v29, 16  ;;  %v5603_v13 = vcombine.low %v1392_v24, %v6939_v60 }
 0x268   :  { %v2114_v14 = vrot.slane %v2112_v48, 1 }
 0x269   :  { %4643 = vmatpush1.bf16.msra.mxu0 %v6877_v59  ;;  %5208 = vmatpush1.bf16.msra.mxu1 %v6880_v39  ;;  %v5663_v59 = vcombine.low %v8833_v6, %v8823_v25  ;;  %v5673_v39 = vcombine.low %v2094_v63, %v2101_v53  ;;  %v2107_v12 = vrot.slane %v2105_v10, 1  ;;  %v5672_v25 = vcombine.low %v8867_v7, %v8857_v21 }
 0x26a   :  { %4644 = vmatprep.subr.bf16.mxu0 %v6888_v54  ;;  %5209 = vmatprep.subr.bf16.mxu1 %v6891_v33  ;;  %v6940_v54 = vld [vmem:[#allocation2 + $0x9c] sm:$0x1]  ;;  %v2117_v61 = vshrl.u32 %v5603_v13, 16  ;;  %v5690_v21 = vcombine.low %v1392_v24, %v1393_v15  ;;  %v9111_v7 = vmov 0  }
 0x26b   :  { %4576 = vmatmul.mubr.bf16.gmra.mrb[40].mxu0 %v5645_v57  ;;  %5141 = vmatmul.mubr.bf16.gmra.mrb[24].mxu1 %v5645_v57  ;;  %v5604_v33 = vcombine.low %v1393_v15, %v6940_v54  ;;  %v2110_v57 = vshrl.u32 %v5602_v2, 16 }
 0x26c   :  { %4585 = vmatprep.mubr.bf16.mxu0 %v5655_v5  ;;  %5150 = vmatprep.mubr.bf16.mxu1 %v5655_v5  ;;  %v2119_v5 = vshll.u32 %v5603_v13, 16 }
 0x26d   :  { %4645 = vmatpush1.bf16.msra.mxu0 %v6886_v20  ;;  %5210 = vmatpush1.bf16.msra.mxu1 %v6889_v3  ;;  %v2103_v20 = vshrl.u32 %v5601_v29, 16  ;;  %v2115_v3 = vor.u32 %v2114_v14, %v2110_v57  ;;  %v2126_v16 = vshll.u32 %v5604_v33, 16 }
 0x26e   :  { %4646 = vmatprep.subr.bf16.mxu0 %v6897_v40  ;;  %5211 = vmatprep.subr.bf16.mxu1 %v6900_v26  ;;  %v2121_v40 = vrot.slane %v2119_v5, 1  ;;  %v2124_v26 = vshrl.u32 %v5604_v33, 16 }
 0x26f   :  { %v2108_v1 = vor.u32 %v2107_v12, %v2103_v20  ;;  %v2128_v11 = vrot.slane %v2126_v16, 1 }
 0x270   :  { %v2122_v30 = vor.u32 %v2121_v40, %v2117_v61 }
 0x271   :  { %4647 = vmatpush1.bf16.msra.mxu0 %v6895_v47  ;;  %5212 = vmatpush1.bf16.msra.mxu1 %v6898_v0  ;;  %v5682_v6 = vcombine.low %v2108_v1, %v2115_v3  ;;  %v2129_v41 = vor.u32 %v2128_v11, %v2124_v26  ;;  %v5681_v47 = vcombine.low %v8894_v35, %v8890_v56 }
 0x272   :  { %4648 = vmatprep.subr.bf16.mxu0 %v6906_v46  ;;  %5213 = vmatprep.subr.bf16.mxu1 %v6909_v58 }
 0x273   :  { %4586 = vmatmul.mubr.bf16.gmra.mrb[44].mxu0 %v5654_v32  ;;  %5151 = vmatmul.mubr.bf16.gmra.mrb[28].mxu1 %v5654_v32  ;;  %v5691_v0 = vcombine.low %v2122_v30, %v2129_v41 }
 0x274   :  { %4595 = vmatprep.mubr.bf16.mxu0 %v5664_v17  ;;  %5160 = vmatprep.mubr.bf16.mxu1 %v5664_v17 }
 0x275   :  { %4649 = vmatpush1.bf16.msra.mxu0 %v6904_v4  ;;  %5214 = vmatpush1.bf16.msra.mxu1 %v6907_v49 }
 0x276   :  { %4650 = vmatprep.subr.bf16.mxu0 %v6915_v50  ;;  %5215 = vmatprep.subr.bf16.mxu1 %v6918_v18 }
 0x279   :  { %4651 = vmatpush1.bf16.msra.mxu0 %v6913_v22  ;;  %5216 = vmatpush1.bf16.msra.mxu1 %v6916_v44 }
 0x27b   :  { %4596 = vmatmul.mubr.bf16.gmra.mrb[48].mxu0 %v5663_v59  ;;  %5161 = vmatmul.mubr.bf16.gmra.mrb[32].mxu1 %v5663_v59 }
 0x27c   :  { %4605 = vmatprep.mubr.bf16.mxu0 %v5673_v39  ;;  %5170 = vmatprep.mubr.bf16.mxu1 %v5673_v39 }
 0x283   :  { %4606 = vmatmul.mubr.bf16.gmra.mrb[52].mxu0 %v5672_v25  ;;  %5171 = vmatmul.mubr.bf16.gmra.mrb[36].mxu1 %v5672_v25 }
 0x284   :  { %4615 = vmatprep.mubr.bf16.mxu0 %v5682_v6  ;;  %5180 = vmatprep.mubr.bf16.mxu1 %v5682_v6 }
 0x28b   :  { %4616 = vmatmul.mubr.bf16.gmra.mrb[56].mxu0 %v5681_v47  ;;  %5181 = vmatmul.mubr.bf16.gmra.mrb[40].mxu1 %v5681_v47 }
 0x28c   :  { %4625 = vmatprep.mubr.bf16.mxu0 %v5691_v0  ;;  %5190 = vmatprep.mubr.bf16.mxu1 %v5691_v0 }
 0x293   :  { %4626 = vmatmul.mubr.bf16.gmra.mrb[60].mxu0 %v5690_v21  ;;  %5191 = vmatmul.mubr.bf16.gmra.mrb[44].mxu1 %v5690_v21 }
 0x294   :  { %4668 = vmatprep.mubr.bf16.mxu0 %v9111_v7  ;;  %5233 = vmatprep.mubr.bf16.mxu1 %v9111_v7 }
 0x29b   :  { %4669 = vmatmul.mubr.bf16.vlgmr.msra.gmra.mrb[32].mxu0 %v9112_v38  ;;  %5234 = vmatmul.mubr.bf16.vlgmr.msra.gmra.mrb[16].mxu1 %v9112_v38 }
 0x29c   :  { %4678 = vmatprep.mubr.bf16.mxu0 %v9111_v7  ;;  %5243 = vmatprep.mubr.bf16.mxu1 %v9111_v7 }
 0x2a3   :  { %4679 = vmatmul.mubr.bf16.gmra.mrb[36].mxu0 %v8445_v62  ;;  %5244 = vmatmul.mubr.bf16.gmra.mrb[20].mxu1 %v8445_v62  ;;  %v9113_v62 = vld [vmem:[#allocation6_spill] sm:$0xff] }
 0x2a4   :  { %4688 = vmatprep.mubr.bf16.mxu0 %v9111_v7  ;;  %5253 = vmatprep.mubr.bf16.mxu1 %v9111_v7  ;;  %v9116_v36 = vsub.s32 1, %v9113_v62 }
 0x2ab   :  { %4689 = vmatmul.mubr.bf16.gmra.mrb[40].mxu0 %v8447_v42  ;;  %5254 = vmatmul.mubr.bf16.gmra.mrb[24].mxu1 %v8447_v42  ;;  %v2578_v42 = vld [vmem:[%s9084_s4] sm:$0xf]  ;;  %s6967_s4 = smov [#allocation3]  }
 0x2ac   :  { %4698 = vmatprep.mubr.bf16.mxu0 %v9111_v7  ;;  %5263 = vmatprep.mubr.bf16.mxu1 %v9111_v7  ;;  %v8968_v46 = vrot.slane %v2578_v42, %v9116_v36  ;;  %s5448_s21 = sshll.u32 %s6967_s4, 4  ;;  %s5449_s21 = int_to_ptr.vmem [resolvable:$true] %s5448_s21 }
 0x2ad   :  { %s6941_s22 = scalar_lea.vmem %s5449_s21, 12288  ;;  %p6946_p1 = scmp.lt.s32.totalorder %s5449_s21, %s5449_s21 }
 0x2ae   :  { %p6942_p0 = scmp.ne.s32.totalorder %s5449_s21, %s6941_s22  ;;  %p6947_p2 = scmp.lt.s32.totalorder %s6941_s22, %s6941_s22 }
 0x2b0   :  { %p6948_p3 = por %p6947_p2, %p6946_p1 }
 0x2b2   :  { %p6949_p4 = pnand %p6948_p3, %p6942_p0 }
 0x2b3   :  { %4699 = vmatmul.mubr.bf16.gmra.mrb[44].mxu0 %v8457_v55  ;;  %5264 = vmatmul.mubr.bf16.gmra.mrb[28].mxu1 %v8457_v55  ;;  %v2594_v55 = vsub.s32 3, %v9113_v62 }
 0x2b4   :  { %4708 = vmatprep.mubr.bf16.mxu0 %v9111_v7  ;;  %5273 = vmatprep.mubr.bf16.mxu1 %v9111_v7 }
 0x2b5   :  { %v8970_v58 = vrot.slane %v2578_v42, %v2594_v55 }
 0x2bb   :  { %4709 = vmatmul.mubr.bf16.gmra.mrb[48].mxu0 %v8470_v45  ;;  %5274 = vmatmul.mubr.bf16.gmra.mrb[32].mxu1 %v8470_v45  ;;  %v9114_v45 = vsub.s32 0, %v9113_v62 }
 0x2bc   :  { %4718 = vmatprep.mubr.bf16.mxu0 %v9111_v7  ;;  %5283 = vmatprep.mubr.bf16.mxu1 %v9111_v7 }
 0x2c3   :  { %4719 = vmatmul.mubr.bf16.gmra.mrb[52].mxu0 %v8483_v37  ;;  %5284 = vmatmul.mubr.bf16.gmra.mrb[36].mxu1 %v8483_v37  ;;  %v8960_v37 = vrot.slane %v2578_v42, %v9114_v45 }
 0x2c4   :  { %4728 = vmatprep.mubr.bf16.mxu0 %v9111_v7  ;;  %5293 = vmatprep.mubr.bf16.mxu1 %v9111_v7 }
 0x2cb   :  { %4729 = vmatmul.mubr.bf16.gmra.mrb[56].mxu0 %v8489_v51  ;;  %5294 = vmatmul.mubr.bf16.gmra.mrb[40].mxu1 %v8489_v51  ;;  %v9115_v51 = vsub.s32 2, %v9113_v62 }
 0x2cc   :  { %4738 = vmatprep.mubr.bf16.mxu0 %v9111_v7  ;;  %5303 = vmatprep.mubr.bf16.mxu1 %v9111_v7 }
 0x2cd   :  { %v8964_v52 = vrot.slane %v2578_v42, %v9115_v51 }
 0x2d3   :  { %4739 = vmatmul.mubr.bf16.gmra.mrb[60].mxu0 %v8491_v27  ;;  %5304 = vmatmul.mubr.bf16.gmra.mrb[44].mxu1 %v8491_v27 }
 0x36e   :  { %v4670_v27 = vpop.f32.mrb[32].mxu0  ;;  %v5235_v56 = vpop.f32.mrb[16].mxu1 }
 0x36f   :  { %v6029_v34 = vadd.f32 %v4670_v27, %v8960_v37  ;;  %v6061_v19 = vadd.f32 %v5235_v56, %v8964_v52  ;;  %v4672_v32 = vpop.f32.mrb[33].mxu0  ;;  %v5237_v35 = vpop.f32.mrb[17].mxu1 }
 0x370   :  { %v6030_v4 = vadd.f32 %v4672_v32, %v8968_v46  ;;  %v6062_v49 = vadd.f32 %v5237_v35, %v8970_v58  ;;  %v4674_v17 = vpop.f32.mrb[34].mxu0  ;;  %v5239_v23 = vpop.f32.mrb[18].mxu1 }
 0x371   :  { %v5314_v43 = vmax.f32 %v6029_v34, 0.0  ;;  %v5316_v2 = vmax.f32 %v6061_v19, 0.0  ;;  %v6031_v50 = vadd.f32 %v4674_v17, %v8960_v37  ;;  %v6063_v18 = vadd.f32 %v5239_v23, %v8964_v52  ;;  %v4676_v31 = vpop.f32.mrb[35].mxu0  ;;  %v5241_v28 = vpop.f32.mrb[19].mxu1 }
 0x372   :  { %v5315_v8 = vmax.f32 %v6030_v4, 0.0  ;;  %v5317_v29 = vmax.f32 %v6062_v49, 0.0  ;;  %v6032_v22 = vadd.f32 %v4676_v31, %v8968_v46  ;;  %v6064_v44 = vadd.f32 %v5241_v28, %v8970_v58 }
 0x373   :  { %5378 = vst [vmem:[#allocation3] sm:$0xff] %v5314_v43  ;;  %5411 = vst [vmem:[#allocation3 + $0x200] sm:$0xff] %v5316_v2  ;;  %v5318_v9 = vmax.f32 %v6031_v50, 0.0  ;;  %v5320_v53 = vmax.f32 %v6063_v18, 0.0 }
 0x374   :  { %5379 = vst.msk [vmem:[#allocation3 + $0x8] sm:$0xff] %vm910_vm7, %v5315_v8  ;;  %5412 = vst.msk [vmem:[#allocation3 + $0x208] sm:$0xff] %vm910_vm7, %v5317_v29  ;;  %v5319_v48 = vmax.f32 %v6032_v22, 0.0  ;;  %v5321_v24 = vmax.f32 %v6064_v44, 0.0 }
 0x375   :  { %5380 = vst [vmem:[#allocation3 + $0x10] sm:$0xff] %v5318_v9  ;;  %5413 = vst [vmem:[#allocation3 + $0x210] sm:$0xff] %v5320_v53 }
 0x376   :  { %5381 = vst.msk [vmem:[#allocation3 + $0x18] sm:$0xff] %vm910_vm7, %v5319_v48  ;;  %5414 = vst.msk [vmem:[#allocation3 + $0x218] sm:$0xff] %vm910_vm7, %v5321_v24  ;;  %v4680_v15 = vpop.f32.mrb[36].mxu0  ;;  %v5245_v63 = vpop.f32.mrb[20].mxu1 }
 0x377   :  { %v6033_v10 = vadd.f32 %v4680_v15, %v8960_v37  ;;  %v6065_v59 = vadd.f32 %v5245_v63, %v8964_v52  ;;  %v4682_v39 = vpop.f32.mrb[37].mxu0  ;;  %v5247_v14 = vpop.f32.mrb[21].mxu1 }
 0x378   :  { %v6034_v60 = vadd.f32 %v4682_v39, %v8968_v46  ;;  %v6066_v13 = vadd.f32 %v5247_v14, %v8970_v58  ;;  %v4684_v54 = vpop.f32.mrb[38].mxu0  ;;  %v5249_v33 = vpop.f32.mrb[22].mxu1 }
 0x379   :  { %v5322_v12 = vmax.f32 %v6033_v10, 0.0  ;;  %v5324_v57 = vmax.f32 %v6065_v59, 0.0  ;;  %v6035_v20 = vadd.f32 %v4684_v54, %v8960_v37  ;;  %v6067_v3 = vadd.f32 %v5249_v33, %v8964_v52  ;;  %v4686_v5 = vpop.f32.mrb[39].mxu0  ;;  %v5251_v16 = vpop.f32.mrb[23].mxu1 }
 0x37a   :  { %v5323_v1 = vmax.f32 %v6034_v60, 0.0  ;;  %v5325_v25 = vmax.f32 %v6066_v13, 0.0  ;;  %v6036_v6 = vadd.f32 %v4686_v5, %v8968_v46  ;;  %v6068_v40 = vadd.f32 %v5251_v16, %v8970_v58 }
 0x37b   :  { %5382 = vst [vmem:[#allocation3 + $0x20] sm:$0xff] %v5322_v12  ;;  %5415 = vst [vmem:[#allocation3 + $0x220] sm:$0xff] %v5324_v57  ;;  %v5326_v26 = vmax.f32 %v6035_v20, 0.0  ;;  %v5328_v11 = vmax.f32 %v6067_v3, 0.0 }
 0x37c   :  { %5383 = vst.msk [vmem:[#allocation3 + $0x28] sm:$0xff] %vm910_vm7, %v5323_v1  ;;  %5416 = vst.msk [vmem:[#allocation3 + $0x228] sm:$0xff] %vm910_vm7, %v5325_v25  ;;  %v5327_v61 = vmax.f32 %v6036_v6, 0.0  ;;  %v5329_v30 = vmax.f32 %v6068_v40, 0.0 }
 0x37d   :  { %5384 = vst [vmem:[#allocation3 + $0x30] sm:$0xff] %v5326_v26  ;;  %5417 = vst [vmem:[#allocation3 + $0x230] sm:$0xff] %v5328_v11 }
 0x37e   :  { %5385 = vst.msk [vmem:[#allocation3 + $0x38] sm:$0xff] %vm910_vm7, %v5327_v61  ;;  %5418 = vst.msk [vmem:[#allocation3 + $0x238] sm:$0xff] %vm910_vm7, %v5329_v30  ;;  %v4690_v41 = vpop.f32.mrb[40].mxu0  ;;  %v5255_v47 = vpop.f32.mrb[24].mxu1 }
 0x37f   :  { %v6037_v0 = vadd.f32 %v4690_v41, %v8960_v37  ;;  %v6069_v21 = vadd.f32 %v5255_v47, %v8964_v52  ;;  %v4692_v7 = vpop.f32.mrb[41].mxu0  ;;  %v5257_v38 = vpop.f32.mrb[25].mxu1 }
 0x380   :  { %v6038_v42 = vadd.f32 %v4692_v7, %v8968_v46  ;;  %v6070_v62 = vadd.f32 %v5257_v38, %v8970_v58  ;;  %v4694_v55 = vpop.f32.mrb[42].mxu0  ;;  %v5259_v45 = vpop.f32.mrb[26].mxu1 }
 0x381   :  { %v5330_v51 = vmax.f32 %v6037_v0, 0.0  ;;  %v5332_v36 = vmax.f32 %v6069_v21, 0.0  ;;  %v6039_v27 = vadd.f32 %v4694_v55, %v8960_v37  ;;  %v6071_v56 = vadd.f32 %v5259_v45, %v8964_v52  ;;  %v4696_v34 = vpop.f32.mrb[43].mxu0  ;;  %v5261_v19 = vpop.f32.mrb[27].mxu1 }
 0x382   :  { %v5331_v32 = vmax.f32 %v6038_v42, 0.0  ;;  %v5333_v35 = vmax.f32 %v6070_v62, 0.0  ;;  %v6040_v4 = vadd.f32 %v4696_v34, %v8968_v46  ;;  %v6072_v49 = vadd.f32 %v5261_v19, %v8970_v58 }
 0x383   :  { %5386 = vst [vmem:[#allocation3 + $0x40] sm:$0xff] %v5330_v51  ;;  %5419 = vst [vmem:[#allocation3 + $0x240] sm:$0xff] %v5332_v36  ;;  %v5334_v17 = vmax.f32 %v6039_v27, 0.0  ;;  %v5336_v23 = vmax.f32 %v6071_v56, 0.0 }
 0x384   :  { %5387 = vst.msk [vmem:[#allocation3 + $0x48] sm:$0xff] %vm910_vm7, %v5331_v32  ;;  %5420 = vst.msk [vmem:[#allocation3 + $0x248] sm:$0xff] %vm910_vm7, %v5333_v35  ;;  %v5335_v43 = vmax.f32 %v6040_v4, 0.0  ;;  %v5337_v2 = vmax.f32 %v6072_v49, 0.0 }
 0x385   :  { %5388 = vst [vmem:[#allocation3 + $0x50] sm:$0xff] %v5334_v17  ;;  %5421 = vst [vmem:[#allocation3 + $0x250] sm:$0xff] %v5336_v23 }
 0x386   :  { %5389 = vst.msk [vmem:[#allocation3 + $0x58] sm:$0xff] %vm910_vm7, %v5335_v43  ;;  %5422 = vst.msk [vmem:[#allocation3 + $0x258] sm:$0xff] %vm910_vm7, %v5337_v2  ;;  %v4700_v50 = vpop.f32.mrb[44].mxu0  ;;  %v5265_v18 = vpop.f32.mrb[28].mxu1 }
 0x387   :  { %v6041_v31 = vadd.f32 %v4700_v50, %v8960_v37  ;;  %v6073_v28 = vadd.f32 %v5265_v18, %v8964_v52  ;;  %v4702_v8 = vpop.f32.mrb[45].mxu0  ;;  %v5267_v29 = vpop.f32.mrb[29].mxu1 }
 0x388   :  { %v6042_v22 = vadd.f32 %v4702_v8, %v8968_v46  ;;  %v6074_v44 = vadd.f32 %v5267_v29, %v8970_v58  ;;  %v4704_v9 = vpop.f32.mrb[46].mxu0  ;;  %v5269_v53 = vpop.f32.mrb[30].mxu1 }
 0x389   :  { %v5338_v48 = vmax.f32 %v6041_v31, 0.0  ;;  %v5340_v24 = vmax.f32 %v6073_v28, 0.0  ;;  %v6043_v15 = vadd.f32 %v4704_v9, %v8960_v37  ;;  %v6075_v63 = vadd.f32 %v5269_v53, %v8964_v52  ;;  %v4706_v10 = vpop.f32.mrb[47].mxu0  ;;  %v5271_v59 = vpop.f32.mrb[31].mxu1 }
 0x38a   :  { %v5339_v39 = vmax.f32 %v6042_v22, 0.0  ;;  %v5341_v14 = vmax.f32 %v6074_v44, 0.0  ;;  %v6044_v60 = vadd.f32 %v4706_v10, %v8968_v46  ;;  %v6076_v13 = vadd.f32 %v5271_v59, %v8970_v58 }
 0x38b   :  { %5390 = vst [vmem:[#allocation3 + $0x60] sm:$0xff] %v5338_v48  ;;  %5423 = vst [vmem:[#allocation3 + $0x260] sm:$0xff] %v5340_v24  ;;  %v5342_v54 = vmax.f32 %v6043_v15, 0.0  ;;  %v5344_v33 = vmax.f32 %v6075_v63, 0.0 }
 0x38c   :  { %5391 = vst.msk [vmem:[#allocation3 + $0x68] sm:$0xff] %vm910_vm7, %v5339_v39  ;;  %5424 = vst.msk [vmem:[#allocation3 + $0x268] sm:$0xff] %vm910_vm7, %v5341_v14  ;;  %v5343_v12 = vmax.f32 %v6044_v60, 0.0  ;;  %v5345_v57 = vmax.f32 %v6076_v13, 0.0 }
 0x38d   :  { %5392 = vst [vmem:[#allocation3 + $0x70] sm:$0xff] %v5342_v54  ;;  %5425 = vst [vmem:[#allocation3 + $0x270] sm:$0xff] %v5344_v33 }
 0x38e   :  { %5393 = vst.msk [vmem:[#allocation3 + $0x78] sm:$0xff] %vm910_vm7, %v5343_v12  ;;  %5426 = vst.msk [vmem:[#allocation3 + $0x278] sm:$0xff] %vm910_vm7, %v5345_v57  ;;  %v4710_v20 = vpop.f32.mrb[48].mxu0  ;;  %v5275_v3 = vpop.f32.mrb[32].mxu1 }
 0x38f   :  { %v6045_v5 = vadd.f32 %v4710_v20, %v8960_v37  ;;  %v6077_v16 = vadd.f32 %v5275_v3, %v8964_v52  ;;  %v4712_v1 = vpop.f32.mrb[49].mxu0  ;;  %v5277_v25 = vpop.f32.mrb[33].mxu1 }
 0x390   :  { %v6046_v6 = vadd.f32 %v4712_v1, %v8968_v46  ;;  %v6078_v40 = vadd.f32 %v5277_v25, %v8970_v58  ;;  %v4714_v26 = vpop.f32.mrb[50].mxu0  ;;  %v5279_v11 = vpop.f32.mrb[34].mxu1 }
 0x391   :  { %v5346_v61 = vmax.f32 %v6045_v5, 0.0  ;;  %v5348_v30 = vmax.f32 %v6077_v16, 0.0  ;;  %v6047_v41 = vadd.f32 %v4714_v26, %v8960_v37  ;;  %v6079_v47 = vadd.f32 %v5279_v11, %v8964_v52  ;;  %v4716_v0 = vpop.f32.mrb[51].mxu0  ;;  %v5281_v21 = vpop.f32.mrb[35].mxu1 }
 0x392   :  { %v5347_v7 = vmax.f32 %v6046_v6, 0.0  ;;  %v5349_v38 = vmax.f32 %v6078_v40, 0.0  ;;  %v6048_v42 = vadd.f32 %v4716_v0, %v8968_v46  ;;  %v6080_v62 = vadd.f32 %v5281_v21, %v8970_v58 }
 0x393   :  { %5394 = vst [vmem:[#allocation3 + $0x80] sm:$0xff] %v5346_v61  ;;  %5427 = vst [vmem:[#allocation3 + $0x280] sm:$0xff] %v5348_v30  ;;  %v5350_v55 = vmax.f32 %v6047_v41, 0.0  ;;  %v5352_v45 = vmax.f32 %v6079_v47, 0.0 }
 0x394   :  { %5395 = vst.msk [vmem:[#allocation3 + $0x88] sm:$0xff] %vm910_vm7, %v5347_v7  ;;  %5428 = vst.msk [vmem:[#allocation3 + $0x288] sm:$0xff] %vm910_vm7, %v5349_v38  ;;  %v5351_v51 = vmax.f32 %v6048_v42, 0.0  ;;  %v5353_v36 = vmax.f32 %v6080_v62, 0.0 }
 0x395   :  { %5396 = vst [vmem:[#allocation3 + $0x90] sm:$0xff] %v5350_v55  ;;  %5429 = vst [vmem:[#allocation3 + $0x290] sm:$0xff] %v5352_v45 }
 0x396   :  { %5397 = vst.msk [vmem:[#allocation3 + $0x98] sm:$0xff] %vm910_vm7, %v5351_v51  ;;  %5430 = vst.msk [vmem:[#allocation3 + $0x298] sm:$0xff] %vm910_vm7, %v5353_v36  ;;  %v4720_v27 = vpop.f32.mrb[52].mxu0  ;;  %v5285_v56 = vpop.f32.mrb[36].mxu1 }
 0x397   :  { %v6049_v34 = vadd.f32 %v4720_v27, %v8960_v37  ;;  %v6081_v19 = vadd.f32 %v5285_v56, %v8964_v52  ;;  %v4722_v32 = vpop.f32.mrb[53].mxu0  ;;  %v5287_v35 = vpop.f32.mrb[37].mxu1 }
 0x398   :  { %v6050_v4 = vadd.f32 %v4722_v32, %v8968_v46  ;;  %v6082_v49 = vadd.f32 %v5287_v35, %v8970_v58  ;;  %v4724_v17 = vpop.f32.mrb[54].mxu0  ;;  %v5289_v23 = vpop.f32.mrb[38].mxu1 }
 0x399   :  { %v5354_v43 = vmax.f32 %v6049_v34, 0.0  ;;  %v5356_v2 = vmax.f32 %v6081_v19, 0.0  ;;  %v6051_v50 = vadd.f32 %v4724_v17, %v8960_v37  ;;  %v6083_v18 = vadd.f32 %v5289_v23, %v8964_v52  ;;  %v4726_v31 = vpop.f32.mrb[55].mxu0  ;;  %v5291_v28 = vpop.f32.mrb[39].mxu1 }
 0x39a   :  { %v5355_v8 = vmax.f32 %v6050_v4, 0.0  ;;  %v5357_v29 = vmax.f32 %v6082_v49, 0.0  ;;  %v6052_v22 = vadd.f32 %v4726_v31, %v8968_v46  ;;  %v6084_v44 = vadd.f32 %v5291_v28, %v8970_v58 }
 0x39b   :  { %5398 = vst [vmem:[#allocation3 + $0xa0] sm:$0xff] %v5354_v43  ;;  %5431 = vst [vmem:[#allocation3 + $0x2a0] sm:$0xff] %v5356_v2  ;;  %v5358_v9 = vmax.f32 %v6051_v50, 0.0  ;;  %v5360_v53 = vmax.f32 %v6083_v18, 0.0 }
 0x39c   :  { %5399 = vst.msk [vmem:[#allocation3 + $0xa8] sm:$0xff] %vm910_vm7, %v5355_v8  ;;  %5432 = vst.msk [vmem:[#allocation3 + $0x2a8] sm:$0xff] %vm910_vm7, %v5357_v29  ;;  %v5359_v48 = vmax.f32 %v6052_v22, 0.0  ;;  %v5361_v24 = vmax.f32 %v6084_v44, 0.0 }
 0x39d   :  { %5400 = vst [vmem:[#allocation3 + $0xb0] sm:$0xff] %v5358_v9  ;;  %5433 = vst [vmem:[#allocation3 + $0x2b0] sm:$0xff] %v5360_v53 }
 0x39e   :  { %5401 = vst.msk [vmem:[#allocation3 + $0xb8] sm:$0xff] %vm910_vm7, %v5359_v48  ;;  %5434 = vst.msk [vmem:[#allocation3 + $0x2b8] sm:$0xff] %vm910_vm7, %v5361_v24  ;;  %v4730_v15 = vpop.f32.mrb[56].mxu0  ;;  %v5295_v63 = vpop.f32.mrb[40].mxu1 }
 0x39f   :  { %v6053_v10 = vadd.f32 %v4730_v15, %v8960_v37  ;;  %v6085_v59 = vadd.f32 %v5295_v63, %v8964_v52  ;;  %v4732_v39 = vpop.f32.mrb[57].mxu0  ;;  %v5297_v14 = vpop.f32.mrb[41].mxu1 }
 0x3a0   :  { %v6054_v60 = vadd.f32 %v4732_v39, %v8968_v46  ;;  %v6086_v13 = vadd.f32 %v5297_v14, %v8970_v58  ;;  %v4734_v54 = vpop.f32.mrb[58].mxu0  ;;  %v5299_v33 = vpop.f32.mrb[42].mxu1 }
 0x3a1   :  { %v5362_v12 = vmax.f32 %v6053_v10, 0.0  ;;  %v5364_v57 = vmax.f32 %v6085_v59, 0.0  ;;  %v6055_v20 = vadd.f32 %v4734_v54, %v8960_v37  ;;  %v6087_v3 = vadd.f32 %v5299_v33, %v8964_v52  ;;  %v4736_v5 = vpop.f32.mrb[59].mxu0  ;;  %v5301_v16 = vpop.f32.mrb[43].mxu1 }
 0x3a2   :  { %v5363_v1 = vmax.f32 %v6054_v60, 0.0  ;;  %v5365_v25 = vmax.f32 %v6086_v13, 0.0  ;;  %v6056_v6 = vadd.f32 %v4736_v5, %v8968_v46  ;;  %v6088_v40 = vadd.f32 %v5301_v16, %v8970_v58 }
 0x3a3   :  { %5402 = vst [vmem:[#allocation3 + $0xc0] sm:$0xff] %v5362_v12  ;;  %5435 = vst [vmem:[#allocation3 + $0x2c0] sm:$0xff] %v5364_v57  ;;  %v5366_v26 = vmax.f32 %v6055_v20, 0.0  ;;  %v5368_v11 = vmax.f32 %v6087_v3, 0.0 }
 0x3a4   :  { %5403 = vst.msk [vmem:[#allocation3 + $0xc8] sm:$0xff] %vm910_vm7, %v5363_v1  ;;  %5436 = vst.msk [vmem:[#allocation3 + $0x2c8] sm:$0xff] %vm910_vm7, %v5365_v25  ;;  %v5367_v61 = vmax.f32 %v6056_v6, 0.0  ;;  %v5369_v30 = vmax.f32 %v6088_v40, 0.0 }
 0x3a5   :  { %5404 = vst [vmem:[#allocation3 + $0xd0] sm:$0xff] %v5366_v26  ;;  %5437 = vst [vmem:[#allocation3 + $0x2d0] sm:$0xff] %v5368_v11 }
 0x3a6   :  { %5405 = vst.msk [vmem:[#allocation3 + $0xd8] sm:$0xff] %vm910_vm7, %v5367_v61  ;;  %5438 = vst.msk [vmem:[#allocation3 + $0x2d8] sm:$0xff] %vm910_vm7, %v5369_v30  ;;  %v4740_v41 = vpop.f32.mrb[60].mxu0  ;;  %v5305_v47 = vpop.f32.mrb[44].mxu1 }
 0x3a7   :  { %v6057_v0 = vadd.f32 %v4740_v41, %v8960_v37  ;;  %v6089_v21 = vadd.f32 %v5305_v47, %v8964_v52  ;;  %v4742_v7 = vpop.f32.mrb[61].mxu0  ;;  %v5307_v38 = vpop.f32.mrb[45].mxu1 }
 0x3a8   :  { %v6058_v42 = vadd.f32 %v4742_v7, %v8968_v46  ;;  %v6090_v62 = vadd.f32 %v5307_v38, %v8970_v58  ;;  %v4744_v55 = vpop.f32.mrb[62].mxu0  ;;  %v5309_v45 = vpop.f32.mrb[46].mxu1 }
 0x3a9   :  { %v5370_v51 = vmax.f32 %v6057_v0, 0.0  ;;  %v5372_v36 = vmax.f32 %v6089_v21, 0.0  ;;  %v6059_v27 = vadd.f32 %v4744_v55, %v8960_v37  ;;  %v6091_v56 = vadd.f32 %v5309_v45, %v8964_v52  ;;  %v4746_v34 = vpop.f32.mrb[63].mxu0  ;;  %v5311_v19 = vpop.f32.mrb[47].mxu1 }
 0x3aa   :  { %v5371_v32 = vmax.f32 %v6058_v42, 0.0  ;;  %v5373_v35 = vmax.f32 %v6090_v62, 0.0  ;;  %v6060_v4 = vadd.f32 %v4746_v34, %v8968_v46  ;;  %v6092_v49 = vadd.f32 %v5311_v19, %v8970_v58 }
 0x3ab   :  { %5406 = vst [vmem:[#allocation3 + $0xe0] sm:$0xff] %v5370_v51  ;;  %5439 = vst [vmem:[#allocation3 + $0x2e0] sm:$0xff] %v5372_v36  ;;  %v5374_v17 = vmax.f32 %v6059_v27, 0.0  ;;  %v5376_v23 = vmax.f32 %v6091_v56, 0.0 }
 0x3ac   :  { %5407 = vst.msk [vmem:[#allocation3 + $0xe8] sm:$0xff] %vm910_vm7, %v5371_v32  ;;  %5440 = vst.msk [vmem:[#allocation3 + $0x2e8] sm:$0xff] %vm910_vm7, %v5373_v35  ;;  %v5375_v37 = vmax.f32 %v6060_v4, 0.0  ;;  %v5377_v52 = vmax.f32 %v6092_v49, 0.0 }
 0x3ad   :  { %5408 = vst [vmem:[#allocation3 + $0xf0] sm:$0xff] %v5374_v17  ;;  %5441 = vst [vmem:[#allocation3 + $0x2f0] sm:$0xff] %v5376_v23 }
 0x3ae   :  { %5409 = vst.msk [vmem:[#allocation3 + $0xf8] sm:$0xff] %vm910_vm7, %v5375_v37  ;;  %5442 = vst.msk [vmem:[#allocation3 + $0x2f8] sm:$0xff] %vm910_vm7, %v5377_v52 }
 0x3af   :  { %6952 = shalt.err (!%p6949_p4)
}
 0x3b0   :  { %s6953_s24 = scalar_lea.hbm %s9085_s5, 12288 }
 0x3b1   :  { %p6954_p5 = scmp.ne.s32.totalorder %s9085_s5, %s6953_s24  ;;  %p6957_p6 = scmp.lt.u32.totalorder %s6953_s24, %s9085_s5 }
 0x3b3   :  { %p6959_p7 = pnand %p6957_p6, %p6954_p5 }
 0x3b5   :  { %6962 = shalt.err (!%p6959_p7)
}
 0x3b6   :  { %s6968_s28 = smov 256   ;;  %s6969_s29 = smov 16  }
 0x3b7   :  { %5454 = dma.vmem_to_hbm [thread:$0]  %s5449_s21, 12288, %s9085_s5, [#allocation4], %s6968_s28, %s6968_s28, %s6969_s29  }
 0x3b8   :  { %6963 = dma.done.wait [#allocation4], 12288  }
 0x3b9   :  { %6964 = vsyncadd [#allocation4], 4294955008 }
 0x3ba   :  { %5458 = vsyncpa [#allocation4], 1 }

</bundles_post_ra>
